<compile_context>
chip_gen: v5e
topology: v5e:2x2
jax: 0.10.0
libtpu: 0.0.40
codegen_flags: <defaults>
</compile_context>

<pallas_src>
import math

import jax
import jax.numpy as jnp
from jax.experimental import pallas as pl
from jax.experimental.pallas import tpu as pltpu

PAD, BOS = 0, 1
NEG_INF = -1e9


# ----------------------------------------------------------------------------
# Kernel 1: bidirectional GRU encoder, forward/backward interleaved.
# Inputs are pre-projected x@Wi + bi + [bhr|bhz|0] per direction (T, B, 3H);
# only h@Wh stays in the recurrence.  Padded steps keep the previous hidden and
# emit zeros (pack_padded_sequence semantics).  Emits a single lane-dense
# (T*B, 2H) bf16 slab (fwd|bwd, row order (t, b)) plus the final hidden (B, 2H).
# ----------------------------------------------------------------------------
def bigru_encoder_kernel(xwf_ref, xwb_ref, mask_ref,
                         whf_ref, bhnf_ref, whb_ref, bhnb_ref,
                         enc_ref, hfin_ref,
                         hf_s, hb_s):
    T, B, G = xwf_ref.shape
    H = G // 3
    bf, f32 = jnp.bfloat16, jnp.float32

    whf = whf_ref[...]
    whb = whb_ref[...]
    bhnf = jnp.broadcast_to(bhnf_ref[...], (B, H))   # hoisted: no per-step rebroadcast
    bhnb = jnp.broadcast_to(bhnb_ref[...], (B, H))

    def gru_step(xw, h, wh, bhn):
        hw = jnp.dot(h.astype(bf), wh, preferred_element_type=f32)        # (B, 3H)
        r = jax.nn.sigmoid(xw[:, :H] + hw[:, :H])
        z = jax.nn.sigmoid(xw[:, H:2 * H] + hw[:, H:2 * H])
        n = jnp.tanh(xw[:, 2 * H:] + r * (hw[:, 2 * H:] + bhn))
        return (1.0 - z) * n + z * h

    hf = jnp.zeros((B, H), f32)
    hb = jnp.zeros((B, H), f32)
    # The two directions are independent -> interleave them.  T is small and
    # static, and the per-step live set is tiny (h only), so a static unroll
    # keeps all ref slicing static without spill pressure.
    for t in range(T):
        tb = T - 1 - t
        mf = mask_ref[t]                                # (B, 1)
        mb = mask_ref[tb]
        hf_new = gru_step(xwf_ref[t], hf, whf, bhnf)
        hb_new = gru_step(xwb_ref[tb], hb, whb, bhnb)
        hf = mf * hf_new + (1.0 - mf) * hf              # padded steps keep prev hidden
        hb = mb * hb_new + (1.0 - mb) * hb
        hf_s[t * B:(t + 1) * B, :] = mf * hf            # padded outputs are zero
        hb_s[tb * B:(tb + 1) * B, :] = mb * hb

    # Single lane-dense store of the encoder states and the final hidden.
    enc_ref[...] = jnp.concatenate([hf_s[...], hb_s[...]], axis=-1).astype(enc_ref.dtype)
    hfin_ref[...] = jnp.concatenate([hf, hb], axis=-1)


# ----------------------------------------------------------------------------
# Kernel 2: attentional GRU decoder + vocab projection + masked cross-entropy.
# Phase 1: serial GRU recurrence only (hidden states -> VMEM scratch).
# Phase 2: batched attention / combine / projection / CE over all steps at once
# (batch folded into the row dim; additive mask handles cross-batch + src pad).
# ----------------------------------------------------------------------------
def attn_decoder_kernel(xw_ref, enc_ref, amask_ref, tgt_ref, h0_ref,
                        whh_ref, bhn_ref,
                        watt_ref, wcc_ref, wch_ref, bc_ref,
                        wproj_ref, bproj_ref,
                        logits_ref, loss_ref, hs_ref):
    Td, B, G = xw_ref.shape
    Hd = G // 3
    bf, f32 = jnp.bfloat16, jnp.float32

    whh = whh_ref[...]
    bhn = jnp.broadcast_to(bhn_ref[...], (B, Hd))

    # ---- Phase 1: serial recurrence (only h@Whh is on the critical path) ----
    h = h0_ref[...]                                     # (B, Hd) f32
    for t in range(Td):
        xw = xw_ref[t]                                  # (B, 3Hd), biases pre-folded
        hw = jnp.dot(h.astype(bf), whh, preferred_element_type=f32)
        r = jax.nn.sigmoid(xw[:, :Hd] + hw[:, :Hd])
        z = jax.nn.sigmoid(xw[:, Hd:2 * Hd] + hw[:, Hd:2 * Hd])
        n = jnp.tanh(xw[:, 2 * Hd:] + r * (hw[:, 2 * Hd:] + bhn))
        h = (1.0 - z) * n + z * h
        hs_ref[t * B:(t + 1) * B, :] = h

    # ---- Phase 2: batched attention / combine / projection / CE ----
    hs = hs_ref[...]                                    # (Td*B, Hd) f32
    enc = enc_ref[...]                                  # (Ts*B, Hd) bf16
    hs_bf = hs.astype(bf)

    q = jnp.dot(hs_bf, watt_ref[...], preferred_element_type=f32)          # (TdB, Hd)
    scores = jax.lax.dot_general(q.astype(bf), enc,
                                 (((1,), (1,)), ((), ())),
                                 preferred_element_type=f32)               # (TdB, TsB)
    scores = scores + amask_ref[...]                    # -1e9: cross-batch / src pad
    scores = scores - jnp.max(scores, axis=-1, keepdims=True)
    e = jnp.exp(scores)
    attn = e / jnp.sum(e, axis=-1, keepdims=True)       # exact softmax
    ctx = jnp.dot(attn.astype(bf), enc, preferred_element_type=f32)        # (TdB, Hd)

    comb = jnp.tanh(
        jnp.dot(ctx.astype(bf), wcc_ref[...], preferred_element_type=f32)
        + jnp.dot(hs_bf, wch_ref[...], preferred_element_type=f32)
        + bc_ref[...])
    logits = jnp.dot(comb.astype(bf), wproj_ref[...],
                     preferred_element_type=f32) + bproj_ref[...]          # (TdB, Vp)
    logits_ref[...] = logits.astype(logits_ref.dtype)   # full-lane bf16 store

    # masked cross-entropy, no one-hot input: target logit via iota compare.
    m = jnp.max(logits, axis=-1, keepdims=True)
    lse = m + jnp.log(jnp.sum(jnp.exp(logits - m), axis=-1, keepdims=True))
    tgt = tgt_ref[...]                                  # (TdB, 1) int32
    col = jax.lax.broadcasted_iota(jnp.int32, logits.shape, 1)
    tgt_logit = jnp.sum(jnp.where(col == tgt, logits, 0.0), axis=-1, keepdims=True)
    w = (tgt != PAD).astype(f32)
    loss_ref[0] = jnp.sum((lse - tgt_logit) * w) / jnp.maximum(jnp.sum(w), 1.0)


# ----------------------------------------------------------------------------
# Parameter init (deterministic, PyTorch-style uniform ranges).
# GRU weights stored gate-fused: (in, 3H), biases (1, 3H), gate order [r|z|n].
# ----------------------------------------------------------------------------
def init_params(key, vocab, emb_dim, hidden, pad_idx=PAD):
    Hd = 2 * hidden
    ks = jax.random.split(key, 20)

    def u(k, shape, a):
        return jax.random.uniform(k, shape, jnp.float32, -a, a)

    s_enc = 1.0 / math.sqrt(hidden)
    s_dec = 1.0 / math.sqrt(Hd)

    return {
        "enc_emb": u(ks[0], (vocab, emb_dim), 0.05).at[pad_idx].set(0.0),
        "dec_emb": u(ks[1], (vocab, emb_dim), 0.05),
        # encoder forward / backward GRU
        "enc_wif": u(ks[2], (emb_dim, 3 * hidden), s_enc),
        "enc_whf": u(ks[3], (hidden, 3 * hidden), s_enc),
        "enc_bif": u(ks[4], (1, 3 * hidden), s_enc),
        "enc_bhf": u(ks[5], (1, 3 * hidden), s_enc),
        "enc_wib": u(ks[6], (emb_dim, 3 * hidden), s_enc),
        "enc_whb": u(ks[7], (hidden, 3 * hidden), s_enc),
        "enc_bib": u(ks[8], (1, 3 * hidden), s_enc),
        "enc_bhb": u(ks[9], (1, 3 * hidden), s_enc),
        # decoder GRU (hidden = 2 * encoder hidden)
        "dec_wih": u(ks[10], (emb_dim, 3 * Hd), s_dec),
        "dec_whh": u(ks[11], (Hd, 3 * Hd), s_dec),
        "dec_bih": u(ks[12], (1, 3 * Hd), s_dec),
        "dec_bhh": u(ks[13], (1, 3 * Hd), s_dec),
        # attention (general) + combine + projection
        "watt": u(ks[14], (Hd, Hd), s_dec),
        "wc_ctx": u(ks[15], (Hd, Hd), s_dec),
        "wc_h": u(ks[16], (Hd, Hd), s_dec),
        "bc": u(ks[17], (1, Hd), s_dec),
        "wproj": u(ks[18], (Hd, vocab), s_dec),
        "bproj": u(ks[19], (1, vocab), s_dec),
    }


def _fold_rz_bias(bh, H):
    # r/z recurrent biases fold into the pre-projected input; the n-gate
    # recurrent bias must stay inside r*(...) (PyTorch GRU semantics).
    return jnp.concatenate([bh[:, :2 * H], jnp.zeros((1, H), bh.dtype)], axis=-1)


# ----------------------------------------------------------------------------
# Forward pass wrapper (embedding + input-projection/bias folding, masks,
# layout, vocab lane-padding).  Hot path lives in the two Pallas kernels.
# Returns the scalar training loss (+ logits).
# ----------------------------------------------------------------------------
def encoder_decoder_forward(p, src, src_len, trg, trg_len):
    V, E = p["enc_emb"].shape
    H = p["enc_whf"].shape[0]
    Hd = 2 * H
    Ts, B = src.shape
    Vp = ((V + 127) // 128) * 128
    bf = jnp.bfloat16

    vmem = pl.BlockSpec(memory_space=pltpu.MemorySpace.VMEM)
    smem = pl.BlockSpec(memory_space=pltpu.MemorySpace.SMEM)

    # ---- encoder: fold embedding + input projection + r/z recurrent biases ----
    proj_f = jnp.dot(p["enc_emb"], p["enc_wif"]) + p["enc_bif"] + _fold_rz_bias(p["enc_bhf"], H)
    proj_b = jnp.dot(p["enc_emb"], p["enc_wib"]) + p["enc_bib"] + _fold_rz_bias(p["enc_bhb"], H)
    xwf = proj_f[src]                                                   # (Ts, B, 3H)
    xwb = proj_b[src]
    src_mask = (jnp.arange(Ts)[:, None] < src_len[None, :]).astype(jnp.float32)
    mask3 = src_mask[..., None]                                         # (Ts, B, 1)

    enc2, h_fin = pl.pallas_call(
        bigru_encoder_kernel,
        out_shape=(jax.ShapeDtypeStruct((Ts * B, Hd), jnp.bfloat16),
                   jax.ShapeDtypeStruct((B, Hd), jnp.float32)),
        in_specs=[vmem] * 7,
        out_specs=(vmem, vmem),
        scratch_shapes=[pltpu.VMEM((Ts * B, H), jnp.float32),
                        pltpu.VMEM((Ts * B, H), jnp.float32)],
    )(xwf, xwb, mask3,
      p["enc_whf"].astype(bf), p["enc_bhf"][:, 2 * H:],
      p["enc_whb"].astype(bf), p["enc_bhb"][:, 2 * H:])

    # ---- decoder (teacher forcing on trg[:-1], predict trg[1:]) ----
    dec_in, dec_tgt = trg[:-1], trg[1:]
    Td = dec_in.shape[0]
    proj_d = jnp.dot(p["dec_emb"], p["dec_wih"]) + p["dec_bih"] + _fold_rz_bias(p["dec_bhh"], Hd)
    xwd = proj_d[dec_in]                                                # (Td, B, 3Hd)
    tgt_flat = dec_tgt.reshape(Td * B, 1).astype(jnp.int32)             # (t, b) row order

    # Batch is folded into the row dim of the batched attention matmuls; this
    # additive mask kills both cross-batch pairs and padded source positions.
    bq = jnp.arange(Td * B) % B
    bs = jnp.arange(Ts * B) % B
    ss = jnp.arange(Ts * B) // B
    valid = (bq[:, None] == bs[None, :]) & (ss[None, :] < src_len[bs][None, :])
    amask = jnp.where(valid, 0.0, NEG_INF).astype(jnp.float32)          # (Td*B, Ts*B)

    # vocab projection lane-padded to Vp; padded columns get bias -1e9 so
    # softmax / CE ignore them.
    wproj_p = jnp.zeros((Hd, Vp), jnp.float32).at[:, :V].set(p["wproj"]).astype(bf)
    bproj_p = jnp.full((1, Vp), NEG_INF, jnp.float32).at[:, :V].set(p["bproj"])

    logits2, loss = pl.pallas_call(
        attn_decoder_kernel,
        out_shape=(jax.ShapeDtypeStruct((Td * B, Vp), jnp.bfloat16),
                   jax.ShapeDtypeStruct((1,), jnp.float32)),
        in_specs=[vmem] * 13,
        out_specs=(vmem, smem),
        scratch_shapes=[pltpu.VMEM((Td * B, Hd), jnp.float32)],
    )(xwd, enc2, amask, tgt_flat, h_fin,
      p["dec_whh"].astype(bf), p["dec_bhh"][:, 2 * Hd:],
      p["watt"].astype(bf), p["wc_ctx"].astype(bf), p["wc_h"].astype(bf), p["bc"],
      wproj_p, bproj_p)

    logits = logits2.reshape(Td, B, Vp)[:, :, :V]
    return loss[0], logits


if __name__ == "__main__":
    V, E, H = 60, 24, 64          # vocab, emb_dim, encoder hidden (decoder hidden = 128)
    B, Ts, Tt = 2, 8, 8

    key = jax.random.PRNGKey(0)
    kp, ks, kt = jax.random.split(key, 3)
    params = init_params(kp, V, E, H)

    src_len = jnp.array([8, 5], jnp.int32)
    trg_len = jnp.array([8, 6], jnp.int32)

    src = jax.random.randint(ks, (Ts, B), 2, V).astype(jnp.int32)
    src = jnp.where(jnp.arange(Ts)[:, None] < src_len[None, :], src, PAD)

    trg = jax.random.randint(kt, (Tt, B), 2, V).astype(jnp.int32)
    trg = trg.at[0].set(BOS)
    trg = jnp.where(jnp.arange(Tt)[:, None] < trg_len[None, :], trg, PAD)

    fwd = jax.jit(encoder_decoder_forward)
    loss, logits = fwd(params, src, src_len, trg, trg_len)
    jax.block_until_ready((loss, logits))
    assert jnp.isfinite(loss), "loss is not finite"
    print("KERNEL_OK")
</pallas_src>

<mosaic_0001>
module attributes {stable_mosaic.version = 11 : i64} {
  func.func @bigru_encoder_kernel(%arg0: memref<8x2x192xf32, #tpu.memory_space<vmem>>, %arg1: memref<8x2x192xf32, #tpu.memory_space<vmem>>, %arg2: memref<8x2x1xf32, #tpu.memory_space<vmem>>, %arg3: memref<64x192xbf16, #tpu.memory_space<vmem>>, %arg4: memref<1x64xf32, #tpu.memory_space<vmem>>, %arg5: memref<64x192xbf16, #tpu.memory_space<vmem>>, %arg6: memref<1x64xf32, #tpu.memory_space<vmem>>, %arg7: memref<16x128xbf16, #tpu.memory_space<vmem>>, %arg8: memref<2x128xf32, #tpu.memory_space<vmem>>, %arg9: memref<16x64xf32, #tpu.memory_space<vmem>>, %arg10: memref<16x64xf32, #tpu.memory_space<vmem>>) attributes {dimension_semantics = [], scalar_prefetch = 0 : i64, scratch_operands = 2 : i64, tpu.core_type = #tpu.core_type<tc>} {
    %c0 = arith.constant 0 : index
    %c0_0 = arith.constant 0 : index
    %0 = vector.load %arg3[%c0, %c0_0] : memref<64x192xbf16, #tpu.memory_space<vmem>>, vector<64x192xbf16>
    %c0_1 = arith.constant 0 : index
    %c0_2 = arith.constant 0 : index
    %1 = vector.load %arg5[%c0_1, %c0_2] : memref<64x192xbf16, #tpu.memory_space<vmem>>, vector<64x192xbf16>
    %c0_3 = arith.constant 0 : index
    %c0_4 = arith.constant 0 : index
    %2 = vector.load %arg4[%c0_3, %c0_4] : memref<1x64xf32, #tpu.memory_space<vmem>>, vector<1x64xf32>
    %3 = vector.shape_cast %2 : vector<1x64xf32> to vector<1x64xf32>
    %4 = vector.broadcast %3 : vector<1x64xf32> to vector<2x64xf32>
    %c0_5 = arith.constant 0 : index
    %c0_6 = arith.constant 0 : index
    %5 = vector.load %arg6[%c0_5, %c0_6] : memref<1x64xf32, #tpu.memory_space<vmem>>, vector<1x64xf32>
    %6 = vector.shape_cast %5 : vector<1x64xf32> to vector<1x64xf32>
    %7 = vector.broadcast %6 : vector<1x64xf32> to vector<2x64xf32>
    %cst = arith.constant 0.000000e+00 : f32
    %8 = vector.broadcast %cst : f32 to vector<2x64xf32>
    %cst_7 = arith.constant 0.000000e+00 : f32
    %9 = vector.broadcast %cst_7 : f32 to vector<2x64xf32>
    %c0_8 = arith.constant 0 : index
    %c0_9 = arith.constant 0 : index
    %c0_10 = arith.constant 0 : index
    %10 = vector.load %arg2[%c0_8, %c0_9, %c0_10] : memref<8x2x1xf32, #tpu.memory_space<vmem>>, vector<1x2x1xf32>
    %11 = vector.shape_cast %10 : vector<1x2x1xf32> to vector<2x1xf32>
    %c7 = arith.constant 7 : index
    %c0_11 = arith.constant 0 : index
    %c0_12 = arith.constant 0 : index
    %12 = vector.load %arg2[%c7, %c0_11, %c0_12] : memref<8x2x1xf32, #tpu.memory_space<vmem>>, vector<1x2x1xf32>
    %13 = vector.shape_cast %12 : vector<1x2x1xf32> to vector<2x1xf32>
    %c0_13 = arith.constant 0 : index
    %c0_14 = arith.constant 0 : index
    %c0_15 = arith.constant 0 : index
    %14 = vector.load %arg0[%c0_13, %c0_14, %c0_15] : memref<8x2x192xf32, #tpu.memory_space<vmem>>, vector<1x2x192xf32>
    %15 = vector.shape_cast %14 : vector<1x2x192xf32> to vector<2x192xf32>
    %16 = arith.truncf %8 : vector<2x64xf32> to vector<2x64xbf16>
    %cst_16 = arith.constant dense<0.000000e+00> : vector<2x192xf32>
    %17 = tpu.matmul %16, %0, %cst_16 {dimension_numbers = #tpu.dot_dimension_numbers<[1], [0], [0], [1], [0, 0, 1, 1], [], []>} : vector<2x64xbf16>, vector<64x192xbf16>, vector<2x192xf32> -> vector<2x192xf32>
    %18 = vector.extract_strided_slice %15 {offsets = [0, 0], sizes = [2, 64], strides = [1, 1]} : vector<2x192xf32> to vector<2x64xf32>
    %19 = vector.extract_strided_slice %17 {offsets = [0, 0], sizes = [2, 64], strides = [1, 1]} : vector<2x192xf32> to vector<2x64xf32>
    %20 = arith.addf %18, %19 : vector<2x64xf32>
    %21 = arith.negf %20 : vector<2x64xf32>
    %22 = math.exp %21 : vector<2x64xf32>
    %cst_17 = arith.constant 1.000000e+00 : f32
    %23 = vector.broadcast %cst_17 : f32 to vector<2x64xf32>
    %24 = arith.addf %23, %22 : vector<2x64xf32>
    %25 = arith.divf %23, %24 : vector<2x64xf32>
    %26 = vector.extract_strided_slice %15 {offsets = [0, 64], sizes = [2, 64], strides = [1, 1]} : vector<2x192xf32> to vector<2x64xf32>
    %27 = vector.extract_strided_slice %17 {offsets = [0, 64], sizes = [2, 64], strides = [1, 1]} : vector<2x192xf32> to vector<2x64xf32>
    %28 = arith.addf %26, %27 : vector<2x64xf32>
    %29 = arith.negf %28 : vector<2x64xf32>
    %30 = math.exp %29 : vector<2x64xf32>
    %cst_18 = arith.constant 1.000000e+00 : f32
    %31 = vector.broadcast %cst_18 : f32 to vector<2x64xf32>
    %32 = arith.addf %31, %30 : vector<2x64xf32>
    %33 = arith.divf %31, %32 : vector<2x64xf32>
    %34 = vector.extract_strided_slice %15 {offsets = [0, 128], sizes = [2, 64], strides = [1, 1]} : vector<2x192xf32> to vector<2x64xf32>
    %35 = vector.extract_strided_slice %17 {offsets = [0, 128], sizes = [2, 64], strides = [1, 1]} : vector<2x192xf32> to vector<2x64xf32>
    %36 = arith.addf %35, %4 : vector<2x64xf32>
    %37 = arith.mulf %25, %36 : vector<2x64xf32>
    %38 = arith.addf %34, %37 : vector<2x64xf32>
    %39 = math.tanh %38 : vector<2x64xf32>
    %cst_19 = arith.constant 1.000000e+00 : f32
    %40 = vector.broadcast %cst_19 : f32 to vector<2x64xf32>
    %41 = arith.subf %40, %33 : vector<2x64xf32>
    %42 = arith.mulf %41, %39 : vector<2x64xf32>
    %43 = arith.mulf %33, %8 : vector<2x64xf32>
    %44 = arith.addf %42, %43 : vector<2x64xf32>
    %c7_20 = arith.constant 7 : index
    %c0_21 = arith.constant 0 : index
    %c0_22 = arith.constant 0 : index
    %45 = vector.load %arg1[%c7_20, %c0_21, %c0_22] : memref<8x2x192xf32, #tpu.memory_space<vmem>>, vector<1x2x192xf32>
    %46 = vector.shape_cast %45 : vector<1x2x192xf32> to vector<2x192xf32>
    %47 = arith.truncf %9 : vector<2x64xf32> to vector<2x64xbf16>
    %cst_23 = arith.constant dense<0.000000e+00> : vector<2x192xf32>
    %48 = tpu.matmul %47, %1, %cst_23 {dimension_numbers = #tpu.dot_dimension_numbers<[1], [0], [0], [1], [0, 0, 1, 1], [], []>} : vector<2x64xbf16>, vector<64x192xbf16>, vector<2x192xf32> -> vector<2x192xf32>
    %49 = vector.extract_strided_slice %46 {offsets = [0, 0], sizes = [2, 64], strides = [1, 1]} : vector<2x192xf32> to vector<2x64xf32>
    %50 = vector.extract_strided_slice %48 {offsets = [0, 0], sizes = [2, 64], strides = [1, 1]} : vector<2x192xf32> to vector<2x64xf32>
    %51 = arith.addf %49, %50 : vector<2x64xf32>
    %52 = arith.negf %51 : vector<2x64xf32>
    %53 = math.exp %52 : vector<2x64xf32>
    %cst_24 = arith.constant 1.000000e+00 : f32
    %54 = vector.broadcast %cst_24 : f32 to vector<2x64xf32>
    %55 = arith.addf %54, %53 : vector<2x64xf32>
    %56 = arith.divf %54, %55 : vector<2x64xf32>
    %57 = vector.extract_strided_slice %46 {offsets = [0, 64], sizes = [2, 64], strides = [1, 1]} : vector<2x192xf32> to vector<2x64xf32>
    %58 = vector.extract_strided_slice %48 {offsets = [0, 64], sizes = [2, 64], strides = [1, 1]} : vector<2x192xf32> to vector<2x64xf32>
    %59 = arith.addf %57, %58 : vector<2x64xf32>
    %60 = arith.negf %59 : vector<2x64xf32>
    %61 = math.exp %60 : vector<2x64xf32>
    %cst_25 = arith.constant 1.000000e+00 : f32
    %62 = vector.broadcast %cst_25 : f32 to vector<2x64xf32>
    %63 = arith.addf %62, %61 : vector<2x64xf32>
    %64 = arith.divf %62, %63 : vector<2x64xf32>
    %65 = vector.extract_strided_slice %46 {offsets = [0, 128], sizes = [2, 64], strides = [1, 1]} : vector<2x192xf32> to vector<2x64xf32>
    %66 = vector.extract_strided_slice %48 {offsets = [0, 128], sizes = [2, 64], strides = [1, 1]} : vector<2x192xf32> to vector<2x64xf32>
    %67 = arith.addf %66, %7 : vector<2x64xf32>
    %68 = arith.mulf %56, %67 : vector<2x64xf32>
    %69 = arith.addf %65, %68 : vector<2x64xf32>
    %70 = math.tanh %69 : vector<2x64xf32>
    %cst_26 = arith.constant 1.000000e+00 : f32
    %71 = vector.broadcast %cst_26 : f32 to vector<2x64xf32>
    %72 = arith.subf %71, %64 : vector<2x64xf32>
    %73 = arith.mulf %72, %70 : vector<2x64xf32>
    %74 = arith.mulf %64, %9 : vector<2x64xf32>
    %75 = arith.addf %73, %74 : vector<2x64xf32>
    %76 = vector.broadcast %11 : vector<2x1xf32> to vector<2x64xf32>
    %77 = arith.mulf %76, %44 : vector<2x64xf32>
    %cst_27 = arith.constant 1.000000e+00 : f32
    %78 = vector.broadcast %cst_27 : f32 to vector<2x1xf32>
    %79 = arith.subf %78, %11 : vector<2x1xf32>
    %80 = vector.broadcast %79 : vector<2x1xf32> to vector<2x64xf32>
    %81 = arith.mulf %80, %8 : vector<2x64xf32>
    %82 = arith.addf %77, %81 : vector<2x64xf32>
    %83 = vector.broadcast %13 : vector<2x1xf32> to vector<2x64xf32>
    %84 = arith.mulf %83, %75 : vector<2x64xf32>
    %cst_28 = arith.constant 1.000000e+00 : f32
    %85 = vector.broadcast %cst_28 : f32 to vector<2x1xf32>
    %86 = arith.subf %85, %13 : vector<2x1xf32>
    %87 = vector.broadcast %86 : vector<2x1xf32> to vector<2x64xf32>
    %88 = arith.mulf %87, %9 : vector<2x64xf32>
    %89 = arith.addf %84, %88 : vector<2x64xf32>
    %90 = vector.broadcast %11 : vector<2x1xf32> to vector<2x64xf32>
    %91 = arith.mulf %90, %82 : vector<2x64xf32>
    %c0_29 = arith.constant 0 : index
    %c0_30 = arith.constant 0 : index
    %92 = vector.load %arg9[%c0_29, %c0_30] : memref<16x64xf32, #tpu.memory_space<vmem>>, vector<2x64xf32>
    tpu.vector_store %arg9[%c0_29, %c0_30], %91 {strides = array<i32>} : memref<16x64xf32, #tpu.memory_space<vmem>>, vector<2x64xf32>,
    %93 = vector.broadcast %13 : vector<2x1xf32> to vector<2x64xf32>
    %94 = arith.mulf %93, %89 : vector<2x64xf32>
    %c14 = arith.constant 14 : index
    %c0_31 = arith.constant 0 : index
    %95 = vector.load %arg10[%c14, %c0_31] : memref<16x64xf32, #tpu.memory_space<vmem>>, vector<2x64xf32>
    tpu.vector_store %arg10[%c14, %c0_31], %94 {strides = array<i32>} : memref<16x64xf32, #tpu.memory_space<vmem>>, vector<2x64xf32>,
    %c1 = arith.constant 1 : index
    %c0_32 = arith.constant 0 : index
    %c0_33 = arith.constant 0 : index
    %96 = vector.load %arg2[%c1, %c0_32, %c0_33] : memref<8x2x1xf32, #tpu.memory_space<vmem>>, vector<1x2x1xf32>
    %97 = vector.shape_cast %96 : vector<1x2x1xf32> to vector<2x1xf32>
    %c6 = arith.constant 6 : index
    %c0_34 = arith.constant 0 : index
    %c0_35 = arith.constant 0 : index
    %98 = vector.load %arg2[%c6, %c0_34, %c0_35] : memref<8x2x1xf32, #tpu.memory_space<vmem>>, vector<1x2x1xf32>
    %99 = vector.shape_cast %98 : vector<1x2x1xf32> to vector<2x1xf32>
    %c1_36 = arith.constant 1 : index
    %c0_37 = arith.constant 0 : index
    %c0_38 = arith.constant 0 : index
    %100 = vector.load %arg0[%c1_36, %c0_37, %c0_38] : memref<8x2x192xf32, #tpu.memory_space<vmem>>, vector<1x2x192xf32>
    %101 = vector.shape_cast %100 : vector<1x2x192xf32> to vector<2x192xf32>
    %102 = arith.truncf %82 : vector<2x64xf32> to vector<2x64xbf16>
    %cst_39 = arith.constant dense<0.000000e+00> : vector<2x192xf32>
    %103 = tpu.matmul %102, %0, %cst_39 {dimension_numbers = #tpu.dot_dimension_numbers<[1], [0], [0], [1], [0, 0, 1, 1], [], []>} : vector<2x64xbf16>, vector<64x192xbf16>, vector<2x192xf32> -> vector<2x192xf32>
    %104 = vector.extract_strided_slice %101 {offsets = [0, 0], sizes = [2, 64], strides = [1, 1]} : vector<2x192xf32> to vector<2x64xf32>
    %105 = vector.extract_strided_slice %103 {offsets = [0, 0], sizes = [2, 64], strides = [1, 1]} : vector<2x192xf32> to vector<2x64xf32>
    %106 = arith.addf %104, %105 : vector<2x64xf32>
    %107 = arith.negf %106 : vector<2x64xf32>
    %108 = math.exp %107 : vector<2x64xf32>
    %cst_40 = arith.constant 1.000000e+00 : f32
    %109 = vector.broadcast %cst_40 : f32 to vector<2x64xf32>
    %110 = arith.addf %109, %108 : vector<2x64xf32>
    %111 = arith.divf %109, %110 : vector<2x64xf32>
    %112 = vector.extract_strided_slice %101 {offsets = [0, 64], sizes = [2, 64], strides = [1, 1]} : vector<2x192xf32> to vector<2x64xf32>
    %113 = vector.extract_strided_slice %103 {offsets = [0, 64], sizes = [2, 64], strides = [1, 1]} : vector<2x192xf32> to vector<2x64xf32>
    %114 = arith.addf %112, %113 : vector<2x64xf32>
    %115 = arith.negf %114 : vector<2x64xf32>
    %116 = math.exp %115 : vector<2x64xf32>
    %cst_41 = arith.constant 1.000000e+00 : f32
    %117 = vector.broadcast %cst_41 : f32 to vector<2x64xf32>
    %118 = arith.addf %117, %116 : vector<2x64xf32>
    %119 = arith.divf %117, %118 : vector<2x64xf32>
    %120 = vector.extract_strided_slice %101 {offsets = [0, 128], sizes = [2, 64], strides = [1, 1]} : vector<2x192xf32> to vector<2x64xf32>
    %121 = vector.extract_strided_slice %103 {offsets = [0, 128], sizes = [2, 64], strides = [1, 1]} : vector<2x192xf32> to vector<2x64xf32>
    %122 = arith.addf %121, %4 : vector<2x64xf32>
    %123 = arith.mulf %111, %122 : vector<2x64xf32>
    %124 = arith.addf %120, %123 : vector<2x64xf32>
    %125 = math.tanh %124 : vector<2x64xf32>
    %cst_42 = arith.constant 1.000000e+00 : f32
    %126 = vector.broadcast %cst_42 : f32 to vector<2x64xf32>
    %127 = arith.subf %126, %119 : vector<2x64xf32>
    %128 = arith.mulf %127, %125 : vector<2x64xf32>
    %129 = arith.mulf %119, %82 : vector<2x64xf32>
    %130 = arith.addf %128, %129 : vector<2x64xf32>
    %c6_43 = arith.constant 6 : index
    %c0_44 = arith.constant 0 : index
    %c0_45 = arith.constant 0 : index
    %131 = vector.load %arg1[%c6_43, %c0_44, %c0_45] : memref<8x2x192xf32, #tpu.memory_space<vmem>>, vector<1x2x192xf32>
    %132 = vector.shape_cast %131 : vector<1x2x192xf32> to vector<2x192xf32>
    %133 = arith.truncf %89 : vector<2x64xf32> to vector<2x64xbf16>
    %cst_46 = arith.constant dense<0.000000e+00> : vector<2x192xf32>
    %134 = tpu.matmul %133, %1, %cst_46 {dimension_numbers = #tpu.dot_dimension_numbers<[1], [0], [0], [1], [0, 0, 1, 1], [], []>} : vector<2x64xbf16>, vector<64x192xbf16>, vector<2x192xf32> -> vector<2x192xf32>
    %135 = vector.extract_strided_slice %132 {offsets = [0, 0], sizes = [2, 64], strides = [1, 1]} : vector<2x192xf32> to vector<2x64xf32>
    %136 = vector.extract_strided_slice %134 {offsets = [0, 0], sizes = [2, 64], strides = [1, 1]} : vector<2x192xf32> to vector<2x64xf32>
    %137 = arith.addf %135, %136 : vector<2x64xf32>
    %138 = arith.negf %137 : vector<2x64xf32>
    %139 = math.exp %138 : vector<2x64xf32>
    %cst_47 = arith.constant 1.000000e+00 : f32
    %140 = vector.broadcast %cst_47 : f32 to vector<2x64xf32>
    %141 = arith.addf %140, %139 : vector<2x64xf32>
    %142 = arith.divf %140, %141 : vector<2x64xf32>
    %143 = vector.extract_strided_slice %132 {offsets = [0, 64], sizes = [2, 64], strides = [1, 1]} : vector<2x192xf32> to vector<2x64xf32>
    %144 = vector.extract_strided_slice %134 {offsets = [0, 64], sizes = [2, 64], strides = [1, 1]} : vector<2x192xf32> to vector<2x64xf32>
    %145 = arith.addf %143, %144 : vector<2x64xf32>
    %146 = arith.negf %145 : vector<2x64xf32>
    %147 = math.exp %146 : vector<2x64xf32>
    %cst_48 = arith.constant 1.000000e+00 : f32
    %148 = vector.broadcast %cst_48 : f32 to vector<2x64xf32>
    %149 = arith.addf %148, %147 : vector<2x64xf32>
    %150 = arith.divf %148, %149 : vector<2x64xf32>
    %151 = vector.extract_strided_slice %132 {offsets = [0, 128], sizes = [2, 64], strides = [1, 1]} : vector<2x192xf32> to vector<2x64xf32>
    %152 = vector.extract_strided_slice %134 {offsets = [0, 128], sizes = [2, 64], strides = [1, 1]} : vector<2x192xf32> to vector<2x64xf32>
    %153 = arith.addf %152, %7 : vector<2x64xf32>
    %154 = arith.mulf %142, %153 : vector<2x64xf32>
    %155 = arith.addf %151, %154 : vector<2x64xf32>
    %156 = math.tanh %155 : vector<2x64xf32>
    %cst_49 = arith.constant 1.000000e+00 : f32
    %157 = vector.broadcast %cst_49 : f32 to vector<2x64xf32>
    %158 = arith.subf %157, %150 : vector<2x64xf32>
    %159 = arith.mulf %158, %156 : vector<2x64xf32>
    %160 = arith.mulf %150, %89 : vector<2x64xf32>
    %161 = arith.addf %159, %160 : vector<2x64xf32>
    %162 = vector.broadcast %97 : vector<2x1xf32> to vector<2x64xf32>
    %163 = arith.mulf %162, %130 : vector<2x64xf32>
    %cst_50 = arith.constant 1.000000e+00 : f32
    %164 = vector.broadcast %cst_50 : f32 to vector<2x1xf32>
    %165 = arith.subf %164, %97 : vector<2x1xf32>
    %166 = vector.broadcast %165 : vector<2x1xf32> to vector<2x64xf32>
    %167 = arith.mulf %166, %82 : vector<2x64xf32>
    %168 = arith.addf %163, %167 : vector<2x64xf32>
    %169 = vector.broadcast %99 : vector<2x1xf32> to vector<2x64xf32>
    %170 = arith.mulf %169, %161 : vector<2x64xf32>
    %cst_51 = arith.constant 1.000000e+00 : f32
    %171 = vector.broadcast %cst_51 : f32 to vector<2x1xf32>
    %172 = arith.subf %171, %99 : vector<2x1xf32>
    %173 = vector.broadcast %172 : vector<2x1xf32> to vector<2x64xf32>
    %174 = arith.mulf %173, %89 : vector<2x64xf32>
    %175 = arith.addf %170, %174 : vector<2x64xf32>
    %176 = vector.broadcast %97 : vector<2x1xf32> to vector<2x64xf32>
    %177 = arith.mulf %176, %168 : vector<2x64xf32>
    %c2 = arith.constant 2 : index
    %c0_52 = arith.constant 0 : index
    %178 = vector.load %arg9[%c2, %c0_52] : memref<16x64xf32, #tpu.memory_space<vmem>>, vector<2x64xf32>
    tpu.vector_store %arg9[%c2, %c0_52], %177 {strides = array<i32>} : memref<16x64xf32, #tpu.memory_space<vmem>>, vector<2x64xf32>,
    %179 = vector.broadcast %99 : vector<2x1xf32> to vector<2x64xf32>
    %180 = arith.mulf %179, %175 : vector<2x64xf32>
    %c12 = arith.constant 12 : index
    %c0_53 = arith.constant 0 : index
    %181 = vector.load %arg10[%c12, %c0_53] : memref<16x64xf32, #tpu.memory_space<vmem>>, vector<2x64xf32>
    tpu.vector_store %arg10[%c12, %c0_53], %180 {strides = array<i32>} : memref<16x64xf32, #tpu.memory_space<vmem>>, vector<2x64xf32>,
    %c2_54 = arith.constant 2 : index
    %c0_55 = arith.constant 0 : index
    %c0_56 = arith.constant 0 : index
    %182 = vector.load %arg2[%c2_54, %c0_55, %c0_56] : memref<8x2x1xf32, #tpu.memory_space<vmem>>, vector<1x2x1xf32>
    %183 = vector.shape_cast %182 : vector<1x2x1xf32> to vector<2x1xf32>
    %c5 = arith.constant 5 : index
    %c0_57 = arith.constant 0 : index
    %c0_58 = arith.constant 0 : index
    %184 = vector.load %arg2[%c5, %c0_57, %c0_58] : memref<8x2x1xf32, #tpu.memory_space<vmem>>, vector<1x2x1xf32>
    %185 = vector.shape_cast %184 : vector<1x2x1xf32> to vector<2x1xf32>
    %c2_59 = arith.constant 2 : index
    %c0_60 = arith.constant 0 : index
    %c0_61 = arith.constant 0 : index
    %186 = vector.load %arg0[%c2_59, %c0_60, %c0_61] : memref<8x2x192xf32, #tpu.memory_space<vmem>>, vector<1x2x192xf32>
    %187 = vector.shape_cast %186 : vector<1x2x192xf32> to vector<2x192xf32>
    %188 = arith.truncf %168 : vector<2x64xf32> to vector<2x64xbf16>
    %cst_62 = arith.constant dense<0.000000e+00> : vector<2x192xf32>
    %189 = tpu.matmul %188, %0, %cst_62 {dimension_numbers = #tpu.dot_dimension_numbers<[1], [0], [0], [1], [0, 0, 1, 1], [], []>} : vector<2x64xbf16>, vector<64x192xbf16>, vector<2x192xf32> -> vector<2x192xf32>
    %190 = vector.extract_strided_slice %187 {offsets = [0, 0], sizes = [2, 64], strides = [1, 1]} : vector<2x192xf32> to vector<2x64xf32>
    %191 = vector.extract_strided_slice %189 {offsets = [0, 0], sizes = [2, 64], strides = [1, 1]} : vector<2x192xf32> to vector<2x64xf32>
    %192 = arith.addf %190, %191 : vector<2x64xf32>
    %193 = arith.negf %192 : vector<2x64xf32>
    %194 = math.exp %193 : vector<2x64xf32>
    %cst_63 = arith.constant 1.000000e+00 : f32
    %195 = vector.broadcast %cst_63 : f32 to vector<2x64xf32>
    %196 = arith.addf %195, %194 : vector<2x64xf32>
    %197 = arith.divf %195, %196 : vector<2x64xf32>
    %198 = vector.extract_strided_slice %187 {offsets = [0, 64], sizes = [2, 64], strides = [1, 1]} : vector<2x192xf32> to vector<2x64xf32>
    %199 = vector.extract_strided_slice %189 {offsets = [0, 64], sizes = [2, 64], strides = [1, 1]} : vector<2x192xf32> to vector<2x64xf32>
    %200 = arith.addf %198, %199 : vector<2x64xf32>
    %201 = arith.negf %200 : vector<2x64xf32>
    %202 = math.exp %201 : vector<2x64xf32>
    %cst_64 = arith.constant 1.000000e+00 : f32
    %203 = vector.broadcast %cst_64 : f32 to vector<2x64xf32>
    %204 = arith.addf %203, %202 : vector<2x64xf32>
    %205 = arith.divf %203, %204 : vector<2x64xf32>
    %206 = vector.extract_strided_slice %187 {offsets = [0, 128], sizes = [2, 64], strides = [1, 1]} : vector<2x192xf32> to vector<2x64xf32>
    %207 = vector.extract_strided_slice %189 {offsets = [0, 128], sizes = [2, 64], strides = [1, 1]} : vector<2x192xf32> to vector<2x64xf32>
    %208 = arith.addf %207, %4 : vector<2x64xf32>
    %209 = arith.mulf %197, %208 : vector<2x64xf32>
    %210 = arith.addf %206, %209 : vector<2x64xf32>
    %211 = math.tanh %210 : vector<2x64xf32>
    %cst_65 = arith.constant 1.000000e+00 : f32
    %212 = vector.broadcast %cst_65 : f32 to vector<2x64xf32>
    %213 = arith.subf %212, %205 : vector<2x64xf32>
    %214 = arith.mulf %213, %211 : vector<2x64xf32>
    %215 = arith.mulf %205, %168 : vector<2x64xf32>
    %216 = arith.addf %214, %215 : vector<2x64xf32>
    %c5_66 = arith.constant 5 : index
    %c0_67 = arith.constant 0 : index
    %c0_68 = arith.constant 0 : index
    %217 = vector.load %arg1[%c5_66, %c0_67, %c0_68] : memref<8x2x192xf32, #tpu.memory_space<vmem>>, vector<1x2x192xf32>
    %218 = vector.shape_cast %217 : vector<1x2x192xf32> to vector<2x192xf32>
    %219 = arith.truncf %175 : vector<2x64xf32> to vector<2x64xbf16>
    %cst_69 = arith.constant dense<0.000000e+00> : vector<2x192xf32>
    %220 = tpu.matmul %219, %1, %cst_69 {dimension_numbers = #tpu.dot_dimension_numbers<[1], [0], [0], [1], [0, 0, 1, 1], [], []>} : vector<2x64xbf16>, vector<64x192xbf16>, vector<2x192xf32> -> vector<2x192xf32>
    %221 = vector.extract_strided_slice %218 {offsets = [0, 0], sizes = [2, 64], strides = [1, 1]} : vector<2x192xf32> to vector<2x64xf32>
    %222 = vector.extract_strided_slice %220 {offsets = [0, 0], sizes = [2, 64], strides = [1, 1]} : vector<2x192xf32> to vector<2x64xf32>
    %223 = arith.addf %221, %222 : vector<2x64xf32>
    %224 = arith.negf %223 : vector<2x64xf32>
    %225 = math.exp %224 : vector<2x64xf32>
    %cst_70 = arith.constant 1.000000e+00 : f32
    %226 = vector.broadcast %cst_70 : f32 to vector<2x64xf32>
    %227 = arith.addf %226, %225 : vector<2x64xf32>
    %228 = arith.divf %226, %227 : vector<2x64xf32>
    %229 = vector.extract_strided_slice %218 {offsets = [0, 64], sizes = [2, 64], strides = [1, 1]} : vector<2x192xf32> to vector<2x64xf32>
    %230 = vector.extract_strided_slice %220 {offsets = [0, 64], sizes = [2, 64], strides = [1, 1]} : vector<2x192xf32> to vector<2x64xf32>
    %231 = arith.addf %229, %230 : vector<2x64xf32>
    %232 = arith.negf %231 : vector<2x64xf32>
    %233 = math.exp %232 : vector<2x64xf32>
    %cst_71 = arith.constant 1.000000e+00 : f32
    %234 = vector.broadcast %cst_71 : f32 to vector<2x64xf32>
    %235 = arith.addf %234, %233 : vector<2x64xf32>
    %236 = arith.divf %234, %235 : vector<2x64xf32>
    %237 = vector.extract_strided_slice %218 {offsets = [0, 128], sizes = [2, 64], strides = [1, 1]} : vector<2x192xf32> to vector<2x64xf32>
    %238 = vector.extract_strided_slice %220 {offsets = [0, 128], sizes = [2, 64], strides = [1, 1]} : vector<2x192xf32> to vector<2x64xf32>
    %239 = arith.addf %238, %7 : vector<2x64xf32>
    %240 = arith.mulf %228, %239 : vector<2x64xf32>
    %241 = arith.addf %237, %240 : vector<2x64xf32>
    %242 = math.tanh %241 : vector<2x64xf32>
    %cst_72 = arith.constant 1.000000e+00 : f32
    %243 = vector.broadcast %cst_72 : f32 to vector<2x64xf32>
    %244 = arith.subf %243, %236 : vector<2x64xf32>
    %245 = arith.mulf %244, %242 : vector<2x64xf32>
    %246 = arith.mulf %236, %175 : vector<2x64xf32>
    %247 = arith.addf %245, %246 : vector<2x64xf32>
    %248 = vector.broadcast %183 : vector<2x1xf32> to vector<2x64xf32>
    %249 = arith.mulf %248, %216 : vector<2x64xf32>
    %cst_73 = arith.constant 1.000000e+00 : f32
    %250 = vector.broadcast %cst_73 : f32 to vector<2x1xf32>
    %251 = arith.subf %250, %183 : vector<2x1xf32>
    %252 = vector.broadcast %251 : vector<2x1xf32> to vector<2x64xf32>
    %253 = arith.mulf %252, %168 : vector<2x64xf32>
    %254 = arith.addf %249, %253 : vector<2x64xf32>
    %255 = vector.broadcast %185 : vector<2x1xf32> to vector<2x64xf32>
    %256 = arith.mulf %255, %247 : vector<2x64xf32>
    %cst_74 = arith.constant 1.000000e+00 : f32
    %257 = vector.broadcast %cst_74 : f32 to vector<2x1xf32>
    %258 = arith.subf %257, %185 : vector<2x1xf32>
    %259 = vector.broadcast %258 : vector<2x1xf32> to vector<2x64xf32>
    %260 = arith.mulf %259, %175 : vector<2x64xf32>
    %261 = arith.addf %256, %260 : vector<2x64xf32>
    %262 = vector.broadcast %183 : vector<2x1xf32> to vector<2x64xf32>
    %263 = arith.mulf %262, %254 : vector<2x64xf32>
    %c4 = arith.constant 4 : index
    %c0_75 = arith.constant 0 : index
    %264 = vector.load %arg9[%c4, %c0_75] : memref<16x64xf32, #tpu.memory_space<vmem>>, vector<2x64xf32>
    tpu.vector_store %arg9[%c4, %c0_75], %263 {strides = array<i32>} : memref<16x64xf32, #tpu.memory_space<vmem>>, vector<2x64xf32>,
    %265 = vector.broadcast %185 : vector<2x1xf32> to vector<2x64xf32>
    %266 = arith.mulf %265, %261 : vector<2x64xf32>
    %c10 = arith.constant 10 : index
    %c0_76 = arith.constant 0 : index
    %267 = vector.load %arg10[%c10, %c0_76] : memref<16x64xf32, #tpu.memory_space<vmem>>, vector<2x64xf32>
    tpu.vector_store %arg10[%c10, %c0_76], %266 {strides = array<i32>} : memref<16x64xf32, #tpu.memory_space<vmem>>, vector<2x64xf32>,
    %c3 = arith.constant 3 : index
    %c0_77 = arith.constant 0 : index
    %c0_78 = arith.constant 0 : index
    %268 = vector.load %arg2[%c3, %c0_77, %c0_78] : memref<8x2x1xf32, #tpu.memory_space<vmem>>, vector<1x2x1xf32>
    %269 = vector.shape_cast %268 : vector<1x2x1xf32> to vector<2x1xf32>
    %c4_79 = arith.constant 4 : index
    %c0_80 = arith.constant 0 : index
    %c0_81 = arith.constant 0 : index
    %270 = vector.load %arg2[%c4_79, %c0_80, %c0_81] : memref<8x2x1xf32, #tpu.memory_space<vmem>>, vector<1x2x1xf32>
    %271 = vector.shape_cast %270 : vector<1x2x1xf32> to vector<2x1xf32>
    %c3_82 = arith.constant 3 : index
    %c0_83 = arith.constant 0 : index
    %c0_84 = arith.constant 0 : index
    %272 = vector.load %arg0[%c3_82, %c0_83, %c0_84] : memref<8x2x192xf32, #tpu.memory_space<vmem>>, vector<1x2x192xf32>
    %273 = vector.shape_cast %272 : vector<1x2x192xf32> to vector<2x192xf32>
    %274 = arith.truncf %254 : vector<2x64xf32> to vector<2x64xbf16>
    %cst_85 = arith.constant dense<0.000000e+00> : vector<2x192xf32>
    %275 = tpu.matmul %274, %0, %cst_85 {dimension_numbers = #tpu.dot_dimension_numbers<[1], [0], [0], [1], [0, 0, 1, 1], [], []>} : vector<2x64xbf16>, vector<64x192xbf16>, vector<2x192xf32> -> vector<2x192xf32>
    %276 = vector.extract_strided_slice %273 {offsets = [0, 0], sizes = [2, 64], strides = [1, 1]} : vector<2x192xf32> to vector<2x64xf32>
    %277 = vector.extract_strided_slice %275 {offsets = [0, 0], sizes = [2, 64], strides = [1, 1]} : vector<2x192xf32> to vector<2x64xf32>
    %278 = arith.addf %276, %277 : vector<2x64xf32>
    %279 = arith.negf %278 : vector<2x64xf32>
    %280 = math.exp %279 : vector<2x64xf32>
    %cst_86 = arith.constant 1.000000e+00 : f32
    %281 = vector.broadcast %cst_86 : f32 to vector<2x64xf32>
    %282 = arith.addf %281, %280 : vector<2x64xf32>
    %283 = arith.divf %281, %282 : vector<2x64xf32>
    %284 = vector.extract_strided_slice %273 {offsets = [0, 64], sizes = [2, 64], strides = [1, 1]} : vector<2x192xf32> to vector<2x64xf32>
    %285 = vector.extract_strided_slice %275 {offsets = [0, 64], sizes = [2, 64], strides = [1, 1]} : vector<2x192xf32> to vector<2x64xf32>
    %286 = arith.addf %284, %285 : vector<2x64xf32>
    %287 = arith.negf %286 : vector<2x64xf32>
    %288 = math.exp %287 : vector<2x64xf32>
    %cst_87 = arith.constant 1.000000e+00 : f32
    %289 = vector.broadcast %cst_87 : f32 to vector<2x64xf32>
    %290 = arith.addf %289, %288 : vector<2x64xf32>
    %291 = arith.divf %289, %290 : vector<2x64xf32>
    %292 = vector.extract_strided_slice %273 {offsets = [0, 128], sizes = [2, 64], strides = [1, 1]} : vector<2x192xf32> to vector<2x64xf32>
    %293 = vector.extract_strided_slice %275 {offsets = [0, 128], sizes = [2, 64], strides = [1, 1]} : vector<2x192xf32> to vector<2x64xf32>
    %294 = arith.addf %293, %4 : vector<2x64xf32>
    %295 = arith.mulf %283, %294 : vector<2x64xf32>
    %296 = arith.addf %292, %295 : vector<2x64xf32>
    %297 = math.tanh %296 : vector<2x64xf32>
    %cst_88 = arith.constant 1.000000e+00 : f32
    %298 = vector.broadcast %cst_88 : f32 to vector<2x64xf32>
    %299 = arith.subf %298, %291 : vector<2x64xf32>
    %300 = arith.mulf %299, %297 : vector<2x64xf32>
    %301 = arith.mulf %291, %254 : vector<2x64xf32>
    %302 = arith.addf %300, %301 : vector<2x64xf32>
    %c4_89 = arith.constant 4 : index
    %c0_90 = arith.constant 0 : index
    %c0_91 = arith.constant 0 : index
    %303 = vector.load %arg1[%c4_89, %c0_90, %c0_91] : memref<8x2x192xf32, #tpu.memory_space<vmem>>, vector<1x2x192xf32>
    %304 = vector.shape_cast %303 : vector<1x2x192xf32> to vector<2x192xf32>
    %305 = arith.truncf %261 : vector<2x64xf32> to vector<2x64xbf16>
    %cst_92 = arith.constant dense<0.000000e+00> : vector<2x192xf32>
    %306 = tpu.matmul %305, %1, %cst_92 {dimension_numbers = #tpu.dot_dimension_numbers<[1], [0], [0], [1], [0, 0, 1, 1], [], []>} : vector<2x64xbf16>, vector<64x192xbf16>, vector<2x192xf32> -> vector<2x192xf32>
    %307 = vector.extract_strided_slice %304 {offsets = [0, 0], sizes = [2, 64], strides = [1, 1]} : vector<2x192xf32> to vector<2x64xf32>
    %308 = vector.extract_strided_slice %306 {offsets = [0, 0], sizes = [2, 64], strides = [1, 1]} : vector<2x192xf32> to vector<2x64xf32>
    %309 = arith.addf %307, %308 : vector<2x64xf32>
    %310 = arith.negf %309 : vector<2x64xf32>
    %311 = math.exp %310 : vector<2x64xf32>
    %cst_93 = arith.constant 1.000000e+00 : f32
    %312 = vector.broadcast %cst_93 : f32 to vector<2x64xf32>
    %313 = arith.addf %312, %311 : vector<2x64xf32>
    %314 = arith.divf %312, %313 : vector<2x64xf32>
    %315 = vector.extract_strided_slice %304 {offsets = [0, 64], sizes = [2, 64], strides = [1, 1]} : vector<2x192xf32> to vector<2x64xf32>
    %316 = vector.extract_strided_slice %306 {offsets = [0, 64], sizes = [2, 64], strides = [1, 1]} : vector<2x192xf32> to vector<2x64xf32>
    %317 = arith.addf %315, %316 : vector<2x64xf32>
    %318 = arith.negf %317 : vector<2x64xf32>
    %319 = math.exp %318 : vector<2x64xf32>
    %cst_94 = arith.constant 1.000000e+00 : f32
    %320 = vector.broadcast %cst_94 : f32 to vector<2x64xf32>
    %321 = arith.addf %320, %319 : vector<2x64xf32>
    %322 = arith.divf %320, %321 : vector<2x64xf32>
    %323 = vector.extract_strided_slice %304 {offsets = [0, 128], sizes = [2, 64], strides = [1, 1]} : vector<2x192xf32> to vector<2x64xf32>
    %324 = vector.extract_strided_slice %306 {offsets = [0, 128], sizes = [2, 64], strides = [1, 1]} : vector<2x192xf32> to vector<2x64xf32>
    %325 = arith.addf %324, %7 : vector<2x64xf32>
    %326 = arith.mulf %314, %325 : vector<2x64xf32>
    %327 = arith.addf %323, %326 : vector<2x64xf32>
    %328 = math.tanh %327 : vector<2x64xf32>
    %cst_95 = arith.constant 1.000000e+00 : f32
    %329 = vector.broadcast %cst_95 : f32 to vector<2x64xf32>
    %330 = arith.subf %329, %322 : vector<2x64xf32>
    %331 = arith.mulf %330, %328 : vector<2x64xf32>
    %332 = arith.mulf %322, %261 : vector<2x64xf32>
    %333 = arith.addf %331, %332 : vector<2x64xf32>
    %334 = vector.broadcast %269 : vector<2x1xf32> to vector<2x64xf32>
    %335 = arith.mulf %334, %302 : vector<2x64xf32>
    %cst_96 = arith.constant 1.000000e+00 : f32
    %336 = vector.broadcast %cst_96 : f32 to vector<2x1xf32>
    %337 = arith.subf %336, %269 : vector<2x1xf32>
    %338 = vector.broadcast %337 : vector<2x1xf32> to vector<2x64xf32>
    %339 = arith.mulf %338, %254 : vector<2x64xf32>
    %340 = arith.addf %335, %339 : vector<2x64xf32>
    %341 = vector.broadcast %271 : vector<2x1xf32> to vector<2x64xf32>
    %342 = arith.mulf %341, %333 : vector<2x64xf32>
    %cst_97 = arith.constant 1.000000e+00 : f32
    %343 = vector.broadcast %cst_97 : f32 to vector<2x1xf32>
    %344 = arith.subf %343, %271 : vector<2x1xf32>
    %345 = vector.broadcast %344 : vector<2x1xf32> to vector<2x64xf32>
    %346 = arith.mulf %345, %261 : vector<2x64xf32>
    %347 = arith.addf %342, %346 : vector<2x64xf32>
    %348 = vector.broadcast %269 : vector<2x1xf32> to vector<2x64xf32>
    %349 = arith.mulf %348, %340 : vector<2x64xf32>
    %c6_98 = arith.constant 6 : index
    %c0_99 = arith.constant 0 : index
    %350 = vector.load %arg9[%c6_98, %c0_99] : memref<16x64xf32, #tpu.memory_space<vmem>>, vector<2x64xf32>
    tpu.vector_store %arg9[%c6_98, %c0_99], %349 {strides = array<i32>} : memref<16x64xf32, #tpu.memory_space<vmem>>, vector<2x64xf32>,
    %351 = vector.broadcast %271 : vector<2x1xf32> to vector<2x64xf32>
    %352 = arith.mulf %351, %347 : vector<2x64xf32>
    %c8 = arith.constant 8 : index
    %c0_100 = arith.constant 0 : index
    %353 = vector.load %arg10[%c8, %c0_100] : memref<16x64xf32, #tpu.memory_space<vmem>>, vector<2x64xf32>
    tpu.vector_store %arg10[%c8, %c0_100], %352 {strides = array<i32>} : memref<16x64xf32, #tpu.memory_space<vmem>>, vector<2x64xf32>,
    %c4_101 = arith.constant 4 : index
    %c0_102 = arith.constant 0 : index
    %c0_103 = arith.constant 0 : index
    %354 = vector.load %arg2[%c4_101, %c0_102, %c0_103] : memref<8x2x1xf32, #tpu.memory_space<vmem>>, vector<1x2x1xf32>
    %355 = vector.shape_cast %354 : vector<1x2x1xf32> to vector<2x1xf32>
    %c3_104 = arith.constant 3 : index
    %c0_105 = arith.constant 0 : index
    %c0_106 = arith.constant 0 : index
    %356 = vector.load %arg2[%c3_104, %c0_105, %c0_106] : memref<8x2x1xf32, #tpu.memory_space<vmem>>, vector<1x2x1xf32>
    %357 = vector.shape_cast %356 : vector<1x2x1xf32> to vector<2x1xf32>
    %c4_107 = arith.constant 4 : index
    %c0_108 = arith.constant 0 : index
    %c0_109 = arith.constant 0 : index
    %358 = vector.load %arg0[%c4_107, %c0_108, %c0_109] : memref<8x2x192xf32, #tpu.memory_space<vmem>>, vector<1x2x192xf32>
    %359 = vector.shape_cast %358 : vector<1x2x192xf32> to vector<2x192xf32>
    %360 = arith.truncf %340 : vector<2x64xf32> to vector<2x64xbf16>
    %cst_110 = arith.constant dense<0.000000e+00> : vector<2x192xf32>
    %361 = tpu.matmul %360, %0, %cst_110 {dimension_numbers = #tpu.dot_dimension_numbers<[1], [0], [0], [1], [0, 0, 1, 1], [], []>} : vector<2x64xbf16>, vector<64x192xbf16>, vector<2x192xf32> -> vector<2x192xf32>
    %362 = vector.extract_strided_slice %359 {offsets = [0, 0], sizes = [2, 64], strides = [1, 1]} : vector<2x192xf32> to vector<2x64xf32>
    %363 = vector.extract_strided_slice %361 {offsets = [0, 0], sizes = [2, 64], strides = [1, 1]} : vector<2x192xf32> to vector<2x64xf32>
    %364 = arith.addf %362, %363 : vector<2x64xf32>
    %365 = arith.negf %364 : vector<2x64xf32>
    %366 = math.exp %365 : vector<2x64xf32>
    %cst_111 = arith.constant 1.000000e+00 : f32
    %367 = vector.broadcast %cst_111 : f32 to vector<2x64xf32>
    %368 = arith.addf %367, %366 : vector<2x64xf32>
    %369 = arith.divf %367, %368 : vector<2x64xf32>
    %370 = vector.extract_strided_slice %359 {offsets = [0, 64], sizes = [2, 64], strides = [1, 1]} : vector<2x192xf32> to vector<2x64xf32>
    %371 = vector.extract_strided_slice %361 {offsets = [0, 64], sizes = [2, 64], strides = [1, 1]} : vector<2x192xf32> to vector<2x64xf32>
    %372 = arith.addf %370, %371 : vector<2x64xf32>
    %373 = arith.negf %372 : vector<2x64xf32>
    %374 = math.exp %373 : vector<2x64xf32>
    %cst_112 = arith.constant 1.000000e+00 : f32
    %375 = vector.broadcast %cst_112 : f32 to vector<2x64xf32>
    %376 = arith.addf %375, %374 : vector<2x64xf32>
    %377 = arith.divf %375, %376 : vector<2x64xf32>
    %378 = vector.extract_strided_slice %359 {offsets = [0, 128], sizes = [2, 64], strides = [1, 1]} : vector<2x192xf32> to vector<2x64xf32>
    %379 = vector.extract_strided_slice %361 {offsets = [0, 128], sizes = [2, 64], strides = [1, 1]} : vector<2x192xf32> to vector<2x64xf32>
    %380 = arith.addf %379, %4 : vector<2x64xf32>
    %381 = arith.mulf %369, %380 : vector<2x64xf32>
    %382 = arith.addf %378, %381 : vector<2x64xf32>
    %383 = math.tanh %382 : vector<2x64xf32>
    %cst_113 = arith.constant 1.000000e+00 : f32
    %384 = vector.broadcast %cst_113 : f32 to vector<2x64xf32>
    %385 = arith.subf %384, %377 : vector<2x64xf32>
    %386 = arith.mulf %385, %383 : vector<2x64xf32>
    %387 = arith.mulf %377, %340 : vector<2x64xf32>
    %388 = arith.addf %386, %387 : vector<2x64xf32>
    %c3_114 = arith.constant 3 : index
    %c0_115 = arith.constant 0 : index
    %c0_116 = arith.constant 0 : index
    %389 = vector.load %arg1[%c3_114, %c0_115, %c0_116] : memref<8x2x192xf32, #tpu.memory_space<vmem>>, vector<1x2x192xf32>
    %390 = vector.shape_cast %389 : vector<1x2x192xf32> to vector<2x192xf32>
    %391 = arith.truncf %347 : vector<2x64xf32> to vector<2x64xbf16>
    %cst_117 = arith.constant dense<0.000000e+00> : vector<2x192xf32>
    %392 = tpu.matmul %391, %1, %cst_117 {dimension_numbers = #tpu.dot_dimension_numbers<[1], [0], [0], [1], [0, 0, 1, 1], [], []>} : vector<2x64xbf16>, vector<64x192xbf16>, vector<2x192xf32> -> vector<2x192xf32>
    %393 = vector.extract_strided_slice %390 {offsets = [0, 0], sizes = [2, 64], strides = [1, 1]} : vector<2x192xf32> to vector<2x64xf32>
    %394 = vector.extract_strided_slice %392 {offsets = [0, 0], sizes = [2, 64], strides = [1, 1]} : vector<2x192xf32> to vector<2x64xf32>
    %395 = arith.addf %393, %394 : vector<2x64xf32>
    %396 = arith.negf %395 : vector<2x64xf32>
    %397 = math.exp %396 : vector<2x64xf32>
    %cst_118 = arith.constant 1.000000e+00 : f32
    %398 = vector.broadcast %cst_118 : f32 to vector<2x64xf32>
    %399 = arith.addf %398, %397 : vector<2x64xf32>
    %400 = arith.divf %398, %399 : vector<2x64xf32>
    %401 = vector.extract_strided_slice %390 {offsets = [0, 64], sizes = [2, 64], strides = [1, 1]} : vector<2x192xf32> to vector<2x64xf32>
    %402 = vector.extract_strided_slice %392 {offsets = [0, 64], sizes = [2, 64], strides = [1, 1]} : vector<2x192xf32> to vector<2x64xf32>
    %403 = arith.addf %401, %402 : vector<2x64xf32>
    %404 = arith.negf %403 : vector<2x64xf32>
    %405 = math.exp %404 : vector<2x64xf32>
    %cst_119 = arith.constant 1.000000e+00 : f32
    %406 = vector.broadcast %cst_119 : f32 to vector<2x64xf32>
    %407 = arith.addf %406, %405 : vector<2x64xf32>
    %408 = arith.divf %406, %407 : vector<2x64xf32>
    %409 = vector.extract_strided_slice %390 {offsets = [0, 128], sizes = [2, 64], strides = [1, 1]} : vector<2x192xf32> to vector<2x64xf32>
    %410 = vector.extract_strided_slice %392 {offsets = [0, 128], sizes = [2, 64], strides = [1, 1]} : vector<2x192xf32> to vector<2x64xf32>
    %411 = arith.addf %410, %7 : vector<2x64xf32>
    %412 = arith.mulf %400, %411 : vector<2x64xf32>
    %413 = arith.addf %409, %412 : vector<2x64xf32>
    %414 = math.tanh %413 : vector<2x64xf32>
    %cst_120 = arith.constant 1.000000e+00 : f32
    %415 = vector.broadcast %cst_120 : f32 to vector<2x64xf32>
    %416 = arith.subf %415, %408 : vector<2x64xf32>
    %417 = arith.mulf %416, %414 : vector<2x64xf32>
    %418 = arith.mulf %408, %347 : vector<2x64xf32>
    %419 = arith.addf %417, %418 : vector<2x64xf32>
    %420 = vector.broadcast %355 : vector<2x1xf32> to vector<2x64xf32>
    %421 = arith.mulf %420, %388 : vector<2x64xf32>
    %cst_121 = arith.constant 1.000000e+00 : f32
    %422 = vector.broadcast %cst_121 : f32 to vector<2x1xf32>
    %423 = arith.subf %422, %355 : vector<2x1xf32>
    %424 = vector.broadcast %423 : vector<2x1xf32> to vector<2x64xf32>
    %425 = arith.mulf %424, %340 : vector<2x64xf32>
    %426 = arith.addf %421, %425 : vector<2x64xf32>
    %427 = vector.broadcast %357 : vector<2x1xf32> to vector<2x64xf32>
    %428 = arith.mulf %427, %419 : vector<2x64xf32>
    %cst_122 = arith.constant 1.000000e+00 : f32
    %429 = vector.broadcast %cst_122 : f32 to vector<2x1xf32>
    %430 = arith.subf %429, %357 : vector<2x1xf32>
    %431 = vector.broadcast %430 : vector<2x1xf32> to vector<2x64xf32>
    %432 = arith.mulf %431, %347 : vector<2x64xf32>
    %433 = arith.addf %428, %432 : vector<2x64xf32>
    %434 = vector.broadcast %355 : vector<2x1xf32> to vector<2x64xf32>
    %435 = arith.mulf %434, %426 : vector<2x64xf32>
    %c8_123 = arith.constant 8 : index
    %c0_124 = arith.constant 0 : index
    %436 = vector.load %arg9[%c8_123, %c0_124] : memref<16x64xf32, #tpu.memory_space<vmem>>, vector<2x64xf32>
    tpu.vector_store %arg9[%c8_123, %c0_124], %435 {strides = array<i32>} : memref<16x64xf32, #tpu.memory_space<vmem>>, vector<2x64xf32>,
    %437 = vector.broadcast %357 : vector<2x1xf32> to vector<2x64xf32>
    %438 = arith.mulf %437, %433 : vector<2x64xf32>
    %c6_125 = arith.constant 6 : index
    %c0_126 = arith.constant 0 : index
    %439 = vector.load %arg10[%c6_125, %c0_126] : memref<16x64xf32, #tpu.memory_space<vmem>>, vector<2x64xf32>
    tpu.vector_store %arg10[%c6_125, %c0_126], %438 {strides = array<i32>} : memref<16x64xf32, #tpu.memory_space<vmem>>, vector<2x64xf32>,
    %c5_127 = arith.constant 5 : index
    %c0_128 = arith.constant 0 : index
    %c0_129 = arith.constant 0 : index
    %440 = vector.load %arg2[%c5_127, %c0_128, %c0_129] : memref<8x2x1xf32, #tpu.memory_space<vmem>>, vector<1x2x1xf32>
    %441 = vector.shape_cast %440 : vector<1x2x1xf32> to vector<2x1xf32>
    %c2_130 = arith.constant 2 : index
    %c0_131 = arith.constant 0 : index
    %c0_132 = arith.constant 0 : index
    %442 = vector.load %arg2[%c2_130, %c0_131, %c0_132] : memref<8x2x1xf32, #tpu.memory_space<vmem>>, vector<1x2x1xf32>
    %443 = vector.shape_cast %442 : vector<1x2x1xf32> to vector<2x1xf32>
    %c5_133 = arith.constant 5 : index
    %c0_134 = arith.constant 0 : index
    %c0_135 = arith.constant 0 : index
    %444 = vector.load %arg0[%c5_133, %c0_134, %c0_135] : memref<8x2x192xf32, #tpu.memory_space<vmem>>, vector<1x2x192xf32>
    %445 = vector.shape_cast %444 : vector<1x2x192xf32> to vector<2x192xf32>
    %446 = arith.truncf %426 : vector<2x64xf32> to vector<2x64xbf16>
    %cst_136 = arith.constant dense<0.000000e+00> : vector<2x192xf32>
    %447 = tpu.matmul %446, %0, %cst_136 {dimension_numbers = #tpu.dot_dimension_numbers<[1], [0], [0], [1], [0, 0, 1, 1], [], []>} : vector<2x64xbf16>, vector<64x192xbf16>, vector<2x192xf32> -> vector<2x192xf32>
    %448 = vector.extract_strided_slice %445 {offsets = [0, 0], sizes = [2, 64], strides = [1, 1]} : vector<2x192xf32> to vector<2x64xf32>
    %449 = vector.extract_strided_slice %447 {offsets = [0, 0], sizes = [2, 64], strides = [1, 1]} : vector<2x192xf32> to vector<2x64xf32>
    %450 = arith.addf %448, %449 : vector<2x64xf32>
    %451 = arith.negf %450 : vector<2x64xf32>
    %452 = math.exp %451 : vector<2x64xf32>
    %cst_137 = arith.constant 1.000000e+00 : f32
    %453 = vector.broadcast %cst_137 : f32 to vector<2x64xf32>
    %454 = arith.addf %453, %452 : vector<2x64xf32>
    %455 = arith.divf %453, %454 : vector<2x64xf32>
    %456 = vector.extract_strided_slice %445 {offsets = [0, 64], sizes = [2, 64], strides = [1, 1]} : vector<2x192xf32> to vector<2x64xf32>
    %457 = vector.extract_strided_slice %447 {offsets = [0, 64], sizes = [2, 64], strides = [1, 1]} : vector<2x192xf32> to vector<2x64xf32>
    %458 = arith.addf %456, %457 : vector<2x64xf32>
    %459 = arith.negf %458 : vector<2x64xf32>
    %460 = math.exp %459 : vector<2x64xf32>
    %cst_138 = arith.constant 1.000000e+00 : f32
    %461 = vector.broadcast %cst_138 : f32 to vector<2x64xf32>
    %462 = arith.addf %461, %460 : vector<2x64xf32>
    %463 = arith.divf %461, %462 : vector<2x64xf32>
    %464 = vector.extract_strided_slice %445 {offsets = [0, 128], sizes = [2, 64], strides = [1, 1]} : vector<2x192xf32> to vector<2x64xf32>
    %465 = vector.extract_strided_slice %447 {offsets = [0, 128], sizes = [2, 64], strides = [1, 1]} : vector<2x192xf32> to vector<2x64xf32>
    %466 = arith.addf %465, %4 : vector<2x64xf32>
    %467 = arith.mulf %455, %466 : vector<2x64xf32>
    %468 = arith.addf %464, %467 : vector<2x64xf32>
    %469 = math.tanh %468 : vector<2x64xf32>
    %cst_139 = arith.constant 1.000000e+00 : f32
    %470 = vector.broadcast %cst_139 : f32 to vector<2x64xf32>
    %471 = arith.subf %470, %463 : vector<2x64xf32>
    %472 = arith.mulf %471, %469 : vector<2x64xf32>
    %473 = arith.mulf %463, %426 : vector<2x64xf32>
    %474 = arith.addf %472, %473 : vector<2x64xf32>
    %c2_140 = arith.constant 2 : index
    %c0_141 = arith.constant 0 : index
    %c0_142 = arith.constant 0 : index
    %475 = vector.load %arg1[%c2_140, %c0_141, %c0_142] : memref<8x2x192xf32, #tpu.memory_space<vmem>>, vector<1x2x192xf32>
    %476 = vector.shape_cast %475 : vector<1x2x192xf32> to vector<2x192xf32>
    %477 = arith.truncf %433 : vector<2x64xf32> to vector<2x64xbf16>
    %cst_143 = arith.constant dense<0.000000e+00> : vector<2x192xf32>
    %478 = tpu.matmul %477, %1, %cst_143 {dimension_numbers = #tpu.dot_dimension_numbers<[1], [0], [0], [1], [0, 0, 1, 1], [], []>} : vector<2x64xbf16>, vector<64x192xbf16>, vector<2x192xf32> -> vector<2x192xf32>
    %479 = vector.extract_strided_slice %476 {offsets = [0, 0], sizes = [2, 64], strides = [1, 1]} : vector<2x192xf32> to vector<2x64xf32>
    %480 = vector.extract_strided_slice %478 {offsets = [0, 0], sizes = [2, 64], strides = [1, 1]} : vector<2x192xf32> to vector<2x64xf32>
    %481 = arith.addf %479, %480 : vector<2x64xf32>
    %482 = arith.negf %481 : vector<2x64xf32>
    %483 = math.exp %482 : vector<2x64xf32>
    %cst_144 = arith.constant 1.000000e+00 : f32
    %484 = vector.broadcast %cst_144 : f32 to vector<2x64xf32>
    %485 = arith.addf %484, %483 : vector<2x64xf32>
    %486 = arith.divf %484, %485 : vector<2x64xf32>
    %487 = vector.extract_strided_slice %476 {offsets = [0, 64], sizes = [2, 64], strides = [1, 1]} : vector<2x192xf32> to vector<2x64xf32>
    %488 = vector.extract_strided_slice %478 {offsets = [0, 64], sizes = [2, 64], strides = [1, 1]} : vector<2x192xf32> to vector<2x64xf32>
    %489 = arith.addf %487, %488 : vector<2x64xf32>
    %490 = arith.negf %489 : vector<2x64xf32>
    %491 = math.exp %490 : vector<2x64xf32>
    %cst_145 = arith.constant 1.000000e+00 : f32
    %492 = vector.broadcast %cst_145 : f32 to vector<2x64xf32>
    %493 = arith.addf %492, %491 : vector<2x64xf32>
    %494 = arith.divf %492, %493 : vector<2x64xf32>
    %495 = vector.extract_strided_slice %476 {offsets = [0, 128], sizes = [2, 64], strides = [1, 1]} : vector<2x192xf32> to vector<2x64xf32>
    %496 = vector.extract_strided_slice %478 {offsets = [0, 128], sizes = [2, 64], strides = [1, 1]} : vector<2x192xf32> to vector<2x64xf32>
    %497 = arith.addf %496, %7 : vector<2x64xf32>
    %498 = arith.mulf %486, %497 : vector<2x64xf32>
    %499 = arith.addf %495, %498 : vector<2x64xf32>
    %500 = math.tanh %499 : vector<2x64xf32>
    %cst_146 = arith.constant 1.000000e+00 : f32
    %501 = vector.broadcast %cst_146 : f32 to vector<2x64xf32>
    %502 = arith.subf %501, %494 : vector<2x64xf32>
    %503 = arith.mulf %502, %500 : vector<2x64xf32>
    %504 = arith.mulf %494, %433 : vector<2x64xf32>
    %505 = arith.addf %503, %504 : vector<2x64xf32>
    %506 = vector.broadcast %441 : vector<2x1xf32> to vector<2x64xf32>
    %507 = arith.mulf %506, %474 : vector<2x64xf32>
    %cst_147 = arith.constant 1.000000e+00 : f32
    %508 = vector.broadcast %cst_147 : f32 to vector<2x1xf32>
    %509 = arith.subf %508, %441 : vector<2x1xf32>
    %510 = vector.broadcast %509 : vector<2x1xf32> to vector<2x64xf32>
    %511 = arith.mulf %510, %426 : vector<2x64xf32>
    %512 = arith.addf %507, %511 : vector<2x64xf32>
    %513 = vector.broadcast %443 : vector<2x1xf32> to vector<2x64xf32>
    %514 = arith.mulf %513, %505 : vector<2x64xf32>
    %cst_148 = arith.constant 1.000000e+00 : f32
    %515 = vector.broadcast %cst_148 : f32 to vector<2x1xf32>
    %516 = arith.subf %515, %443 : vector<2x1xf32>
    %517 = vector.broadcast %516 : vector<2x1xf32> to vector<2x64xf32>
    %518 = arith.mulf %517, %433 : vector<2x64xf32>
    %519 = arith.addf %514, %518 : vector<2x64xf32>
    %520 = vector.broadcast %441 : vector<2x1xf32> to vector<2x64xf32>
    %521 = arith.mulf %520, %512 : vector<2x64xf32>
    %c10_149 = arith.constant 10 : index
    %c0_150 = arith.constant 0 : index
    %522 = vector.load %arg9[%c10_149, %c0_150] : memref<16x64xf32, #tpu.memory_space<vmem>>, vector<2x64xf32>
    tpu.vector_store %arg9[%c10_149, %c0_150], %521 {strides = array<i32>} : memref<16x64xf32, #tpu.memory_space<vmem>>, vector<2x64xf32>,
    %523 = vector.broadcast %443 : vector<2x1xf32> to vector<2x64xf32>
    %524 = arith.mulf %523, %519 : vector<2x64xf32>
    %c4_151 = arith.constant 4 : index
    %c0_152 = arith.constant 0 : index
    %525 = vector.load %arg10[%c4_151, %c0_152] : memref<16x64xf32, #tpu.memory_space<vmem>>, vector<2x64xf32>
    tpu.vector_store %arg10[%c4_151, %c0_152], %524 {strides = array<i32>} : memref<16x64xf32, #tpu.memory_space<vmem>>, vector<2x64xf32>,
    %c6_153 = arith.constant 6 : index
    %c0_154 = arith.constant 0 : index
    %c0_155 = arith.constant 0 : index
    %526 = vector.load %arg2[%c6_153, %c0_154, %c0_155] : memref<8x2x1xf32, #tpu.memory_space<vmem>>, vector<1x2x1xf32>
    %527 = vector.shape_cast %526 : vector<1x2x1xf32> to vector<2x1xf32>
    %c1_156 = arith.constant 1 : index
    %c0_157 = arith.constant 0 : index
    %c0_158 = arith.constant 0 : index
    %528 = vector.load %arg2[%c1_156, %c0_157, %c0_158] : memref<8x2x1xf32, #tpu.memory_space<vmem>>, vector<1x2x1xf32>
    %529 = vector.shape_cast %528 : vector<1x2x1xf32> to vector<2x1xf32>
    %c6_159 = arith.constant 6 : index
    %c0_160 = arith.constant 0 : index
    %c0_161 = arith.constant 0 : index
    %530 = vector.load %arg0[%c6_159, %c0_160, %c0_161] : memref<8x2x192xf32, #tpu.memory_space<vmem>>, vector<1x2x192xf32>
    %531 = vector.shape_cast %530 : vector<1x2x192xf32> to vector<2x192xf32>
    %532 = arith.truncf %512 : vector<2x64xf32> to vector<2x64xbf16>
    %cst_162 = arith.constant dense<0.000000e+00> : vector<2x192xf32>
    %533 = tpu.matmul %532, %0, %cst_162 {dimension_numbers = #tpu.dot_dimension_numbers<[1], [0], [0], [1], [0, 0, 1, 1], [], []>} : vector<2x64xbf16>, vector<64x192xbf16>, vector<2x192xf32> -> vector<2x192xf32>
    %534 = vector.extract_strided_slice %531 {offsets = [0, 0], sizes = [2, 64], strides = [1, 1]} : vector<2x192xf32> to vector<2x64xf32>
    %535 = vector.extract_strided_slice %533 {offsets = [0, 0], sizes = [2, 64], strides = [1, 1]} : vector<2x192xf32> to vector<2x64xf32>
    %536 = arith.addf %534, %535 : vector<2x64xf32>
    %537 = arith.negf %536 : vector<2x64xf32>
    %538 = math.exp %537 : vector<2x64xf32>
    %cst_163 = arith.constant 1.000000e+00 : f32
    %539 = vector.broadcast %cst_163 : f32 to vector<2x64xf32>
    %540 = arith.addf %539, %538 : vector<2x64xf32>
    %541 = arith.divf %539, %540 : vector<2x64xf32>
    %542 = vector.extract_strided_slice %531 {offsets = [0, 64], sizes = [2, 64], strides = [1, 1]} : vector<2x192xf32> to vector<2x64xf32>
    %543 = vector.extract_strided_slice %533 {offsets = [0, 64], sizes = [2, 64], strides = [1, 1]} : vector<2x192xf32> to vector<2x64xf32>
    %544 = arith.addf %542, %543 : vector<2x64xf32>
    %545 = arith.negf %544 : vector<2x64xf32>
    %546 = math.exp %545 : vector<2x64xf32>
    %cst_164 = arith.constant 1.000000e+00 : f32
    %547 = vector.broadcast %cst_164 : f32 to vector<2x64xf32>
    %548 = arith.addf %547, %546 : vector<2x64xf32>
    %549 = arith.divf %547, %548 : vector<2x64xf32>
    %550 = vector.extract_strided_slice %531 {offsets = [0, 128], sizes = [2, 64], strides = [1, 1]} : vector<2x192xf32> to vector<2x64xf32>
    %551 = vector.extract_strided_slice %533 {offsets = [0, 128], sizes = [2, 64], strides = [1, 1]} : vector<2x192xf32> to vector<2x64xf32>
    %552 = arith.addf %551, %4 : vector<2x64xf32>
    %553 = arith.mulf %541, %552 : vector<2x64xf32>
    %554 = arith.addf %550, %553 : vector<2x64xf32>
    %555 = math.tanh %554 : vector<2x64xf32>
    %cst_165 = arith.constant 1.000000e+00 : f32
    %556 = vector.broadcast %cst_165 : f32 to vector<2x64xf32>
    %557 = arith.subf %556, %549 : vector<2x64xf32>
    %558 = arith.mulf %557, %555 : vector<2x64xf32>
    %559 = arith.mulf %549, %512 : vector<2x64xf32>
    %560 = arith.addf %558, %559 : vector<2x64xf32>
    %c1_166 = arith.constant 1 : index
    %c0_167 = arith.constant 0 : index
    %c0_168 = arith.constant 0 : index
    %561 = vector.load %arg1[%c1_166, %c0_167, %c0_168] : memref<8x2x192xf32, #tpu.memory_space<vmem>>, vector<1x2x192xf32>
    %562 = vector.shape_cast %561 : vector<1x2x192xf32> to vector<2x192xf32>
    %563 = arith.truncf %519 : vector<2x64xf32> to vector<2x64xbf16>
    %cst_169 = arith.constant dense<0.000000e+00> : vector<2x192xf32>
    %564 = tpu.matmul %563, %1, %cst_169 {dimension_numbers = #tpu.dot_dimension_numbers<[1], [0], [0], [1], [0, 0, 1, 1], [], []>} : vector<2x64xbf16>, vector<64x192xbf16>, vector<2x192xf32> -> vector<2x192xf32>
    %565 = vector.extract_strided_slice %562 {offsets = [0, 0], sizes = [2, 64], strides = [1, 1]} : vector<2x192xf32> to vector<2x64xf32>
    %566 = vector.extract_strided_slice %564 {offsets = [0, 0], sizes = [2, 64], strides = [1, 1]} : vector<2x192xf32> to vector<2x64xf32>
    %567 = arith.addf %565, %566 : vector<2x64xf32>
    %568 = arith.negf %567 : vector<2x64xf32>
    %569 = math.exp %568 : vector<2x64xf32>
    %cst_170 = arith.constant 1.000000e+00 : f32
    %570 = vector.broadcast %cst_170 : f32 to vector<2x64xf32>
    %571 = arith.addf %570, %569 : vector<2x64xf32>
    %572 = arith.divf %570, %571 : vector<2x64xf32>
    %573 = vector.extract_strided_slice %562 {offsets = [0, 64], sizes = [2, 64], strides = [1, 1]} : vector<2x192xf32> to vector<2x64xf32>
    %574 = vector.extract_strided_slice %564 {offsets = [0, 64], sizes = [2, 64], strides = [1, 1]} : vector<2x192xf32> to vector<2x64xf32>
    %575 = arith.addf %573, %574 : vector<2x64xf32>
    %576 = arith.negf %575 : vector<2x64xf32>
    %577 = math.exp %576 : vector<2x64xf32>
    %cst_171 = arith.constant 1.000000e+00 : f32
    %578 = vector.broadcast %cst_171 : f32 to vector<2x64xf32>
    %579 = arith.addf %578, %577 : vector<2x64xf32>
    %580 = arith.divf %578, %579 : vector<2x64xf32>
    %581 = vector.extract_strided_slice %562 {offsets = [0, 128], sizes = [2, 64], strides = [1, 1]} : vector<2x192xf32> to vector<2x64xf32>
    %582 = vector.extract_strided_slice %564 {offsets = [0, 128], sizes = [2, 64], strides = [1, 1]} : vector<2x192xf32> to vector<2x64xf32>
    %583 = arith.addf %582, %7 : vector<2x64xf32>
    %584 = arith.mulf %572, %583 : vector<2x64xf32>
    %585 = arith.addf %581, %584 : vector<2x64xf32>
    %586 = math.tanh %585 : vector<2x64xf32>
    %cst_172 = arith.constant 1.000000e+00 : f32
    %587 = vector.broadcast %cst_172 : f32 to vector<2x64xf32>
    %588 = arith.subf %587, %580 : vector<2x64xf32>
    %589 = arith.mulf %588, %586 : vector<2x64xf32>
    %590 = arith.mulf %580, %519 : vector<2x64xf32>
    %591 = arith.addf %589, %590 : vector<2x64xf32>
    %592 = vector.broadcast %527 : vector<2x1xf32> to vector<2x64xf32>
    %593 = arith.mulf %592, %560 : vector<2x64xf32>
    %cst_173 = arith.constant 1.000000e+00 : f32
    %594 = vector.broadcast %cst_173 : f32 to vector<2x1xf32>
    %595 = arith.subf %594, %527 : vector<2x1xf32>
    %596 = vector.broadcast %595 : vector<2x1xf32> to vector<2x64xf32>
    %597 = arith.mulf %596, %512 : vector<2x64xf32>
    %598 = arith.addf %593, %597 : vector<2x64xf32>
    %599 = vector.broadcast %529 : vector<2x1xf32> to vector<2x64xf32>
    %600 = arith.mulf %599, %591 : vector<2x64xf32>
    %cst_174 = arith.constant 1.000000e+00 : f32
    %601 = vector.broadcast %cst_174 : f32 to vector<2x1xf32>
    %602 = arith.subf %601, %529 : vector<2x1xf32>
    %603 = vector.broadcast %602 : vector<2x1xf32> to vector<2x64xf32>
    %604 = arith.mulf %603, %519 : vector<2x64xf32>
    %605 = arith.addf %600, %604 : vector<2x64xf32>
    %606 = vector.broadcast %527 : vector<2x1xf32> to vector<2x64xf32>
    %607 = arith.mulf %606, %598 : vector<2x64xf32>
    %c12_175 = arith.constant 12 : index
    %c0_176 = arith.constant 0 : index
    %608 = vector.load %arg9[%c12_175, %c0_176] : memref<16x64xf32, #tpu.memory_space<vmem>>, vector<2x64xf32>
    tpu.vector_store %arg9[%c12_175, %c0_176], %607 {strides = array<i32>} : memref<16x64xf32, #tpu.memory_space<vmem>>, vector<2x64xf32>,
    %609 = vector.broadcast %529 : vector<2x1xf32> to vector<2x64xf32>
    %610 = arith.mulf %609, %605 : vector<2x64xf32>
    %c2_177 = arith.constant 2 : index
    %c0_178 = arith.constant 0 : index
    %611 = vector.load %arg10[%c2_177, %c0_178] : memref<16x64xf32, #tpu.memory_space<vmem>>, vector<2x64xf32>
    tpu.vector_store %arg10[%c2_177, %c0_178], %610 {strides = array<i32>} : memref<16x64xf32, #tpu.memory_space<vmem>>, vector<2x64xf32>,
    %c7_179 = arith.constant 7 : index
    %c0_180 = arith.constant 0 : index
    %c0_181 = arith.constant 0 : index
    %612 = vector.load %arg2[%c7_179, %c0_180, %c0_181] : memref<8x2x1xf32, #tpu.memory_space<vmem>>, vector<1x2x1xf32>
    %613 = vector.shape_cast %612 : vector<1x2x1xf32> to vector<2x1xf32>
    %c0_182 = arith.constant 0 : index
    %c0_183 = arith.constant 0 : index
    %c0_184 = arith.constant 0 : index
    %614 = vector.load %arg2[%c0_182, %c0_183, %c0_184] : memref<8x2x1xf32, #tpu.memory_space<vmem>>, vector<1x2x1xf32>
    %615 = vector.shape_cast %614 : vector<1x2x1xf32> to vector<2x1xf32>
    %c7_185 = arith.constant 7 : index
    %c0_186 = arith.constant 0 : index
    %c0_187 = arith.constant 0 : index
    %616 = vector.load %arg0[%c7_185, %c0_186, %c0_187] : memref<8x2x192xf32, #tpu.memory_space<vmem>>, vector<1x2x192xf32>
    %617 = vector.shape_cast %616 : vector<1x2x192xf32> to vector<2x192xf32>
    %618 = arith.truncf %598 : vector<2x64xf32> to vector<2x64xbf16>
    %cst_188 = arith.constant dense<0.000000e+00> : vector<2x192xf32>
    %619 = tpu.matmul %618, %0, %cst_188 {dimension_numbers = #tpu.dot_dimension_numbers<[1], [0], [0], [1], [0, 0, 1, 1], [], []>} : vector<2x64xbf16>, vector<64x192xbf16>, vector<2x192xf32> -> vector<2x192xf32>
    %620 = vector.extract_strided_slice %617 {offsets = [0, 0], sizes = [2, 64], strides = [1, 1]} : vector<2x192xf32> to vector<2x64xf32>
    %621 = vector.extract_strided_slice %619 {offsets = [0, 0], sizes = [2, 64], strides = [1, 1]} : vector<2x192xf32> to vector<2x64xf32>
    %622 = arith.addf %620, %621 : vector<2x64xf32>
    %623 = arith.negf %622 : vector<2x64xf32>
    %624 = math.exp %623 : vector<2x64xf32>
    %cst_189 = arith.constant 1.000000e+00 : f32
    %625 = vector.broadcast %cst_189 : f32 to vector<2x64xf32>
    %626 = arith.addf %625, %624 : vector<2x64xf32>
    %627 = arith.divf %625, %626 : vector<2x64xf32>
    %628 = vector.extract_strided_slice %617 {offsets = [0, 64], sizes = [2, 64], strides = [1, 1]} : vector<2x192xf32> to vector<2x64xf32>
    %629 = vector.extract_strided_slice %619 {offsets = [0, 64], sizes = [2, 64], strides = [1, 1]} : vector<2x192xf32> to vector<2x64xf32>
    %630 = arith.addf %628, %629 : vector<2x64xf32>
    %631 = arith.negf %630 : vector<2x64xf32>
    %632 = math.exp %631 : vector<2x64xf32>
    %cst_190 = arith.constant 1.000000e+00 : f32
    %633 = vector.broadcast %cst_190 : f32 to vector<2x64xf32>
    %634 = arith.addf %633, %632 : vector<2x64xf32>
    %635 = arith.divf %633, %634 : vector<2x64xf32>
    %636 = vector.extract_strided_slice %617 {offsets = [0, 128], sizes = [2, 64], strides = [1, 1]} : vector<2x192xf32> to vector<2x64xf32>
    %637 = vector.extract_strided_slice %619 {offsets = [0, 128], sizes = [2, 64], strides = [1, 1]} : vector<2x192xf32> to vector<2x64xf32>
    %638 = arith.addf %637, %4 : vector<2x64xf32>
    %639 = arith.mulf %627, %638 : vector<2x64xf32>
    %640 = arith.addf %636, %639 : vector<2x64xf32>
    %641 = math.tanh %640 : vector<2x64xf32>
    %cst_191 = arith.constant 1.000000e+00 : f32
    %642 = vector.broadcast %cst_191 : f32 to vector<2x64xf32>
    %643 = arith.subf %642, %635 : vector<2x64xf32>
    %644 = arith.mulf %643, %641 : vector<2x64xf32>
    %645 = arith.mulf %635, %598 : vector<2x64xf32>
    %646 = arith.addf %644, %645 : vector<2x64xf32>
    %c0_192 = arith.constant 0 : index
    %c0_193 = arith.constant 0 : index
    %c0_194 = arith.constant 0 : index
    %647 = vector.load %arg1[%c0_192, %c0_193, %c0_194] : memref<8x2x192xf32, #tpu.memory_space<vmem>>, vector<1x2x192xf32>
    %648 = vector.shape_cast %647 : vector<1x2x192xf32> to vector<2x192xf32>
    %649 = arith.truncf %605 : vector<2x64xf32> to vector<2x64xbf16>
    %cst_195 = arith.constant dense<0.000000e+00> : vector<2x192xf32>
    %650 = tpu.matmul %649, %1, %cst_195 {dimension_numbers = #tpu.dot_dimension_numbers<[1], [0], [0], [1], [0, 0, 1, 1], [], []>} : vector<2x64xbf16>, vector<64x192xbf16>, vector<2x192xf32> -> vector<2x192xf32>
    %651 = vector.extract_strided_slice %648 {offsets = [0, 0], sizes = [2, 64], strides = [1, 1]} : vector<2x192xf32> to vector<2x64xf32>
    %652 = vector.extract_strided_slice %650 {offsets = [0, 0], sizes = [2, 64], strides = [1, 1]} : vector<2x192xf32> to vector<2x64xf32>
    %653 = arith.addf %651, %652 : vector<2x64xf32>
    %654 = arith.negf %653 : vector<2x64xf32>
    %655 = math.exp %654 : vector<2x64xf32>
    %cst_196 = arith.constant 1.000000e+00 : f32
    %656 = vector.broadcast %cst_196 : f32 to vector<2x64xf32>
    %657 = arith.addf %656, %655 : vector<2x64xf32>
    %658 = arith.divf %656, %657 : vector<2x64xf32>
    %659 = vector.extract_strided_slice %648 {offsets = [0, 64], sizes = [2, 64], strides = [1, 1]} : vector<2x192xf32> to vector<2x64xf32>
    %660 = vector.extract_strided_slice %650 {offsets = [0, 64], sizes = [2, 64], strides = [1, 1]} : vector<2x192xf32> to vector<2x64xf32>
    %661 = arith.addf %659, %660 : vector<2x64xf32>
    %662 = arith.negf %661 : vector<2x64xf32>
    %663 = math.exp %662 : vector<2x64xf32>
    %cst_197 = arith.constant 1.000000e+00 : f32
    %664 = vector.broadcast %cst_197 : f32 to vector<2x64xf32>
    %665 = arith.addf %664, %663 : vector<2x64xf32>
    %666 = arith.divf %664, %665 : vector<2x64xf32>
    %667 = vector.extract_strided_slice %648 {offsets = [0, 128], sizes = [2, 64], strides = [1, 1]} : vector<2x192xf32> to vector<2x64xf32>
    %668 = vector.extract_strided_slice %650 {offsets = [0, 128], sizes = [2, 64], strides = [1, 1]} : vector<2x192xf32> to vector<2x64xf32>
    %669 = arith.addf %668, %7 : vector<2x64xf32>
    %670 = arith.mulf %658, %669 : vector<2x64xf32>
    %671 = arith.addf %667, %670 : vector<2x64xf32>
    %672 = math.tanh %671 : vector<2x64xf32>
    %cst_198 = arith.constant 1.000000e+00 : f32
    %673 = vector.broadcast %cst_198 : f32 to vector<2x64xf32>
    %674 = arith.subf %673, %666 : vector<2x64xf32>
    %675 = arith.mulf %674, %672 : vector<2x64xf32>
    %676 = arith.mulf %666, %605 : vector<2x64xf32>
    %677 = arith.addf %675, %676 : vector<2x64xf32>
    %678 = vector.broadcast %613 : vector<2x1xf32> to vector<2x64xf32>
    %679 = arith.mulf %678, %646 : vector<2x64xf32>
    %cst_199 = arith.constant 1.000000e+00 : f32
    %680 = vector.broadcast %cst_199 : f32 to vector<2x1xf32>
    %681 = arith.subf %680, %613 : vector<2x1xf32>
    %682 = vector.broadcast %681 : vector<2x1xf32> to vector<2x64xf32>
    %683 = arith.mulf %682, %598 : vector<2x64xf32>
    %684 = arith.addf %679, %683 : vector<2x64xf32>
    %685 = vector.broadcast %615 : vector<2x1xf32> to vector<2x64xf32>
    %686 = arith.mulf %685, %677 : vector<2x64xf32>
    %cst_200 = arith.constant 1.000000e+00 : f32
    %687 = vector.broadcast %cst_200 : f32 to vector<2x1xf32>
    %688 = arith.subf %687, %615 : vector<2x1xf32>
    %689 = vector.broadcast %688 : vector<2x1xf32> to vector<2x64xf32>
    %690 = arith.mulf %689, %605 : vector<2x64xf32>
    %691 = arith.addf %686, %690 : vector<2x64xf32>
    %692 = vector.broadcast %613 : vector<2x1xf32> to vector<2x64xf32>
    %693 = arith.mulf %692, %684 : vector<2x64xf32>
    %c14_201 = arith.constant 14 : index
    %c0_202 = arith.constant 0 : index
    %694 = vector.load %arg9[%c14_201, %c0_202] : memref<16x64xf32, #tpu.memory_space<vmem>>, vector<2x64xf32>
    tpu.vector_store %arg9[%c14_201, %c0_202], %693 {strides = array<i32>} : memref<16x64xf32, #tpu.memory_space<vmem>>, vector<2x64xf32>,
    %695 = vector.broadcast %615 : vector<2x1xf32> to vector<2x64xf32>
    %696 = arith.mulf %695, %691 : vector<2x64xf32>
    %c0_203 = arith.constant 0 : index
    %c0_204 = arith.constant 0 : index
    %697 = vector.load %arg10[%c0_203, %c0_204] : memref<16x64xf32, #tpu.memory_space<vmem>>, vector<2x64xf32>
    tpu.vector_store %arg10[%c0_203, %c0_204], %696 {strides = array<i32>} : memref<16x64xf32, #tpu.memory_space<vmem>>, vector<2x64xf32>,
    %c0_205 = arith.constant 0 : index
    %c0_206 = arith.constant 0 : index
    %698 = vector.load %arg9[%c0_205, %c0_206] : memref<16x64xf32, #tpu.memory_space<vmem>>, vector<16x64xf32>
    %c0_207 = arith.constant 0 : index
    %c0_208 = arith.constant 0 : index
    %699 = vector.load %arg10[%c0_207, %c0_208] : memref<16x64xf32, #tpu.memory_space<vmem>>, vector<16x64xf32>
    %700 = tpu.concatenate %698, %699 in 1 : vector<16x64xf32>, vector<16x64xf32> -> vector<16x128xf32>
    %701 = arith.truncf %700 : vector<16x128xf32> to vector<16x128xbf16>
    %c0_209 = arith.constant 0 : index
    %c0_210 = arith.constant 0 : index
    %702 = vector.load %arg7[%c0_209, %c0_210] : memref<16x128xbf16, #tpu.memory_space<vmem>>, vector<16x128xbf16>
    tpu.vector_store %arg7[%c0_209, %c0_210], %701 {strides = array<i32>} : memref<16x128xbf16, #tpu.memory_space<vmem>>, vector<16x128xbf16>,
    %703 = tpu.concatenate %684, %691 in 1 : vector<2x64xf32>, vector<2x64xf32> -> vector<2x128xf32>
    %c0_211 = arith.constant 0 : index
    %c0_212 = arith.constant 0 : index
    %704 = vector.load %arg8[%c0_211, %c0_212] : memref<2x128xf32, #tpu.memory_space<vmem>>, vector<2x128xf32>
    tpu.vector_store %arg8[%c0_211, %c0_212], %703 {strides = array<i32>} : memref<2x128xf32, #tpu.memory_space<vmem>>, vector<2x128xf32>,
    return
  }
}

module attributes {stable_mosaic.version = 11 : i64} {
  func.func @attn_decoder_kernel(%arg0: memref<7x2x384xf32, #tpu.memory_space<vmem>>, %arg1: memref<16x128xbf16, #tpu.memory_space<vmem>>, %arg2: memref<14x16xf32, #tpu.memory_space<vmem>>, %arg3: memref<14x1xi32, #tpu.memory_space<vmem>>, %arg4: memref<2x128xf32, #tpu.memory_space<vmem>>, %arg5: memref<128x384xbf16, #tpu.memory_space<vmem>>, %arg6: memref<1x128xf32, #tpu.memory_space<vmem>>, %arg7: memref<128x128xbf16, #tpu.memory_space<vmem>>, %arg8: memref<128x128xbf16, #tpu.memory_space<vmem>>, %arg9: memref<128x128xbf16, #tpu.memory_space<vmem>>, %arg10: memref<1x128xf32, #tpu.memory_space<vmem>>, %arg11: memref<128x128xbf16, #tpu.memory_space<vmem>>, %arg12: memref<1x128xf32, #tpu.memory_space<vmem>>, %arg13: memref<14x128xbf16, #tpu.memory_space<vmem>>, %arg14: memref<1xf32, #tpu.memory_space<smem>>, %arg15: memref<14x128xf32, #tpu.memory_space<vmem>>) attributes {dimension_semantics = [], scalar_prefetch = 0 : i64, scratch_operands = 1 : i64, tpu.core_type = #tpu.core_type<tc>} {
    %c0 = arith.constant 0 : index
    %c0_0 = arith.constant 0 : index
    %0 = vector.load %arg5[%c0, %c0_0] : memref<128x384xbf16, #tpu.memory_space<vmem>>, vector<128x384xbf16>
    %c0_1 = arith.constant 0 : index
    %c0_2 = arith.constant 0 : index
    %1 = vector.load %arg6[%c0_1, %c0_2] : memref<1x128xf32, #tpu.memory_space<vmem>>, vector<1x128xf32>
    %2 = vector.shape_cast %1 : vector<1x128xf32> to vector<1x128xf32>
    %3 = vector.broadcast %2 : vector<1x128xf32> to vector<2x128xf32>
    %c0_3 = arith.constant 0 : index
    %c0_4 = arith.constant 0 : index
    %4 = vector.load %arg4[%c0_3, %c0_4] : memref<2x128xf32, #tpu.memory_space<vmem>>, vector<2x128xf32>
    %c0_5 = arith.constant 0 : index
    %c0_6 = arith.constant 0 : index
    %c0_7 = arith.constant 0 : index
    %5 = vector.load %arg0[%c0_5, %c0_6, %c0_7] : memref<7x2x384xf32, #tpu.memory_space<vmem>>, vector<1x2x384xf32>
    %6 = vector.shape_cast %5 : vector<1x2x384xf32> to vector<2x384xf32>
    %7 = arith.truncf %4 : vector<2x128xf32> to vector<2x128xbf16>
    %cst = arith.constant dense<0.000000e+00> : vector<2x384xf32>
    %8 = tpu.matmul %7, %0, %cst {dimension_numbers = #tpu.dot_dimension_numbers<[1], [0], [0], [1], [0, 0, 1, 1], [], []>} : vector<2x128xbf16>, vector<128x384xbf16>, vector<2x384xf32> -> vector<2x384xf32>
    %9 = vector.extract_strided_slice %6 {offsets = [0, 0], sizes = [2, 128], strides = [1, 1]} : vector<2x384xf32> to vector<2x128xf32>
    %10 = vector.extract_strided_slice %8 {offsets = [0, 0], sizes = [2, 128], strides = [1, 1]} : vector<2x384xf32> to vector<2x128xf32>
    %11 = arith.addf %9, %10 : vector<2x128xf32>
    %12 = arith.negf %11 : vector<2x128xf32>
    %13 = math.exp %12 : vector<2x128xf32>
    %cst_8 = arith.constant 1.000000e+00 : f32
    %14 = vector.broadcast %cst_8 : f32 to vector<2x128xf32>
    %15 = arith.addf %14, %13 : vector<2x128xf32>
    %16 = arith.divf %14, %15 : vector<2x128xf32>
    %17 = vector.extract_strided_slice %6 {offsets = [0, 128], sizes = [2, 128], strides = [1, 1]} : vector<2x384xf32> to vector<2x128xf32>
    %18 = vector.extract_strided_slice %8 {offsets = [0, 128], sizes = [2, 128], strides = [1, 1]} : vector<2x384xf32> to vector<2x128xf32>
    %19 = arith.addf %17, %18 : vector<2x128xf32>
    %20 = arith.negf %19 : vector<2x128xf32>
    %21 = math.exp %20 : vector<2x128xf32>
    %cst_9 = arith.constant 1.000000e+00 : f32
    %22 = vector.broadcast %cst_9 : f32 to vector<2x128xf32>
    %23 = arith.addf %22, %21 : vector<2x128xf32>
    %24 = arith.divf %22, %23 : vector<2x128xf32>
    %25 = vector.extract_strided_slice %6 {offsets = [0, 256], sizes = [2, 128], strides = [1, 1]} : vector<2x384xf32> to vector<2x128xf32>
    %26 = vector.extract_strided_slice %8 {offsets = [0, 256], sizes = [2, 128], strides = [1, 1]} : vector<2x384xf32> to vector<2x128xf32>
    %27 = arith.addf %26, %3 : vector<2x128xf32>
    %28 = arith.mulf %16, %27 : vector<2x128xf32>
    %29 = arith.addf %25, %28 : vector<2x128xf32>
    %30 = math.tanh %29 : vector<2x128xf32>
    %cst_10 = arith.constant 1.000000e+00 : f32
    %31 = vector.broadcast %cst_10 : f32 to vector<2x128xf32>
    %32 = arith.subf %31, %24 : vector<2x128xf32>
    %33 = arith.mulf %32, %30 : vector<2x128xf32>
    %34 = arith.mulf %24, %4 : vector<2x128xf32>
    %35 = arith.addf %33, %34 : vector<2x128xf32>
    %c0_11 = arith.constant 0 : index
    %c0_12 = arith.constant 0 : index
    %36 = vector.load %arg15[%c0_11, %c0_12] : memref<14x128xf32, #tpu.memory_space<vmem>>, vector<2x128xf32>
    tpu.vector_store %arg15[%c0_11, %c0_12], %35 {strides = array<i32>} : memref<14x128xf32, #tpu.memory_space<vmem>>, vector<2x128xf32>,
    %c1 = arith.constant 1 : index
    %c0_13 = arith.constant 0 : index
    %c0_14 = arith.constant 0 : index
    %37 = vector.load %arg0[%c1, %c0_13, %c0_14] : memref<7x2x384xf32, #tpu.memory_space<vmem>>, vector<1x2x384xf32>
    %38 = vector.shape_cast %37 : vector<1x2x384xf32> to vector<2x384xf32>
    %39 = arith.truncf %35 : vector<2x128xf32> to vector<2x128xbf16>
    %cst_15 = arith.constant dense<0.000000e+00> : vector<2x384xf32>
    %40 = tpu.matmul %39, %0, %cst_15 {dimension_numbers = #tpu.dot_dimension_numbers<[1], [0], [0], [1], [0, 0, 1, 1], [], []>} : vector<2x128xbf16>, vector<128x384xbf16>, vector<2x384xf32> -> vector<2x384xf32>
    %41 = vector.extract_strided_slice %38 {offsets = [0, 0], sizes = [2, 128], strides = [1, 1]} : vector<2x384xf32> to vector<2x128xf32>
    %42 = vector.extract_strided_slice %40 {offsets = [0, 0], sizes = [2, 128], strides = [1, 1]} : vector<2x384xf32> to vector<2x128xf32>
    %43 = arith.addf %41, %42 : vector<2x128xf32>
    %44 = arith.negf %43 : vector<2x128xf32>
    %45 = math.exp %44 : vector<2x128xf32>
    %cst_16 = arith.constant 1.000000e+00 : f32
    %46 = vector.broadcast %cst_16 : f32 to vector<2x128xf32>
    %47 = arith.addf %46, %45 : vector<2x128xf32>
    %48 = arith.divf %46, %47 : vector<2x128xf32>
    %49 = vector.extract_strided_slice %38 {offsets = [0, 128], sizes = [2, 128], strides = [1, 1]} : vector<2x384xf32> to vector<2x128xf32>
    %50 = vector.extract_strided_slice %40 {offsets = [0, 128], sizes = [2, 128], strides = [1, 1]} : vector<2x384xf32> to vector<2x128xf32>
    %51 = arith.addf %49, %50 : vector<2x128xf32>
    %52 = arith.negf %51 : vector<2x128xf32>
    %53 = math.exp %52 : vector<2x128xf32>
    %cst_17 = arith.constant 1.000000e+00 : f32
    %54 = vector.broadcast %cst_17 : f32 to vector<2x128xf32>
    %55 = arith.addf %54, %53 : vector<2x128xf32>
    %56 = arith.divf %54, %55 : vector<2x128xf32>
    %57 = vector.extract_strided_slice %38 {offsets = [0, 256], sizes = [2, 128], strides = [1, 1]} : vector<2x384xf32> to vector<2x128xf32>
    %58 = vector.extract_strided_slice %40 {offsets = [0, 256], sizes = [2, 128], strides = [1, 1]} : vector<2x384xf32> to vector<2x128xf32>
    %59 = arith.addf %58, %3 : vector<2x128xf32>
    %60 = arith.mulf %48, %59 : vector<2x128xf32>
    %61 = arith.addf %57, %60 : vector<2x128xf32>
    %62 = math.tanh %61 : vector<2x128xf32>
    %cst_18 = arith.constant 1.000000e+00 : f32
    %63 = vector.broadcast %cst_18 : f32 to vector<2x128xf32>
    %64 = arith.subf %63, %56 : vector<2x128xf32>
    %65 = arith.mulf %64, %62 : vector<2x128xf32>
    %66 = arith.mulf %56, %35 : vector<2x128xf32>
    %67 = arith.addf %65, %66 : vector<2x128xf32>
    %c2 = arith.constant 2 : index
    %c0_19 = arith.constant 0 : index
    %68 = vector.load %arg15[%c2, %c0_19] : memref<14x128xf32, #tpu.memory_space<vmem>>, vector<2x128xf32>
    tpu.vector_store %arg15[%c2, %c0_19], %67 {strides = array<i32>} : memref<14x128xf32, #tpu.memory_space<vmem>>, vector<2x128xf32>,
    %c2_20 = arith.constant 2 : index
    %c0_21 = arith.constant 0 : index
    %c0_22 = arith.constant 0 : index
    %69 = vector.load %arg0[%c2_20, %c0_21, %c0_22] : memref<7x2x384xf32, #tpu.memory_space<vmem>>, vector<1x2x384xf32>
    %70 = vector.shape_cast %69 : vector<1x2x384xf32> to vector<2x384xf32>
    %71 = arith.truncf %67 : vector<2x128xf32> to vector<2x128xbf16>
    %cst_23 = arith.constant dense<0.000000e+00> : vector<2x384xf32>
    %72 = tpu.matmul %71, %0, %cst_23 {dimension_numbers = #tpu.dot_dimension_numbers<[1], [0], [0], [1], [0, 0, 1, 1], [], []>} : vector<2x128xbf16>, vector<128x384xbf16>, vector<2x384xf32> -> vector<2x384xf32>
    %73 = vector.extract_strided_slice %70 {offsets = [0, 0], sizes = [2, 128], strides = [1, 1]} : vector<2x384xf32> to vector<2x128xf32>
    %74 = vector.extract_strided_slice %72 {offsets = [0, 0], sizes = [2, 128], strides = [1, 1]} : vector<2x384xf32> to vector<2x128xf32>
    %75 = arith.addf %73, %74 : vector<2x128xf32>
    %76 = arith.negf %75 : vector<2x128xf32>
    %77 = math.exp %76 : vector<2x128xf32>
    %cst_24 = arith.constant 1.000000e+00 : f32
    %78 = vector.broadcast %cst_24 : f32 to vector<2x128xf32>
    %79 = arith.addf %78, %77 : vector<2x128xf32>
    %80 = arith.divf %78, %79 : vector<2x128xf32>
    %81 = vector.extract_strided_slice %70 {offsets = [0, 128], sizes = [2, 128], strides = [1, 1]} : vector<2x384xf32> to vector<2x128xf32>
    %82 = vector.extract_strided_slice %72 {offsets = [0, 128], sizes = [2, 128], strides = [1, 1]} : vector<2x384xf32> to vector<2x128xf32>
    %83 = arith.addf %81, %82 : vector<2x128xf32>
    %84 = arith.negf %83 : vector<2x128xf32>
    %85 = math.exp %84 : vector<2x128xf32>
    %cst_25 = arith.constant 1.000000e+00 : f32
    %86 = vector.broadcast %cst_25 : f32 to vector<2x128xf32>
    %87 = arith.addf %86, %85 : vector<2x128xf32>
    %88 = arith.divf %86, %87 : vector<2x128xf32>
    %89 = vector.extract_strided_slice %70 {offsets = [0, 256], sizes = [2, 128], strides = [1, 1]} : vector<2x384xf32> to vector<2x128xf32>
    %90 = vector.extract_strided_slice %72 {offsets = [0, 256], sizes = [2, 128], strides = [1, 1]} : vector<2x384xf32> to vector<2x128xf32>
    %91 = arith.addf %90, %3 : vector<2x128xf32>
    %92 = arith.mulf %80, %91 : vector<2x128xf32>
    %93 = arith.addf %89, %92 : vector<2x128xf32>
    %94 = math.tanh %93 : vector<2x128xf32>
    %cst_26 = arith.constant 1.000000e+00 : f32
    %95 = vector.broadcast %cst_26 : f32 to vector<2x128xf32>
    %96 = arith.subf %95, %88 : vector<2x128xf32>
    %97 = arith.mulf %96, %94 : vector<2x128xf32>
    %98 = arith.mulf %88, %67 : vector<2x128xf32>
    %99 = arith.addf %97, %98 : vector<2x128xf32>
    %c4 = arith.constant 4 : index
    %c0_27 = arith.constant 0 : index
    %100 = vector.load %arg15[%c4, %c0_27] : memref<14x128xf32, #tpu.memory_space<vmem>>, vector<2x128xf32>
    tpu.vector_store %arg15[%c4, %c0_27], %99 {strides = array<i32>} : memref<14x128xf32, #tpu.memory_space<vmem>>, vector<2x128xf32>,
    %c3 = arith.constant 3 : index
    %c0_28 = arith.constant 0 : index
    %c0_29 = arith.constant 0 : index
    %101 = vector.load %arg0[%c3, %c0_28, %c0_29] : memref<7x2x384xf32, #tpu.memory_space<vmem>>, vector<1x2x384xf32>
    %102 = vector.shape_cast %101 : vector<1x2x384xf32> to vector<2x384xf32>
    %103 = arith.truncf %99 : vector<2x128xf32> to vector<2x128xbf16>
    %cst_30 = arith.constant dense<0.000000e+00> : vector<2x384xf32>
    %104 = tpu.matmul %103, %0, %cst_30 {dimension_numbers = #tpu.dot_dimension_numbers<[1], [0], [0], [1], [0, 0, 1, 1], [], []>} : vector<2x128xbf16>, vector<128x384xbf16>, vector<2x384xf32> -> vector<2x384xf32>
    %105 = vector.extract_strided_slice %102 {offsets = [0, 0], sizes = [2, 128], strides = [1, 1]} : vector<2x384xf32> to vector<2x128xf32>
    %106 = vector.extract_strided_slice %104 {offsets = [0, 0], sizes = [2, 128], strides = [1, 1]} : vector<2x384xf32> to vector<2x128xf32>
    %107 = arith.addf %105, %106 : vector<2x128xf32>
    %108 = arith.negf %107 : vector<2x128xf32>
    %109 = math.exp %108 : vector<2x128xf32>
    %cst_31 = arith.constant 1.000000e+00 : f32
    %110 = vector.broadcast %cst_31 : f32 to vector<2x128xf32>
    %111 = arith.addf %110, %109 : vector<2x128xf32>
    %112 = arith.divf %110, %111 : vector<2x128xf32>
    %113 = vector.extract_strided_slice %102 {offsets = [0, 128], sizes = [2, 128], strides = [1, 1]} : vector<2x384xf32> to vector<2x128xf32>
    %114 = vector.extract_strided_slice %104 {offsets = [0, 128], sizes = [2, 128], strides = [1, 1]} : vector<2x384xf32> to vector<2x128xf32>
    %115 = arith.addf %113, %114 : vector<2x128xf32>
    %116 = arith.negf %115 : vector<2x128xf32>
    %117 = math.exp %116 : vector<2x128xf32>
    %cst_32 = arith.constant 1.000000e+00 : f32
    %118 = vector.broadcast %cst_32 : f32 to vector<2x128xf32>
    %119 = arith.addf %118, %117 : vector<2x128xf32>
    %120 = arith.divf %118, %119 : vector<2x128xf32>
    %121 = vector.extract_strided_slice %102 {offsets = [0, 256], sizes = [2, 128], strides = [1, 1]} : vector<2x384xf32> to vector<2x128xf32>
    %122 = vector.extract_strided_slice %104 {offsets = [0, 256], sizes = [2, 128], strides = [1, 1]} : vector<2x384xf32> to vector<2x128xf32>
    %123 = arith.addf %122, %3 : vector<2x128xf32>
    %124 = arith.mulf %112, %123 : vector<2x128xf32>
    %125 = arith.addf %121, %124 : vector<2x128xf32>
    %126 = math.tanh %125 : vector<2x128xf32>
    %cst_33 = arith.constant 1.000000e+00 : f32
    %127 = vector.broadcast %cst_33 : f32 to vector<2x128xf32>
    %128 = arith.subf %127, %120 : vector<2x128xf32>
    %129 = arith.mulf %128, %126 : vector<2x128xf32>
    %130 = arith.mulf %120, %99 : vector<2x128xf32>
    %131 = arith.addf %129, %130 : vector<2x128xf32>
    %c6 = arith.constant 6 : index
    %c0_34 = arith.constant 0 : index
    %132 = vector.load %arg15[%c6, %c0_34] : memref<14x128xf32, #tpu.memory_space<vmem>>, vector<2x128xf32>
    tpu.vector_store %arg15[%c6, %c0_34], %131 {strides = array<i32>} : memref<14x128xf32, #tpu.memory_space<vmem>>, vector<2x128xf32>,
    %c4_35 = arith.constant 4 : index
    %c0_36 = arith.constant 0 : index
    %c0_37 = arith.constant 0 : index
    %133 = vector.load %arg0[%c4_35, %c0_36, %c0_37] : memref<7x2x384xf32, #tpu.memory_space<vmem>>, vector<1x2x384xf32>
    %134 = vector.shape_cast %133 : vector<1x2x384xf32> to vector<2x384xf32>
    %135 = arith.truncf %131 : vector<2x128xf32> to vector<2x128xbf16>
    %cst_38 = arith.constant dense<0.000000e+00> : vector<2x384xf32>
    %136 = tpu.matmul %135, %0, %cst_38 {dimension_numbers = #tpu.dot_dimension_numbers<[1], [0], [0], [1], [0, 0, 1, 1], [], []>} : vector<2x128xbf16>, vector<128x384xbf16>, vector<2x384xf32> -> vector<2x384xf32>
    %137 = vector.extract_strided_slice %134 {offsets = [0, 0], sizes = [2, 128], strides = [1, 1]} : vector<2x384xf32> to vector<2x128xf32>
    %138 = vector.extract_strided_slice %136 {offsets = [0, 0], sizes = [2, 128], strides = [1, 1]} : vector<2x384xf32> to vector<2x128xf32>
    %139 = arith.addf %137, %138 : vector<2x128xf32>
    %140 = arith.negf %139 : vector<2x128xf32>
    %141 = math.exp %140 : vector<2x128xf32>
    %cst_39 = arith.constant 1.000000e+00 : f32
    %142 = vector.broadcast %cst_39 : f32 to vector<2x128xf32>
    %143 = arith.addf %142, %141 : vector<2x128xf32>
    %144 = arith.divf %142, %143 : vector<2x128xf32>
    %145 = vector.extract_strided_slice %134 {offsets = [0, 128], sizes = [2, 128], strides = [1, 1]} : vector<2x384xf32> to vector<2x128xf32>
    %146 = vector.extract_strided_slice %136 {offsets = [0, 128], sizes = [2, 128], strides = [1, 1]} : vector<2x384xf32> to vector<2x128xf32>
    %147 = arith.addf %145, %146 : vector<2x128xf32>
    %148 = arith.negf %147 : vector<2x128xf32>
    %149 = math.exp %148 : vector<2x128xf32>
    %cst_40 = arith.constant 1.000000e+00 : f32
    %150 = vector.broadcast %cst_40 : f32 to vector<2x128xf32>
    %151 = arith.addf %150, %149 : vector<2x128xf32>
    %152 = arith.divf %150, %151 : vector<2x128xf32>
    %153 = vector.extract_strided_slice %134 {offsets = [0, 256], sizes = [2, 128], strides = [1, 1]} : vector<2x384xf32> to vector<2x128xf32>
    %154 = vector.extract_strided_slice %136 {offsets = [0, 256], sizes = [2, 128], strides = [1, 1]} : vector<2x384xf32> to vector<2x128xf32>
    %155 = arith.addf %154, %3 : vector<2x128xf32>
    %156 = arith.mulf %144, %155 : vector<2x128xf32>
    %157 = arith.addf %153, %156 : vector<2x128xf32>
    %158 = math.tanh %157 : vector<2x128xf32>
    %cst_41 = arith.constant 1.000000e+00 : f32
    %159 = vector.broadcast %cst_41 : f32 to vector<2x128xf32>
    %160 = arith.subf %159, %152 : vector<2x128xf32>
    %161 = arith.mulf %160, %158 : vector<2x128xf32>
    %162 = arith.mulf %152, %131 : vector<2x128xf32>
    %163 = arith.addf %161, %162 : vector<2x128xf32>
    %c8 = arith.constant 8 : index
    %c0_42 = arith.constant 0 : index
    %164 = vector.load %arg15[%c8, %c0_42] : memref<14x128xf32, #tpu.memory_space<vmem>>, vector<2x128xf32>
    tpu.vector_store %arg15[%c8, %c0_42], %163 {strides = array<i32>} : memref<14x128xf32, #tpu.memory_space<vmem>>, vector<2x128xf32>,
    %c5 = arith.constant 5 : index
    %c0_43 = arith.constant 0 : index
    %c0_44 = arith.constant 0 : index
    %165 = vector.load %arg0[%c5, %c0_43, %c0_44] : memref<7x2x384xf32, #tpu.memory_space<vmem>>, vector<1x2x384xf32>
    %166 = vector.shape_cast %165 : vector<1x2x384xf32> to vector<2x384xf32>
    %167 = arith.truncf %163 : vector<2x128xf32> to vector<2x128xbf16>
    %cst_45 = arith.constant dense<0.000000e+00> : vector<2x384xf32>
    %168 = tpu.matmul %167, %0, %cst_45 {dimension_numbers = #tpu.dot_dimension_numbers<[1], [0], [0], [1], [0, 0, 1, 1], [], []>} : vector<2x128xbf16>, vector<128x384xbf16>, vector<2x384xf32> -> vector<2x384xf32>
    %169 = vector.extract_strided_slice %166 {offsets = [0, 0], sizes = [2, 128], strides = [1, 1]} : vector<2x384xf32> to vector<2x128xf32>
    %170 = vector.extract_strided_slice %168 {offsets = [0, 0], sizes = [2, 128], strides = [1, 1]} : vector<2x384xf32> to vector<2x128xf32>
    %171 = arith.addf %169, %170 : vector<2x128xf32>
    %172 = arith.negf %171 : vector<2x128xf32>
    %173 = math.exp %172 : vector<2x128xf32>
    %cst_46 = arith.constant 1.000000e+00 : f32
    %174 = vector.broadcast %cst_46 : f32 to vector<2x128xf32>
    %175 = arith.addf %174, %173 : vector<2x128xf32>
    %176 = arith.divf %174, %175 : vector<2x128xf32>
    %177 = vector.extract_strided_slice %166 {offsets = [0, 128], sizes = [2, 128], strides = [1, 1]} : vector<2x384xf32> to vector<2x128xf32>
    %178 = vector.extract_strided_slice %168 {offsets = [0, 128], sizes = [2, 128], strides = [1, 1]} : vector<2x384xf32> to vector<2x128xf32>
    %179 = arith.addf %177, %178 : vector<2x128xf32>
    %180 = arith.negf %179 : vector<2x128xf32>
    %181 = math.exp %180 : vector<2x128xf32>
    %cst_47 = arith.constant 1.000000e+00 : f32
    %182 = vector.broadcast %cst_47 : f32 to vector<2x128xf32>
    %183 = arith.addf %182, %181 : vector<2x128xf32>
    %184 = arith.divf %182, %183 : vector<2x128xf32>
    %185 = vector.extract_strided_slice %166 {offsets = [0, 256], sizes = [2, 128], strides = [1, 1]} : vector<2x384xf32> to vector<2x128xf32>
    %186 = vector.extract_strided_slice %168 {offsets = [0, 256], sizes = [2, 128], strides = [1, 1]} : vector<2x384xf32> to vector<2x128xf32>
    %187 = arith.addf %186, %3 : vector<2x128xf32>
    %188 = arith.mulf %176, %187 : vector<2x128xf32>
    %189 = arith.addf %185, %188 : vector<2x128xf32>
    %190 = math.tanh %189 : vector<2x128xf32>
    %cst_48 = arith.constant 1.000000e+00 : f32
    %191 = vector.broadcast %cst_48 : f32 to vector<2x128xf32>
    %192 = arith.subf %191, %184 : vector<2x128xf32>
    %193 = arith.mulf %192, %190 : vector<2x128xf32>
    %194 = arith.mulf %184, %163 : vector<2x128xf32>
    %195 = arith.addf %193, %194 : vector<2x128xf32>
    %c10 = arith.constant 10 : index
    %c0_49 = arith.constant 0 : index
    %196 = vector.load %arg15[%c10, %c0_49] : memref<14x128xf32, #tpu.memory_space<vmem>>, vector<2x128xf32>
    tpu.vector_store %arg15[%c10, %c0_49], %195 {strides = array<i32>} : memref<14x128xf32, #tpu.memory_space<vmem>>, vector<2x128xf32>,
    %c6_50 = arith.constant 6 : index
    %c0_51 = arith.constant 0 : index
    %c0_52 = arith.constant 0 : index
    %197 = vector.load %arg0[%c6_50, %c0_51, %c0_52] : memref<7x2x384xf32, #tpu.memory_space<vmem>>, vector<1x2x384xf32>
    %198 = vector.shape_cast %197 : vector<1x2x384xf32> to vector<2x384xf32>
    %199 = arith.truncf %195 : vector<2x128xf32> to vector<2x128xbf16>
    %cst_53 = arith.constant dense<0.000000e+00> : vector<2x384xf32>
    %200 = tpu.matmul %199, %0, %cst_53 {dimension_numbers = #tpu.dot_dimension_numbers<[1], [0], [0], [1], [0, 0, 1, 1], [], []>} : vector<2x128xbf16>, vector<128x384xbf16>, vector<2x384xf32> -> vector<2x384xf32>
    %201 = vector.extract_strided_slice %198 {offsets = [0, 0], sizes = [2, 128], strides = [1, 1]} : vector<2x384xf32> to vector<2x128xf32>
    %202 = vector.extract_strided_slice %200 {offsets = [0, 0], sizes = [2, 128], strides = [1, 1]} : vector<2x384xf32> to vector<2x128xf32>
    %203 = arith.addf %201, %202 : vector<2x128xf32>
    %204 = arith.negf %203 : vector<2x128xf32>
    %205 = math.exp %204 : vector<2x128xf32>
    %cst_54 = arith.constant 1.000000e+00 : f32
    %206 = vector.broadcast %cst_54 : f32 to vector<2x128xf32>
    %207 = arith.addf %206, %205 : vector<2x128xf32>
    %208 = arith.divf %206, %207 : vector<2x128xf32>
    %209 = vector.extract_strided_slice %198 {offsets = [0, 128], sizes = [2, 128], strides = [1, 1]} : vector<2x384xf32> to vector<2x128xf32>
    %210 = vector.extract_strided_slice %200 {offsets = [0, 128], sizes = [2, 128], strides = [1, 1]} : vector<2x384xf32> to vector<2x128xf32>
    %211 = arith.addf %209, %210 : vector<2x128xf32>
    %212 = arith.negf %211 : vector<2x128xf32>
    %213 = math.exp %212 : vector<2x128xf32>
    %cst_55 = arith.constant 1.000000e+00 : f32
    %214 = vector.broadcast %cst_55 : f32 to vector<2x128xf32>
    %215 = arith.addf %214, %213 : vector<2x128xf32>
    %216 = arith.divf %214, %215 : vector<2x128xf32>
    %217 = vector.extract_strided_slice %198 {offsets = [0, 256], sizes = [2, 128], strides = [1, 1]} : vector<2x384xf32> to vector<2x128xf32>
    %218 = vector.extract_strided_slice %200 {offsets = [0, 256], sizes = [2, 128], strides = [1, 1]} : vector<2x384xf32> to vector<2x128xf32>
    %219 = arith.addf %218, %3 : vector<2x128xf32>
    %220 = arith.mulf %208, %219 : vector<2x128xf32>
    %221 = arith.addf %217, %220 : vector<2x128xf32>
    %222 = math.tanh %221 : vector<2x128xf32>
    %cst_56 = arith.constant 1.000000e+00 : f32
    %223 = vector.broadcast %cst_56 : f32 to vector<2x128xf32>
    %224 = arith.subf %223, %216 : vector<2x128xf32>
    %225 = arith.mulf %224, %222 : vector<2x128xf32>
    %226 = arith.mulf %216, %195 : vector<2x128xf32>
    %227 = arith.addf %225, %226 : vector<2x128xf32>
    %c12 = arith.constant 12 : index
    %c0_57 = arith.constant 0 : index
    %228 = vector.load %arg15[%c12, %c0_57] : memref<14x128xf32, #tpu.memory_space<vmem>>, vector<2x128xf32>
    tpu.vector_store %arg15[%c12, %c0_57], %227 {strides = array<i32>} : memref<14x128xf32, #tpu.memory_space<vmem>>, vector<2x128xf32>,
    %c0_58 = arith.constant 0 : index
    %c0_59 = arith.constant 0 : index
    %229 = vector.load %arg15[%c0_58, %c0_59] : memref<14x128xf32, #tpu.memory_space<vmem>>, vector<14x128xf32>
    %c0_60 = arith.constant 0 : index
    %c0_61 = arith.constant 0 : index
    %230 = vector.load %arg1[%c0_60, %c0_61] : memref<16x128xbf16, #tpu.memory_space<vmem>>, vector<16x128xbf16>
    %231 = arith.truncf %229 : vector<14x128xf32> to vector<14x128xbf16>
    %c0_62 = arith.constant 0 : index
    %c0_63 = arith.constant 0 : index
    %232 = vector.load %arg7[%c0_62, %c0_63] : memref<128x128xbf16, #tpu.memory_space<vmem>>, vector<128x128xbf16>
    %cst_64 = arith.constant dense<0.000000e+00> : vector<14x128xf32>
    %233 = tpu.matmul %231, %232, %cst_64 {dimension_numbers = #tpu.dot_dimension_numbers<[1], [0], [0], [1], [0, 0, 1, 1], [], []>} : vector<14x128xbf16>, vector<128x128xbf16>, vector<14x128xf32> -> vector<14x128xf32>
    %234 = arith.truncf %233 : vector<14x128xf32> to vector<14x128xbf16>
    %cst_65 = arith.constant dense<0.000000e+00> : vector<14x16xf32>
    %235 = tpu.matmul %234, %230, %cst_65 {dimension_numbers = #tpu.dot_dimension_numbers<[1], [1], [0], [0], [0, 0, 1, 0], [], []>} : vector<14x128xbf16>, vector<16x128xbf16>, vector<14x16xf32> -> vector<14x16xf32>
    %c0_66 = arith.constant 0 : index
    %c0_67 = arith.constant 0 : index
    %236 = vector.load %arg2[%c0_66, %c0_67] : memref<14x16xf32, #tpu.memory_space<vmem>>, vector<14x16xf32>
    %237 = arith.addf %235, %236 : vector<14x16xf32>
    %cst_68 = arith.constant dense<0xFF800000> : vector<14xf32>
    %238 = vector.multi_reduction <maximumf>, %237, %cst_68 [1] : vector<14x16xf32> to vector<14xf32>
    %239 = vector.shape_cast %238 : vector<14xf32> to vector<14x1xf32>
    %240 = vector.broadcast %239 : vector<14x1xf32> to vector<14x16xf32>
    %241 = arith.subf %237, %240 : vector<14x16xf32>
    %242 = math.exp %241 : vector<14x16xf32>
    %cst_69 = arith.constant dense<0.000000e+00> : vector<14xf32>
    %243 = vector.multi_reduction <add>, %242, %cst_69 [1] : vector<14x16xf32> to vector<14xf32>
    %244 = vector.shape_cast %243 : vector<14xf32> to vector<14x1xf32>
    %245 = vector.broadcast %244 : vector<14x1xf32> to vector<14x16xf32>
    %246 = arith.divf %242, %245 : vector<14x16xf32>
    %247 = arith.truncf %246 : vector<14x16xf32> to vector<14x16xbf16>
    %cst_70 = arith.constant dense<0.000000e+00> : vector<14x128xf32>
    %248 = tpu.matmul %247, %230, %cst_70 {dimension_numbers = #tpu.dot_dimension_numbers<[1], [0], [0], [1], [0, 0, 1, 1], [], []>} : vector<14x16xbf16>, vector<16x128xbf16>, vector<14x128xf32> -> vector<14x128xf32>
    %249 = arith.truncf %248 : vector<14x128xf32> to vector<14x128xbf16>
    %c0_71 = arith.constant 0 : index
    %c0_72 = arith.constant 0 : index
    %250 = vector.load %arg8[%c0_71, %c0_72] : memref<128x128xbf16, #tpu.memory_space<vmem>>, vector<128x128xbf16>
    %cst_73 = arith.constant dense<0.000000e+00> : vector<14x128xf32>
    %251 = tpu.matmul %249, %250, %cst_73 {dimension_numbers = #tpu.dot_dimension_numbers<[1], [0], [0], [1], [0, 0, 1, 1], [], []>} : vector<14x128xbf16>, vector<128x128xbf16>, vector<14x128xf32> -> vector<14x128xf32>
    %c0_74 = arith.constant 0 : index
    %c0_75 = arith.constant 0 : index
    %252 = vector.load %arg9[%c0_74, %c0_75] : memref<128x128xbf16, #tpu.memory_space<vmem>>, vector<128x128xbf16>
    %cst_76 = arith.constant dense<0.000000e+00> : vector<14x128xf32>
    %253 = tpu.matmul %231, %252, %cst_76 {dimension_numbers = #tpu.dot_dimension_numbers<[1], [0], [0], [1], [0, 0, 1, 1], [], []>} : vector<14x128xbf16>, vector<128x128xbf16>, vector<14x128xf32> -> vector<14x128xf32>
    %254 = arith.addf %251, %253 : vector<14x128xf32>
    %c0_77 = arith.constant 0 : index
    %c0_78 = arith.constant 0 : index
    %255 = vector.load %arg10[%c0_77, %c0_78] : memref<1x128xf32, #tpu.memory_space<vmem>>, vector<1x128xf32>
    %256 = vector.broadcast %255 : vector<1x128xf32> to vector<14x128xf32>
    %257 = arith.addf %254, %256 : vector<14x128xf32>
    %258 = math.tanh %257 : vector<14x128xf32>
    %259 = arith.truncf %258 : vector<14x128xf32> to vector<14x128xbf16>
    %c0_79 = arith.constant 0 : index
    %c0_80 = arith.constant 0 : index
    %260 = vector.load %arg11[%c0_79, %c0_80] : memref<128x128xbf16, #tpu.memory_space<vmem>>, vector<128x128xbf16>
    %cst_81 = arith.constant dense<0.000000e+00> : vector<14x128xf32>
    %261 = tpu.matmul %259, %260, %cst_81 {dimension_numbers = #tpu.dot_dimension_numbers<[1], [0], [0], [1], [0, 0, 1, 1], [], []>} : vector<14x128xbf16>, vector<128x128xbf16>, vector<14x128xf32> -> vector<14x128xf32>
    %c0_82 = arith.constant 0 : index
    %c0_83 = arith.constant 0 : index
    %262 = vector.load %arg12[%c0_82, %c0_83] : memref<1x128xf32, #tpu.memory_space<vmem>>, vector<1x128xf32>
    %263 = vector.broadcast %262 : vector<1x128xf32> to vector<14x128xf32>
    %264 = arith.addf %261, %263 : vector<14x128xf32>
    %265 = arith.truncf %264 : vector<14x128xf32> to vector<14x128xbf16>
    %c0_84 = arith.constant 0 : index
    %c0_85 = arith.constant 0 : index
    %266 = vector.load %arg13[%c0_84, %c0_85] : memref<14x128xbf16, #tpu.memory_space<vmem>>, vector<14x128xbf16>
    tpu.vector_store %arg13[%c0_84, %c0_85], %265 {strides = array<i32>} : memref<14x128xbf16, #tpu.memory_space<vmem>>, vector<14x128xbf16>,
    %cst_86 = arith.constant dense<0xFF800000> : vector<14xf32>
    %267 = vector.multi_reduction <maximumf>, %264, %cst_86 [1] : vector<14x128xf32> to vector<14xf32>
    %268 = vector.shape_cast %267 : vector<14xf32> to vector<14x1xf32>
    %269 = vector.broadcast %268 : vector<14x1xf32> to vector<14x128xf32>
    %270 = arith.subf %264, %269 : vector<14x128xf32>
    %271 = math.exp %270 : vector<14x128xf32>
    %cst_87 = arith.constant dense<0.000000e+00> : vector<14xf32>
    %272 = vector.multi_reduction <add>, %271, %cst_87 [1] : vector<14x128xf32> to vector<14xf32>
    %273 = vector.shape_cast %272 : vector<14xf32> to vector<14x1xf32>
    %274 = math.log %273 : vector<14x1xf32>
    %275 = arith.addf %268, %274 : vector<14x1xf32>
    %c0_88 = arith.constant 0 : index
    %c0_89 = arith.constant 0 : index
    %276 = vector.load %arg3[%c0_88, %c0_89] : memref<14x1xi32, #tpu.memory_space<vmem>>, vector<14x1xi32>
    %277 = tpu.iota {dimensions = array<i32: 1>} : vector<14x128xi32>
    %278 = vector.broadcast %276 : vector<14x1xi32> to vector<14x128xi32>
    %279 = arith.cmpi eq, %277, %278 : vector<14x128xi32>
    %cst_90 = arith.constant 0.000000e+00 : f32
    %280 = vector.broadcast %cst_90 : f32 to vector<14x128xf32>
    %281 = arith.select %279, %264, %280 : vector<14x128xi1>, vector<14x128xf32>
    %cst_91 = arith.constant dense<0.000000e+00> : vector<14xf32>
    %282 = vector.multi_reduction <add>, %281, %cst_91 [1] : vector<14x128xf32> to vector<14xf32>
    %283 = vector.shape_cast %282 : vector<14xf32> to vector<14x1xf32>
    %c0_i32 = arith.constant 0 : i32
    %284 = vector.broadcast %c0_i32 : i32 to vector<14x1xi32>
    %285 = arith.cmpi ne, %276, %284 : vector<14x1xi32>
    %286 = arith.extui %285 : vector<14x1xi1> to vector<14x1xi32>
    %287 = arith.sitofp %286 : vector<14x1xi32> to vector<14x1xf32>
    %288 = arith.subf %275, %283 : vector<14x1xf32>
    %289 = arith.mulf %288, %287 : vector<14x1xf32>
    %290 = vector.shape_cast %289 : vector<14x1xf32> to vector<1x14x1xf32>
    %cst_92 = arith.constant dense<0.000000e+00> : vector<1xf32>
    %291 = vector.multi_reduction <add>, %290, %cst_92 [1, 2] : vector<1x14x1xf32> to vector<1xf32>
    %292 = vector.shape_cast %291 : vector<1xf32> to vector<1x1x1xf32>
    %293 = vector.extract %292[0, 0, 0] : f32 from vector<1x1x1xf32>
    %294 = vector.shape_cast %287 : vector<14x1xf32> to vector<1x14x1xf32>
    %cst_93 = arith.constant dense<0.000000e+00> : vector<1xf32>
    %295 = vector.multi_reduction <add>, %294, %cst_93 [1, 2] : vector<1x14x1xf32> to vector<1xf32>
    %296 = vector.shape_cast %295 : vector<1xf32> to vector<1x1x1xf32>
    %297 = vector.extract %296[0, 0, 0] : f32 from vector<1x1x1xf32>
    %cst_94 = arith.constant 1.000000e+00 : f32
    %298 = arith.maximumf %297, %cst_94 : f32
    %299 = arith.divf %293, %298 : f32
    %c0_95 = arith.constant 0 : index
    %300 = memref.load %arg14[%c0_95] : memref<1xf32, #tpu.memory_space<smem>>
    memref.store %299, %arg14[%c0_95] : memref<1xf32, #tpu.memory_space<smem>>
    return
  }
}

</mosaic_0001>

<bundles_post_ra>
// kernel: encoder_decoder_forward.3
= control target key start
LH: loop header
LB: loop body
LE: loop exit
PB: predicated region body
PF: predicated region fallthrough
CT: control target
= control target key end

     0   :  { %s2513_s0 = inlined_call_operand.vmem [shape: f32[7,2,384], index: 0, kind: input, shape index: {}]   ;;  %s2514_s1 = inlined_call_operand.vmem [shape: bf16[16,128], index: 1, kind: input, shape index: {}]   ;;  %s2515_s2 = inlined_call_operand.vmem [shape: f32[14,16], index: 2, kind: input, shape index: {}]   ;;  %s2516_s3 = inlined_call_operand.vmem [shape: s32[14,1], index: 3, kind: input, shape index: {}]   ;;  %s2517_s4 = inlined_call_operand.vmem [shape: f32[2,128], index: 4, kind: input, shape index: {}]   ;;  %s2518_s5 = inlined_call_operand.vmem [shape: bf16[128,384], index: 5, kind: input, shape index: {}]   ;;  %s2519_s6 = inlined_call_operand.vmem [shape: f32[1,128], index: 6, kind: input, shape index: {}]   ;;  %s2520_s7 = inlined_call_operand.vmem [shape: bf16[128,128], index: 7, kind: input, shape index: {}]   ;;  %s2521_s8 = inlined_call_operand.vmem [shape: bf16[128,128], index: 8, kind: input, shape index: {}]   ;;  %s2522_s9 = inlined_call_operand.vmem [shape: bf16[128,128], index: 9, kind: input, shape index: {}]   ;;  %s2523_s10 = inlined_call_operand.vmem [shape: f32[1,128], index: 10, kind: input, shape index: {}]   ;;  %s2524_s11 = inlined_call_operand.vmem [shape: bf16[128,128], index: 11, kind: input, shape index: {}]   ;;  %s2525_s12 = inlined_call_operand.vmem [shape: f32[1,128], index: 12, kind: input, shape index: {}]   ;;  %s2526_s13 = inlined_call_operand.vmem [shape: bf16[14,128], index: 13, kind: output, shape index: {0}]   ;;  %s2527_s14 = inlined_call_operand.hbm [shape: f32[1], index: 14, kind: output, shape index: {1}]  }
   0x1   :  { %v1513_v0 = vld [vmem:[%s2518_s5 + $0xa8] sm:$0xf]  ;;  %v1700_v1 = vld [vmem:[%s2518_s5 + $0xb0] sm:$0xf0]  ;;  %v1699_v2 = vld [vmem:[%s2518_s5 + $0xac] sm:$0xf] }
   0x2   :  { %v1944_v3 = vor.u32 %v1700_v1, %v1513_v0  ;;  %v1515_v4 = vld [vmem:[%s2518_s5 + $0xb4] sm:$0xf0]  ;;  %v1501_v5 = vld [vmem:[%s2518_s5 + $0x90] sm:$0xf]  ;;  %v1697_v6 = vld [vmem:[%s2518_s5 + $0x98] sm:$0xf0] }
   0x3   :  { %v1955_v7 = vor.u32 %v1699_v2, %v1515_v4  ;;  %v1696_v8 = vld [vmem:[%s2518_s5 + $0x94] sm:$0xf]  ;;  %v1503_v9 = vld [vmem:[%s2518_s5 + $0x9c] sm:$0xf0]  ;;  %v1964_v10 = vor.u32 %v1697_v6, %v1501_v5  ;;  %v1489_v12 = vld [vmem:[%s2518_s5 + $0x78] sm:$0xf] }
   0x4   :  { %215 = vmatpush.bf16.msra.mxu0 %v1944_v3  ;;  %311 = vmatpush.bf16.msra.mxu3 %v1944_v3  ;;  %v1968_v11 = vor.u32 %v1696_v8, %v1503_v9  ;;  %v1694_v13 = vld [vmem:[%s2518_s5 + $0x80] sm:$0xf0]  ;;  %v1693_v14 = vld [vmem:[%s2518_s5 + $0x7c] sm:$0xf]  ;;  %v1491_v15 = vld [vmem:[%s2518_s5 + $0x84] sm:$0xf0] }
   0x5   :  { %228 = vmatpush.bf16.msra.mxu1 %v1955_v7  ;;  %v1521_v16 = vld [vmem:[%s2518_s5 + $0xb0] sm:$0xf]  ;;  %v1701_v17 = vld [vmem:[%s2518_s5 + $0xb8] sm:$0xf0]  ;;  %v1991_v19 = vor.u32 %v1694_v13, %v1489_v12  ;;  %v1509_v20 = vld [vmem:[%s2518_s5 + $0x98] sm:$0xf]  ;;  %v2001_v22 = vor.u32 %v1693_v14, %v1491_v15 }
   0x6   :  { %v1988_v18 = vor.u32 %v1701_v17, %v1521_v16  ;;  %v1698_v21 = vld [vmem:[%s2518_s5 + $0xa0] sm:$0xf0]  ;;  %v1477_v23 = vld [vmem:[%s2518_s5 + $0x60] sm:$0xf]  ;;  %v1691_v24 = vld [vmem:[%s2518_s5 + $0x68] sm:$0xf0] }
   0x7   :  { %v1690_v25 = vld [vmem:[%s2518_s5 + $0x64] sm:$0xf]  ;;  %v2013_v26 = vor.u32 %v1698_v21, %v1509_v20  ;;  %v1479_v27 = vld [vmem:[%s2518_s5 + $0x6c] sm:$0xf0]  ;;  %v1497_v28 = vld [vmem:[%s2518_s5 + $0x80] sm:$0xf]  ;;  %v2025_v30 = vor.u32 %v1691_v24, %v1477_v23 }
   0x8   :  { %216 = vmatpush.bf16.msra.mxu0 %v1964_v10  ;;  %312 = vmatpush.bf16.msra.mxu3 %v1964_v10  ;;  %v1695_v29 = vld [vmem:[%s2518_s5 + $0x88] sm:$0xf0]  ;;  %v2029_v31 = vor.u32 %v1690_v25, %v1479_v27  ;;  %v1465_v32 = vld [vmem:[%s2518_s5 + $0x48] sm:$0xf]  ;;  %v1688_v33 = vld [vmem:[%s2518_s5 + $0x50] sm:$0xf0] }
   0x9   :  { %229 = vmatpush.bf16.msra.mxu1 %v1968_v11  ;;  %241 = vmatpush.bf16.msra.mxu2 %v1988_v18  ;;  %v1687_v34 = vld [vmem:[%s2518_s5 + $0x4c] sm:$0xf]  ;;  %v2041_v35 = vor.u32 %v1695_v29, %v1497_v28  ;;  %v1467_v36 = vld [vmem:[%s2518_s5 + $0x54] sm:$0xf0]  ;;  %v1485_v37 = vld [vmem:[%s2518_s5 + $0x68] sm:$0xf]  ;;  %v2056_v40 = vor.u32 %v1688_v33, %v1465_v32 }
   0xa   :  { %v1692_v38 = vld [vmem:[%s2518_s5 + $0x70] sm:$0xf0]  ;;  %v1453_v39 = vld [vmem:[%s2518_s5 + $0x30] sm:$0xf]  ;;  %v1685_v41 = vld [vmem:[%s2518_s5 + $0x38] sm:$0xf0]  ;;  %v2069_v44 = vor.u32 %v1687_v34, %v1467_v36 }
   0xb   :  { %v1684_v42 = vld [vmem:[%s2518_s5 + $0x34] sm:$0xf]  ;;  %v1455_v43 = vld [vmem:[%s2518_s5 + $0x3c] sm:$0xf0]  ;;  %v2072_v45 = vor.u32 %v1692_v38, %v1485_v37  ;;  %v1473_v46 = vld [vmem:[%s2518_s5 + $0x50] sm:$0xf] }
   0xc   :  { %217 = vmatpush.bf16.msra.mxu0 %v1991_v19  ;;  %313 = vmatpush.bf16.msra.mxu3 %v1991_v19  ;;  %v1689_v47 = vld [vmem:[%s2518_s5 + $0x58] sm:$0xf0] }
   0xd   :  { %230 = vmatpush.bf16.msra.mxu1 %v2001_v22  ;;  %242 = vmatpush.bf16.msra.mxu2 %v2013_v26 }
  0x10   :  { %218 = vmatpush.bf16.msra.mxu0 %v2025_v30  ;;  %314 = vmatpush.bf16.msra.mxu3 %v2025_v30 }
  0x11   :  { %231 = vmatpush.bf16.msra.mxu1 %v2029_v31  ;;  %243 = vmatpush.bf16.msra.mxu2 %v2041_v35 }
  0x12   :  { %20 = vsyncpa [#allocation4], 0  ;;  %v2081_v48 = vor.u32 %v1685_v41, %v1453_v39  ;;  %v2085_v49 = vor.u32 %v1684_v42, %v1455_v43  ;;  %v1441_v50 = vld [vmem:[%s2518_s5 + $0x18] sm:$0xf]  ;;  %v1682_v51 = vld [vmem:[%s2518_s5 + $0x20] sm:$0xf0]  ;;  %v2097_v53 = vor.u32 %v1689_v47, %v1473_v46 }
  0x13   :  { %v1681_v52 = vld [vmem:[%s2518_s5 + $0x1c] sm:$0xf]  ;;  %v1443_v54 = vld [vmem:[%s2518_s5 + $0x24] sm:$0xf0]  ;;  %v1461_v55 = vld [vmem:[%s2518_s5 + $0x38] sm:$0xf]  ;;  %v2109_v57 = vor.u32 %v1682_v51, %v1441_v50 }
  0x14   :  { %219 = vmatpush.bf16.msra.mxu0 %v2056_v40  ;;  %315 = vmatpush.bf16.msra.mxu3 %v2056_v40  ;;  %v1686_v56 = vld [vmem:[%s2518_s5 + $0x40] sm:$0xf0]  ;;  %v2113_v58 = vor.u32 %v1681_v52, %v1443_v54  ;;  %v1429_v59 = vld [vmem:[%s2518_s5] sm:$0xf]  ;;  %v1679_v60 = vld [vmem:[%s2518_s5 + $0x8] sm:$0xf0] }
  0x15   :  { %232 = vmatpush.bf16.msra.mxu1 %v2069_v44  ;;  %244 = vmatpush.bf16.msra.mxu2 %v2072_v45  ;;  %v1678_v61 = vld [vmem:[%s2518_s5 + $0x4] sm:$0xf]  ;;  %v2125_v62 = vor.u32 %v1686_v56, %v1461_v55  ;;  %v1431_v63 = vld [vmem:[%s2518_s5 + $0xc] sm:$0xf0]  ;;  %v1449_v0 = vld [vmem:[%s2518_s5 + $0x20] sm:$0xf]  ;;  %v2137_v2 = vor.u32 %v1679_v60, %v1429_v59 }
  0x16   :  { %v1683_v1 = vld [vmem:[%s2518_s5 + $0x28] sm:$0xf0]  ;;  %v2142_v4 = vld [vmem:[%s2517_s4] sm:$0x3]  ;;  %v2146_v5 = vor.u32 %v1678_v61, %v1431_v63  ;;  %v1437_v8 = vld [vmem:[%s2518_s5 + $0x8] sm:$0xf] }
  0x17   :  { %v2149_v6 = vor.u32 %v1683_v1, %v1449_v0  ;;  %v1680_v9 = vld [vmem:[%s2518_s5 + $0x10] sm:$0xf0]  ;;  %v86_v12 = vpack.c.bf16 %v2142_v4, %v2142_v4  ;;  %v85_v14 = vld [vmem:[%s2513_s0] sm:$0x3f]  ;;  %s1415_s20 = sshll.u32 %s2527_s14, 4  ;;  %s1859_s22 = smov [#allocation3]   ;;  %s1416_s20 = int_to_ptr.hbm [resolvable:$true] %s1415_s20 }
  0x18   :  { %220 = vmatpush.bf16.msra.mxu0 %v2081_v48  ;;  %316 = vmatpush.bf16.msra.mxu3 %v2081_v48  ;;  %v2163_v13 = vor.u32 %v1680_v9, %v1437_v8  ;;  %v275_v15 = vrot.slane %v85_v14, 2  ;;  %v2228_v42 = vld [vmem:[%s2519_s6] ss:$0 sm:$0xff]  ;;  %v299_v59 = vrot.slane %v85_v14, 4  ;;  %s1858_s6 = smov 1.0  }
  0x19   :  { %233 = vmatpush.bf16.msra.mxu1 %v2085_v49  ;;  %245 = vmatpush.bf16.msra.mxu2 %v2097_v53 }
  0x1c   :  { %221 = vmatpush.bf16.msra.mxu0 %v2109_v57  ;;  %317 = vmatpush.bf16.msra.mxu3 %v2109_v57 }
  0x1d   :  { %234 = vmatpush.bf16.msra.mxu1 %v2113_v58  ;;  %246 = vmatpush.bf16.msra.mxu2 %v2125_v62 }
  0x20   :  { %222 = vmatpush.bf16.msra.mxu0 %v2137_v2  ;;  %318 = vmatpush.bf16.msra.mxu3 %v2137_v2 }
  0x21   :  { %235 = vmatpush.bf16.msra.mxu1 %v2146_v5  ;;  %247 = vmatpush.bf16.msra.mxu2 %v2149_v6 }
  0x23   :  { %223 = vmatmul.bf16.vlgmr.msra.gmra.mxu0 %v86_v12 }
  0x24   :  { %324 = vmatpush.bf16.msrb.mxu0 %v1955_v7  ;;  %420 = vmatpush.bf16.msrb.mxu3 %v1955_v7 }
  0x25   :  { %337 = vmatpush.bf16.msrb.mxu1 %v1988_v18  ;;  %248 = vmatpush.bf16.msra.mxu2 %v2163_v13 }
  0x26   :  { %236 = vmatmul.bf16.vlgmr.msra.gmra.mxu1 %v86_v12 }
  0x28   :  { %325 = vmatpush.bf16.msrb.mxu0 %v1968_v11  ;;  %421 = vmatpush.bf16.msrb.mxu3 %v1968_v11 }
  0x29   :  { %338 = vmatpush.bf16.msrb.mxu1 %v2013_v26  ;;  %407 = vmatpush.bf16.msrb.mxu2 %v1944_v3 }
  0x2a   :  { %249 = vmatmul.bf16.vlgmr.msra.gmra.mxu2 %v86_v12 }
  0x2c   :  { %326 = vmatpush.bf16.msrb.mxu0 %v2001_v22  ;;  %422 = vmatpush.bf16.msrb.mxu3 %v2001_v22 }
  0x2d   :  { %339 = vmatpush.bf16.msrb.mxu1 %v2041_v35  ;;  %408 = vmatpush.bf16.msrb.mxu2 %v1964_v10 }
  0x30   :  { %327 = vmatpush.bf16.msrb.mxu0 %v2029_v31  ;;  %423 = vmatpush.bf16.msrb.mxu3 %v2029_v31 }
  0x31   :  { %340 = vmatpush.bf16.msrb.mxu1 %v2072_v45  ;;  %409 = vmatpush.bf16.msrb.mxu2 %v1991_v19 }
  0x34   :  { %328 = vmatpush.bf16.msrb.mxu0 %v2069_v44  ;;  %424 = vmatpush.bf16.msrb.mxu3 %v2069_v44 }
  0x35   :  { %341 = vmatpush.bf16.msrb.mxu1 %v2097_v53  ;;  %410 = vmatpush.bf16.msrb.mxu2 %v2025_v30 }
  0x38   :  { %329 = vmatpush.bf16.msrb.mxu0 %v2085_v49  ;;  %425 = vmatpush.bf16.msrb.mxu3 %v2085_v49 }
  0x39   :  { %342 = vmatpush.bf16.msrb.mxu1 %v2125_v62  ;;  %411 = vmatpush.bf16.msrb.mxu2 %v2056_v40 }
  0x3c   :  { %330 = vmatpush.bf16.msrb.mxu0 %v2113_v58  ;;  %426 = vmatpush.bf16.msrb.mxu3 %v2113_v58 }
  0x3d   :  { %343 = vmatpush.bf16.msrb.mxu1 %v2149_v6  ;;  %412 = vmatpush.bf16.msrb.mxu2 %v2081_v48 }
  0x40   :  { %331 = vmatpush.bf16.msrb.mxu0 %v2146_v5  ;;  %427 = vmatpush.bf16.msrb.mxu3 %v2146_v5 }
  0x41   :  { %344 = vmatpush.bf16.msrb.mxu1 %v2163_v13  ;;  %413 = vmatpush.bf16.msrb.mxu2 %v2109_v57 }
  0x44   :  { %433 = vmatpush.bf16.msra.mxu0 %v1988_v18 }
  0x45   :  { %503 = vmatpush.bf16.msra.mxu1 %v1944_v3  ;;  %414 = vmatpush.bf16.msrb.mxu2 %v2137_v2 }
  0x48   :  { %434 = vmatpush.bf16.msra.mxu0 %v2013_v26 }
  0x49   :  { %516 = vmatpush.bf16.msra.mxu2 %v1955_v7  ;;  %504 = vmatpush.bf16.msra.mxu1 %v1964_v10 }
  0x4c   :  { %435 = vmatpush.bf16.msra.mxu0 %v2041_v35 }
  0x4d   :  { %517 = vmatpush.bf16.msra.mxu2 %v1968_v11  ;;  %505 = vmatpush.bf16.msra.mxu1 %v1991_v19 }
  0x50   :  { %436 = vmatpush.bf16.msra.mxu0 %v2072_v45 }
  0x51   :  { %518 = vmatpush.bf16.msra.mxu2 %v2001_v22  ;;  %506 = vmatpush.bf16.msra.mxu1 %v2025_v30 }
  0x54   :  { %437 = vmatpush.bf16.msra.mxu0 %v2097_v53 }
  0x55   :  { %519 = vmatpush.bf16.msra.mxu2 %v2029_v31  ;;  %507 = vmatpush.bf16.msra.mxu1 %v2056_v40 }
  0x58   :  { %438 = vmatpush.bf16.msra.mxu0 %v2125_v62 }
  0x59   :  { %520 = vmatpush.bf16.msra.mxu2 %v2069_v44  ;;  %508 = vmatpush.bf16.msra.mxu1 %v2081_v48 }
  0x5c   :  { %439 = vmatpush.bf16.msra.mxu0 %v2149_v6 }
  0x5d   :  { %521 = vmatpush.bf16.msra.mxu2 %v2085_v49  ;;  %509 = vmatpush.bf16.msra.mxu1 %v2109_v57 }
  0x60   :  { %440 = vmatpush.bf16.msra.mxu0 %v2163_v13 }
  0x61   :  { %522 = vmatpush.bf16.msra.mxu2 %v2113_v58  ;;  %510 = vmatpush.bf16.msra.mxu1 %v2137_v2 }
  0x65   :  { %523 = vmatpush.bf16.msra.mxu2 %v2146_v5 }
  0xa0   :  { %v224_v16 = vpop.f32.mrf.mxu0 }
  0xa1   :  { %v254_v17 = vadd.f32 %v224_v16, %v85_v14 }
  0xa3   :  { %v237_v20 = vpop.f32.mrf.mxu1  ;;  %v1523_v23 = vmul.f32 -1.442695, %v254_v17 }
  0xa4   :  { %v277_v21 = vadd.f32 %v275_v15, %v237_v20 }
  0xa5   :  { %1750 = vpow2.f32 %v1523_v23 }
  0xa6   :  { %v1524_v24 = vmul.f32 -1.442695, %v277_v21 }
  0xa8   :  { %1752 = vpow2.f32 %v1524_v24  ;;  %v226_v25 = vpop.f32.mrf.mxu0 }
  0xab   :  { %v239_v27 = vpop.f32.mrf.mxu1  ;;  %v1751_v28 = vpop.eup %1750 }
  0xac   :  { %v258_v33 = vadd.f32 1.0, %v1751_v28 }
  0xad   :  { %v250_v29 = vpop.f32.mrf.mxu2 }
  0xae   :  { %v1753_v32 = vpop.eup %1752  ;;  %1754 = vrcp.f32 %v258_v33  ;;  %v270_v47 = vand.u32 2147483648, %v258_v33  ;;  %v268_v51 = vand.u32 2147483647, %v258_v33  ;;  %vm264_vm1 = vweird.f32 %v258_v33 }
  0xaf   :  { %v281_v34 = vadd.f32 1.0, %v1753_v32  ;;  %v297_v55 = vadd.f32 %v2228_v42, %v250_v29 }
  0xb0   :  { %v271_v56 = vor.u32 1.1754944e-38, %v270_v47  ;;  %vm269_vm3 = vcmp.eq.f32.partialorder %v268_v51, 8.507059e+37 }
  0xb1   :  { %1756 = vrcp.f32 %v281_v34  ;;  %vm287_vm4 = vweird.f32 %v281_v34  ;;  %v293_v0 = vand.u32 2147483648, %v281_v34  ;;  %v291_v8 = vand.u32 2147483647, %v281_v34 }
  0xb3   :  { %v294_v15 = vor.u32 1.1754944e-38, %v293_v0  ;;  %vm292_vm7 = vcmp.eq.f32.partialorder %v291_v8, 8.507059e+37 }
  0xb4   :  { %v1755_v37 = vpop.eup %1754 }
  0xb5   :  { %v252_v36 = vpop.f32.mrf.mxu2  ;;  %v260_v39 = vmul.f32 %v1755_v37, %v258_v33  ;;  %vm265_vm0 = vweird.f32 %v1755_v37 }
  0xb6   :  { %vm266_vm2 = vmor %vm264_vm1, %vm265_vm0 }
  0xb7   :  { %v1757_v38 = vpop.eup %1756  ;;  %v261_v43 = vsub.f32 1.0, %v260_v39 }
  0xb8   :  { %v283_v41 = vmul.f32 %v1757_v38, %v281_v34  ;;  %vm288_vm5 = vweird.f32 %v1757_v38 }
  0xb9   :  { %v262_v50 = vmul.f32 %v1755_v37, %v261_v43  ;;  %vm289_vm6 = vmor %vm287_vm4, %vm288_vm5 }
  0xba   :  { %v284_v46 = vsub.f32 1.0, %v283_v41 }
  0xbb   :  { %v263_v54 = vadd.f32 %v1755_v37, %v262_v50 }
  0xbc   :  { %v285_v52 = vmul.f32 %v1757_v38, %v284_v46 }
  0xbd   :  { %v267_v60 = vsel %vm266_vm2, %v1755_v37, %v263_v54 }
  0xbe   :  { %v272_v61 = vsel %vm269_vm3, %v271_v56, %v267_v60  ;;  %v286_v63 = vadd.f32 %v1757_v38, %v285_v52 }
  0xbf   :  { %v298_v1 = vmul.f32 %v297_v55, %v272_v61 }
  0xc0   :  { %v290_v12 = vsel %vm289_vm6, %v1757_v38, %v286_v63 }
  0xc1   :  { %v301_v9 = vadd.f32 %v299_v59, %v298_v1  ;;  %v295_v16 = vsel %vm292_vm7, %v294_v15, %v290_v12 }
  0xc2   :  { %v303_v17 = vsub.f32 1.0, %v295_v16  ;;  %v305_v14 = vmul.f32 %v295_v16, %v2142_v4  ;;  %v1525_v4 = vld [vmem:[%s2513_s0 + $0x6] sm:$0x3f] }
  0xc3   :  { %1758 = vtanh.f32 %v301_v9  ;;  %v371_v25 = vrot.slane %v1525_v4, 2  ;;  %v395_v8 = vrot.slane %v1525_v4, 4 }
  0xc9   :  { %v1759_v20 = vpop.eup %1758 }
  0xca   :  { %v304_v21 = vmul.f32 %v1759_v20, %v303_v17 }
  0xcc   :  { %v2232_v23 = vadd.f32 %v305_v14, %v304_v21 }
  0xce   :  { %307 = vst [vmem:[#allocation2] sm:$0x3] %v2232_v23  ;;  %v310_v24 = vpack.c.bf16 %v2232_v23, %v2232_v23 }
  0xd0   :  { %319 = vmatmul.bf16.vlgmr.msra.gmra.mxu3 %v310_v24  ;;  %332 = vmatmul.bf16.vlgmr.msrb.gmra.mxu0 %v310_v24 }
  0xd1   :  { %345 = vmatmul.bf16.vlgmr.msrb.gmra.mxu1 %v310_v24  ;;  %529 = vmatpush.bf16.msra.mxu3 %v1988_v18 }
  0xd2   :  { %599 = vmatpush.bf16.msrb.mxu0 %v1944_v3  ;;  %612 = vmatpush.bf16.msrb.mxu1 %v1955_v7 }
  0xd5   :  { %530 = vmatpush.bf16.msra.mxu3 %v2013_v26 }
  0xd6   :  { %600 = vmatpush.bf16.msrb.mxu0 %v1964_v10  ;;  %613 = vmatpush.bf16.msrb.mxu1 %v1968_v11 }
  0xd9   :  { %531 = vmatpush.bf16.msra.mxu3 %v2041_v35 }
  0xda   :  { %601 = vmatpush.bf16.msrb.mxu0 %v1991_v19  ;;  %614 = vmatpush.bf16.msrb.mxu1 %v2001_v22 }
  0xdd   :  { %532 = vmatpush.bf16.msra.mxu3 %v2072_v45 }
  0xde   :  { %602 = vmatpush.bf16.msrb.mxu0 %v2025_v30  ;;  %615 = vmatpush.bf16.msrb.mxu1 %v2029_v31 }
  0xe1   :  { %533 = vmatpush.bf16.msra.mxu3 %v2097_v53 }
  0xe2   :  { %603 = vmatpush.bf16.msrb.mxu0 %v2056_v40  ;;  %616 = vmatpush.bf16.msrb.mxu1 %v2069_v44 }
  0xe5   :  { %534 = vmatpush.bf16.msra.mxu3 %v2125_v62 }
  0xe6   :  { %604 = vmatpush.bf16.msrb.mxu0 %v2081_v48  ;;  %617 = vmatpush.bf16.msrb.mxu1 %v2085_v49 }
  0xe9   :  { %535 = vmatpush.bf16.msra.mxu3 %v2149_v6 }
  0xea   :  { %605 = vmatpush.bf16.msrb.mxu0 %v2109_v57  ;;  %618 = vmatpush.bf16.msrb.mxu1 %v2113_v58 }
  0xed   :  { %536 = vmatpush.bf16.msra.mxu3 %v2163_v13 }
  0xee   :  { %606 = vmatpush.bf16.msrb.mxu0 %v2137_v2  ;;  %619 = vmatpush.bf16.msrb.mxu1 %v2146_v5 }
 0x14d   :  { %v333_v27 = vpop.f32.mrf.mxu0 }
 0x14e   :  { %v373_v28 = vadd.f32 %v371_v25, %v333_v27  ;;  %v346_v29 = vpop.f32.mrf.mxu1 }
 0x14f   :  { %v393_v9 = vadd.f32 %v2228_v42, %v346_v29 }
 0x150   :  { %v1527_v32 = vmul.f32 -1.442695, %v373_v28 }
 0x152   :  { %1760 = vpow2.f32 %v1527_v32 }
 0x153   :  { %v320_v33 = vpop.f32.mrf.mxu3 }
 0x154   :  { %v350_v34 = vadd.f32 %v1525_v4, %v320_v33 }
 0x155   :  { %v335_v36 = vpop.f32.mrf.mxu0 }
 0x156   :  { %v1526_v37 = vmul.f32 -1.442695, %v350_v34  ;;  %v348_v38 = vpop.f32.mrf.mxu1 }
 0x158   :  { %v1761_v39 = vpop.eup %1760  ;;  %1762 = vpow2.f32 %v1526_v37 }
 0x159   :  { %v377_v41 = vadd.f32 1.0, %v1761_v39 }
 0x15b   :  { %v322_v43 = vpop.f32.mrf.mxu3  ;;  %1764 = vrcp.f32 %v377_v41  ;;  %v389_v17 = vand.u32 2147483648, %v377_v41  ;;  %vm383_vm13 = vweird.f32 %v377_v41  ;;  %v387_v21 = vand.u32 2147483647, %v377_v41 }
 0x15d   :  { %v390_v25 = vor.u32 1.1754944e-38, %v389_v17  ;;  %vm388_vm15 = vcmp.eq.f32.partialorder %v387_v21, 8.507059e+37 }
 0x15e   :  { %v1763_v46 = vpop.eup %1762 }
 0x15f   :  { %v354_v47 = vadd.f32 1.0, %v1763_v46 }
 0x161   :  { %1766 = vrcp.f32 %v354_v47  ;;  %v1765_v50 = vpop.eup %1764  ;;  %v366_v59 = vand.u32 2147483648, %v354_v47  ;;  %v364_v61 = vand.u32 2147483647, %v354_v47  ;;  %vm360_vm9 = vweird.f32 %v354_v47 }
 0x162   :  { %v379_v51 = vmul.f32 %v1765_v50, %v377_v41  ;;  %vm384_vm12 = vweird.f32 %v1765_v50 }
 0x163   :  { %v367_v1 = vor.u32 1.1754944e-38, %v366_v59  ;;  %vm365_vm11 = vcmp.eq.f32.partialorder %v364_v61, 8.507059e+37  ;;  %vm385_vm14 = vmor %vm383_vm13, %vm384_vm12 }
 0x164   :  { %v380_v55 = vsub.f32 1.0, %v379_v51 }
 0x166   :  { %v381_v63 = vmul.f32 %v1765_v50, %v380_v55 }
 0x167   :  { %v1767_v52 = vpop.eup %1766 }
 0x168   :  { %v356_v54 = vmul.f32 %v1767_v52, %v354_v47  ;;  %vm361_vm8 = vweird.f32 %v1767_v52  ;;  %v382_v16 = vadd.f32 %v1765_v50, %v381_v63 }
 0x169   :  { %vm362_vm10 = vmor %vm360_vm9, %vm361_vm8 }
 0x16a   :  { %v357_v56 = vsub.f32 1.0, %v356_v54  ;;  %v386_v24 = vsel %vm385_vm14, %v1765_v50, %v382_v16 }
 0x16b   :  { %v391_v27 = vsel %vm388_vm15, %v390_v25, %v386_v24 }
 0x16c   :  { %v358_v60 = vmul.f32 %v1767_v52, %v357_v56  ;;  %v399_v28 = vsub.f32 1.0, %v391_v27  ;;  %v401_v29 = vmul.f32 %v391_v27, %v2232_v23  ;;  %v1528_v23 = vld [vmem:[%s2513_s0 + $0xc] sm:$0x3f] }
 0x16d   :  { %v467_v37 = vrot.slane %v1528_v23, 2  ;;  %v491_v24 = vrot.slane %v1528_v23, 4 }
 0x16e   :  { %v359_v0 = vadd.f32 %v1767_v52, %v358_v60 }
 0x170   :  { %v363_v12 = vsel %vm362_vm10, %v1767_v52, %v359_v0 }
 0x171   :  { %v368_v15 = vsel %vm365_vm11, %v367_v1, %v363_v12 }
 0x172   :  { %v394_v20 = vmul.f32 %v393_v9, %v368_v15 }
 0x174   :  { %v397_v14 = vadd.f32 %v395_v8, %v394_v20 }
 0x176   :  { %1768 = vtanh.f32 %v397_v14 }
 0x17c   :  { %v1769_v4 = vpop.eup %1768 }
 0x17d   :  { %v400_v32 = vmul.f32 %v1769_v4, %v399_v28 }
 0x17f   :  { %v2266_v33 = vadd.f32 %v401_v29, %v400_v32 }
 0x181   :  { %403 = vst [vmem:[#allocation2 + $0x2] sm:$0x3] %v2266_v33  ;;  %v406_v34 = vpack.c.bf16 %v2266_v33, %v2266_v33 }
 0x183   :  { %415 = vmatmul.bf16.vlgmr.msrb.gmra.mxu2 %v406_v34  ;;  %428 = vmatmul.bf16.vlgmr.msrb.gmra.mxu3 %v406_v34 }
 0x184   :  { %441 = vmatmul.bf16.vlgmr.msra.gmra.mxu0 %v406_v34  ;;  %625 = vmatpush.bf16.msrb.mxu2 %v1988_v18 }
 0x185   :  { %695 = vmatpush.bf16.msrb.mxu3 %v1944_v3  ;;  %708 = vmatpush.bf16.msra.mxu0 %v1955_v7 }
 0x188   :  { %626 = vmatpush.bf16.msrb.mxu2 %v2013_v26 }
 0x189   :  { %696 = vmatpush.bf16.msrb.mxu3 %v1964_v10  ;;  %709 = vmatpush.bf16.msra.mxu0 %v1968_v11 }
 0x18c   :  { %627 = vmatpush.bf16.msrb.mxu2 %v2041_v35 }
 0x18d   :  { %697 = vmatpush.bf16.msrb.mxu3 %v1991_v19  ;;  %710 = vmatpush.bf16.msra.mxu0 %v2001_v22 }
 0x190   :  { %628 = vmatpush.bf16.msrb.mxu2 %v2072_v45 }
 0x191   :  { %698 = vmatpush.bf16.msrb.mxu3 %v2025_v30  ;;  %711 = vmatpush.bf16.msra.mxu0 %v2029_v31 }
 0x194   :  { %629 = vmatpush.bf16.msrb.mxu2 %v2097_v53 }
 0x195   :  { %699 = vmatpush.bf16.msrb.mxu3 %v2056_v40  ;;  %712 = vmatpush.bf16.msra.mxu0 %v2069_v44 }
 0x198   :  { %630 = vmatpush.bf16.msrb.mxu2 %v2125_v62 }
 0x199   :  { %700 = vmatpush.bf16.msrb.mxu3 %v2081_v48  ;;  %713 = vmatpush.bf16.msra.mxu0 %v2085_v49 }
 0x19c   :  { %631 = vmatpush.bf16.msrb.mxu2 %v2149_v6 }
 0x19d   :  { %701 = vmatpush.bf16.msrb.mxu3 %v2109_v57  ;;  %714 = vmatpush.bf16.msra.mxu0 %v2113_v58 }
 0x1a0   :  { %632 = vmatpush.bf16.msrb.mxu2 %v2163_v13 }
 0x1a1   :  { %702 = vmatpush.bf16.msrb.mxu3 %v2137_v2  ;;  %715 = vmatpush.bf16.msra.mxu0 %v2146_v5 }
 0x201   :  { %v442_v36 = vpop.f32.mrf.mxu0 }
 0x202   :  { %v489_v21 = vadd.f32 %v2228_v42, %v442_v36 }
 0x206   :  { %v416_v38 = vpop.f32.mrf.mxu2  ;;  %v429_v39 = vpop.f32.mrf.mxu3 }
 0x207   :  { %v446_v41 = vadd.f32 %v1528_v23, %v416_v38  ;;  %v469_v43 = vadd.f32 %v467_v37, %v429_v39 }
 0x209   :  { %v1529_v46 = vmul.f32 -1.442695, %v446_v41  ;;  %v1530_v47 = vmul.f32 -1.442695, %v469_v43  ;;  %v444_v50 = vpop.f32.mrf.mxu0 }
 0x20b   :  { %1770 = vpow2.f32 %v1529_v46 }
 0x20c   :  { %1772 = vpow2.f32 %v1530_v47 }
 0x20e   :  { %v418_v51 = vpop.f32.mrf.mxu2  ;;  %v431_v52 = vpop.f32.mrf.mxu3 }
 0x211   :  { %v1771_v54 = vpop.eup %1770 }
 0x212   :  { %v1773_v55 = vpop.eup %1772  ;;  %v450_v56 = vadd.f32 1.0, %v1771_v54 }
 0x213   :  { %v473_v59 = vadd.f32 1.0, %v1773_v55 }
 0x214   :  { %1774 = vrcp.f32 %v450_v56  ;;  %v462_v8 = vand.u32 2147483648, %v450_v56  ;;  %v460_v15 = vand.u32 2147483647, %v450_v56  ;;  %vm456_vm1 = vweird.f32 %v450_v56 }
 0x215   :  { %1776 = vrcp.f32 %v473_v59  ;;  %v485_v4 = vand.u32 2147483648, %v473_v59  ;;  %vm479_vm5 = vweird.f32 %v473_v59  ;;  %v483_v32 = vand.u32 2147483647, %v473_v59 }
 0x216   :  { %v463_v20 = vor.u32 1.1754944e-38, %v462_v8  ;;  %vm461_vm3 = vcmp.eq.f32.partialorder %v460_v15, 8.507059e+37 }
 0x217   :  { %v486_v37 = vor.u32 1.1754944e-38, %v485_v4  ;;  %vm484_vm7 = vcmp.eq.f32.partialorder %v483_v32, 8.507059e+37 }
 0x21a   :  { %v1775_v60 = vpop.eup %1774 }
 0x21b   :  { %v1777_v61 = vpop.eup %1776  ;;  %v452_v63 = vmul.f32 %v1775_v60, %v450_v56  ;;  %vm457_vm0 = vweird.f32 %v1775_v60 }
 0x21c   :  { %v475_v0 = vmul.f32 %v1777_v61, %v473_v59  ;;  %vm458_vm2 = vmor %vm456_vm1, %vm457_vm0  ;;  %vm480_vm4 = vweird.f32 %v1777_v61 }
 0x21d   :  { %v453_v1 = vsub.f32 1.0, %v452_v63  ;;  %vm481_vm6 = vmor %vm479_vm5, %vm480_vm4 }
 0x21e   :  { %v476_v9 = vsub.f32 1.0, %v475_v0 }
 0x21f   :  { %v454_v12 = vmul.f32 %v1775_v60, %v453_v1 }
 0x220   :  { %v477_v16 = vmul.f32 %v1777_v61, %v476_v9 }
 0x221   :  { %v455_v17 = vadd.f32 %v1775_v60, %v454_v12 }
 0x222   :  { %v478_v27 = vadd.f32 %v1777_v61, %v477_v16 }
 0x223   :  { %v459_v14 = vsel %vm458_vm2, %v1775_v60, %v455_v17 }
 0x224   :  { %v464_v25 = vsel %vm461_vm3, %v463_v20, %v459_v14  ;;  %v482_v34 = vsel %vm481_vm6, %v1777_v61, %v478_v27 }
 0x225   :  { %v490_v28 = vmul.f32 %v489_v21, %v464_v25  ;;  %v487_v38 = vsel %vm484_vm7, %v486_v37, %v482_v34  ;;  %v1534_v34 = vld [vmem:[%s2513_s0 + $0x18] sm:$0x3f] }
 0x226   :  { %v495_v39 = vsub.f32 1.0, %v487_v38  ;;  %v497_v43 = vmul.f32 %v487_v38, %v2266_v33  ;;  %v659_v37 = vrot.slane %v1534_v34, 2 }
 0x227   :  { %v493_v29 = vadd.f32 %v491_v24, %v490_v28 }
 0x229   :  { %1778 = vtanh.f32 %v493_v29 }
 0x22f   :  { %v1779_v41 = vpop.eup %1778 }
 0x230   :  { %v496_v36 = vmul.f32 %v1779_v41, %v495_v39 }
 0x232   :  { %v2300_v23 = vadd.f32 %v497_v43, %v496_v36 }
 0x234   :  { %499 = vst [vmem:[#allocation2 + $0x4] sm:$0x3] %v2300_v23  ;;  %v502_v46 = vpack.c.bf16 %v2300_v23, %v2300_v23 }
 0x236   :  { %511 = vmatmul.bf16.vlgmr.msra.gmra.mxu1 %v502_v46  ;;  %524 = vmatmul.bf16.vlgmr.msra.gmra.mxu2 %v502_v46 }
 0x237   :  { %537 = vmatmul.bf16.vlgmr.msra.gmra.mxu3 %v502_v46  ;;  %721 = vmatpush.bf16.msra.mxu1 %v1988_v18 }
 0x238   :  { %791 = vmatpush.bf16.msra.mxu2 %v1944_v3  ;;  %804 = vmatpush.bf16.msra.mxu3 %v1955_v7  ;;  %v1531_v3 = vld [vmem:[%s2513_s0 + $0x12] sm:$0x3f] }
 0x239   :  { %v587_v60 = vrot.slane %v1531_v3, 4 }
 0x23b   :  { %722 = vmatpush.bf16.msra.mxu1 %v2013_v26 }
 0x23c   :  { %792 = vmatpush.bf16.msra.mxu2 %v1964_v10  ;;  %805 = vmatpush.bf16.msra.mxu3 %v1968_v11 }
 0x23f   :  { %723 = vmatpush.bf16.msra.mxu1 %v2041_v35 }
 0x240   :  { %793 = vmatpush.bf16.msra.mxu2 %v1991_v19  ;;  %806 = vmatpush.bf16.msra.mxu3 %v2001_v22  ;;  %v563_v19 = vrot.slane %v1531_v3, 2 }
 0x243   :  { %724 = vmatpush.bf16.msra.mxu1 %v2072_v45 }
 0x244   :  { %794 = vmatpush.bf16.msra.mxu2 %v2025_v30  ;;  %807 = vmatpush.bf16.msra.mxu3 %v2029_v31 }
 0x247   :  { %725 = vmatpush.bf16.msra.mxu1 %v2097_v53 }
 0x248   :  { %795 = vmatpush.bf16.msra.mxu2 %v2056_v40  ;;  %808 = vmatpush.bf16.msra.mxu3 %v2069_v44 }
 0x24b   :  { %726 = vmatpush.bf16.msra.mxu1 %v2125_v62 }
 0x24c   :  { %796 = vmatpush.bf16.msra.mxu2 %v2081_v48  ;;  %809 = vmatpush.bf16.msra.mxu3 %v2085_v49 }
 0x24f   :  { %727 = vmatpush.bf16.msra.mxu1 %v2149_v6 }
 0x250   :  { %797 = vmatpush.bf16.msra.mxu2 %v2109_v57  ;;  %810 = vmatpush.bf16.msra.mxu3 %v2113_v58 }
 0x253   :  { %728 = vmatpush.bf16.msra.mxu1 %v2163_v13 }
 0x254   :  { %798 = vmatpush.bf16.msra.mxu2 %v2137_v2  ;;  %811 = vmatpush.bf16.msra.mxu3 %v2146_v5 }
 0x2b3   :  { %v512_v7 = vpop.f32.mrf.mxu1 }
 0x2b4   :  { %v542_v10 = vadd.f32 %v1531_v3, %v512_v7 }
 0x2b6   :  { %v1532_v11 = vmul.f32 -1.442695, %v542_v10 }
 0x2b8   :  { %1780 = vpow2.f32 %v1532_v11 }
 0x2b9   :  { %v525_v22 = vpop.f32.mrf.mxu2 }
 0x2ba   :  { %v565_v30 = vadd.f32 %v563_v19, %v525_v22  ;;  %v538_v31 = vpop.f32.mrf.mxu3 }
 0x2bb   :  { %v514_v40 = vpop.f32.mrf.mxu1  ;;  %v585_v1 = vadd.f32 %v2228_v42, %v538_v31 }
 0x2bc   :  { %v1533_v44 = vmul.f32 -1.442695, %v565_v30 }
 0x2be   :  { %v1781_v48 = vpop.eup %1780  ;;  %1782 = vpow2.f32 %v1533_v44 }
 0x2bf   :  { %v546_v49 = vadd.f32 1.0, %v1781_v48 }
 0x2c1   :  { %1784 = vrcp.f32 %v546_v49  ;;  %v527_v57 = vpop.f32.mrf.mxu2  ;;  %v558_v51 = vand.u32 2147483648, %v546_v49  ;;  %v556_v54 = vand.u32 2147483647, %v546_v49  ;;  %vm552_vm9 = vweird.f32 %v546_v49 }
 0x2c2   :  { %v540_v58 = vpop.f32.mrf.mxu3 }
 0x2c3   :  { %v559_v61 = vor.u32 1.1754944e-38, %v558_v51  ;;  %vm557_vm11 = vcmp.eq.f32.partialorder %v556_v54, 8.507059e+37 }
 0x2c4   :  { %v1783_v2 = vpop.eup %1782 }
 0x2c5   :  { %v569_v5 = vadd.f32 1.0, %v1783_v2 }
 0x2c7   :  { %v1785_v33 = vpop.eup %1784  ;;  %1786 = vrcp.f32 %v569_v5  ;;  %v581_v12 = vand.u32 2147483648, %v569_v5  ;;  %v579_v16 = vand.u32 2147483647, %v569_v5  ;;  %vm575_vm13 = vweird.f32 %v569_v5 }
 0x2c8   :  { %v548_v47 = vmul.f32 %v1785_v33, %v546_v49  ;;  %vm553_vm8 = vweird.f32 %v1785_v33  ;;  %v683_v49 = vrot.slane %v1534_v34, 4 }
 0x2c9   :  { %vm554_vm10 = vmor %vm552_vm9, %vm553_vm8  ;;  %v582_v21 = vor.u32 1.1754944e-38, %v581_v12  ;;  %vm580_vm15 = vcmp.eq.f32.partialorder %v579_v16, 8.507059e+37 }
 0x2ca   :  { %v549_v50 = vsub.f32 1.0, %v548_v47 }
 0x2cc   :  { %v550_v52 = vmul.f32 %v1785_v33, %v549_v50 }
 0x2cd   :  { %v1787_v55 = vpop.eup %1786 }
 0x2ce   :  { %v571_v56 = vmul.f32 %v1787_v55, %v569_v5  ;;  %v551_v59 = vadd.f32 %v1785_v33, %v550_v52  ;;  %vm576_vm12 = vweird.f32 %v1787_v55 }
 0x2cf   :  { %vm577_vm14 = vmor %vm575_vm13, %vm576_vm12 }
 0x2d0   :  { %v572_v63 = vsub.f32 1.0, %v571_v56  ;;  %v555_v0 = vsel %vm554_vm10, %v1785_v33, %v551_v59 }
 0x2d1   :  { %v560_v8 = vsel %vm557_vm11, %v559_v61, %v555_v0 }
 0x2d2   :  { %v573_v9 = vmul.f32 %v1787_v55, %v572_v63  ;;  %v586_v15 = vmul.f32 %v585_v1, %v560_v8  ;;  %v1537_v1 = vld [vmem:[%s2513_s0 + $0x1e] sm:$0x3f] }
 0x2d3   :  { %v755_v8 = vrot.slane %v1537_v1, 2 }
 0x2d4   :  { %v574_v17 = vadd.f32 %v1787_v55, %v573_v9  ;;  %v589_v20 = vadd.f32 %v587_v60, %v586_v15 }
 0x2d6   :  { %v578_v14 = vsel %vm577_vm14, %v1787_v55, %v574_v17  ;;  %1788 = vtanh.f32 %v589_v20 }
 0x2d7   :  { %v583_v24 = vsel %vm580_vm15, %v582_v21, %v578_v14 }
 0x2d8   :  { %v591_v25 = vsub.f32 1.0, %v583_v24  ;;  %v593_v4 = vmul.f32 %v583_v24, %v2300_v23 }
 0x2dc   :  { %v1789_v27 = vpop.eup %1788 }
 0x2dd   :  { %v592_v28 = vmul.f32 %v1789_v27, %v591_v25 }
 0x2df   :  { %v2334_v32 = vadd.f32 %v593_v4, %v592_v28 }
 0x2e1   :  { %595 = vst [vmem:[#allocation2 + $0x6] sm:$0x3] %v2334_v32  ;;  %v598_v29 = vpack.c.bf16 %v2334_v32, %v2334_v32 }
 0x2e3   :  { %607 = vmatmul.bf16.vlgmr.msrb.gmra.mxu0 %v598_v29  ;;  %620 = vmatmul.bf16.vlgmr.msrb.gmra.mxu1 %v598_v29 }
 0x2e4   :  { %633 = vmatmul.bf16.vlgmr.msrb.gmra.mxu2 %v598_v29  ;;  %817 = vmatpush.bf16.msrb.mxu0 %v1988_v18 }
 0x2e8   :  { %818 = vmatpush.bf16.msrb.mxu0 %v2013_v26 }
 0x2ec   :  { %819 = vmatpush.bf16.msrb.mxu0 %v2041_v35 }
 0x2f0   :  { %820 = vmatpush.bf16.msrb.mxu0 %v2072_v45 }
 0x2f4   :  { %821 = vmatpush.bf16.msrb.mxu0 %v2097_v53 }
 0x2f8   :  { %822 = vmatpush.bf16.msrb.mxu0 %v2125_v62 }
 0x2fc   :  { %823 = vmatpush.bf16.msrb.mxu0 %v2149_v6 }
 0x300   :  { %824 = vmatpush.bf16.msrb.mxu0 %v2163_v13 }
 0x360   :  { %v608_v18 = vpop.f32.mrf.mxu0  ;;  %v621_v38 = vpop.f32.mrf.mxu1 }
 0x361   :  { %v638_v26 = vadd.f32 %v1534_v34, %v608_v18  ;;  %v661_v39 = vadd.f32 %v659_v37, %v621_v38 }
 0x363   :  { %v1535_v35 = vmul.f32 -1.442695, %v638_v26  ;;  %v1536_v41 = vmul.f32 -1.442695, %v661_v39 }
 0x365   :  { %1790 = vpow2.f32 %v1535_v35 }
 0x366   :  { %1792 = vpow2.f32 %v1536_v41 }
 0x367   :  { %v634_v45 = vpop.f32.mrf.mxu2 }
 0x368   :  { %v610_v53 = vpop.f32.mrf.mxu0  ;;  %v623_v62 = vpop.f32.mrf.mxu1  ;;  %v681_v58 = vadd.f32 %v2228_v42, %v634_v45 }
 0x36b   :  { %v1791_v36 = vpop.eup %1790 }
 0x36c   :  { %v1793_v6 = vpop.eup %1792  ;;  %v642_v43 = vadd.f32 1.0, %v1791_v36  ;;  %v779_v36 = vrot.slane %v1537_v1, 4 }
 0x36d   :  { %v665_v13 = vadd.f32 1.0, %v1793_v6 }
 0x36e   :  { %1794 = vrcp.f32 %v642_v43  ;;  %v654_v22 = vand.u32 2147483648, %v642_v43  ;;  %v652_v31 = vand.u32 2147483647, %v642_v43  ;;  %vm648_vm1 = vweird.f32 %v642_v43 }
 0x36f   :  { %1796 = vrcp.f32 %v665_v13  ;;  %v636_v23 = vpop.f32.mrf.mxu2  ;;  %v677_v33 = vand.u32 2147483648, %v665_v13  ;;  %vm671_vm5 = vweird.f32 %v665_v13  ;;  %v675_v50 = vand.u32 2147483647, %v665_v13 }
 0x370   :  { %v655_v48 = vor.u32 1.1754944e-38, %v654_v22  ;;  %vm653_vm3 = vcmp.eq.f32.partialorder %v652_v31, 8.507059e+37 }
 0x371   :  { %v678_v54 = vor.u32 1.1754944e-38, %v677_v33  ;;  %vm676_vm7 = vcmp.eq.f32.partialorder %v675_v50, 8.507059e+37 }
 0x374   :  { %v1795_v46 = vpop.eup %1794 }
 0x375   :  { %v1797_v3 = vpop.eup %1796  ;;  %v644_v7 = vmul.f32 %v1795_v46, %v642_v43  ;;  %vm649_vm0 = vweird.f32 %v1795_v46 }
 0x376   :  { %v667_v10 = vmul.f32 %v1797_v3, %v665_v13  ;;  %vm650_vm2 = vmor %vm648_vm1, %vm649_vm0  ;;  %vm672_vm4 = vweird.f32 %v1797_v3 }
 0x377   :  { %v645_v11 = vsub.f32 1.0, %v644_v7  ;;  %vm673_vm6 = vmor %vm671_vm5, %vm672_vm4 }
 0x378   :  { %v668_v19 = vsub.f32 1.0, %v667_v10 }
 0x379   :  { %v646_v30 = vmul.f32 %v1795_v46, %v645_v11 }
 0x37a   :  { %v669_v40 = vmul.f32 %v1797_v3, %v668_v19 }
 0x37b   :  { %v647_v44 = vadd.f32 %v1795_v46, %v646_v30 }
 0x37c   :  { %v670_v2 = vadd.f32 %v1797_v3, %v669_v40 }
 0x37d   :  { %v651_v57 = vsel %vm650_vm2, %v1795_v46, %v647_v44 }
 0x37e   :  { %v656_v5 = vsel %vm653_vm3, %v655_v48, %v651_v57  ;;  %v674_v52 = vsel %vm673_vm6, %v1797_v3, %v670_v2  ;;  %v1710_v57 = vld [vmem:[%s2520_s7 + $0x38] sm:$0xff] }
 0x37f   :  { %v682_v47 = vmul.f32 %v681_v58, %v656_v5  ;;  %v679_v55 = vsel %vm676_vm7, %v678_v54, %v674_v52  ;;  %v2367_v58 = vld [vmem:[%s2513_s0 + $0x24] sm:$0x3f]  ;;  %953 = vmatpush.bf16.msrb.mxu1 %v1710_v57  ;;  %v1709_v5 = vld [vmem:[%s2520_s7 + $0x30] sm:$0xff] }
 0x380   :  { %v687_v56 = vsub.f32 1.0, %v679_v55  ;;  %v689_v61 = vmul.f32 %v679_v55, %v2334_v32  ;;  %v851_v33 = vrot.slane %v2367_v58, 2  ;;  %v1719_v57 = vld [vmem:[%s2522_s9] sm:$0xff] }
 0x381   :  { %v685_v51 = vadd.f32 %v683_v49, %v682_v47 }
 0x383   :  { %1798 = vtanh.f32 %v685_v51  ;;  %954 = vmatpush.bf16.msrb.mxu1 %v1709_v5  ;;  %v1708_v51 = vld [vmem:[%s2520_s7 + $0x28] sm:$0xff] }
 0x387   :  { %955 = vmatpush.bf16.msrb.mxu1 %v1708_v51 }
 0x389   :  { %v1799_v59 = vpop.eup %1798 }
 0x38a   :  { %v688_v60 = vmul.f32 %v1799_v59, %v687_v56 }
 0x38c   :  { %v690_v63 = vadd.f32 %v689_v61, %v688_v60  ;;  %v1707_v60 = vld [vmem:[%s2520_s7 + $0x20] sm:$0xff] }
 0x38d   :  { %956 = vmatpush.bf16.msrb.mxu1 %v1707_v60 }
 0x38e   :  { %691 = vst [vmem:[#allocation2 + $0x8] sm:$0x3] %v690_v63  ;;  %v694_v0 = vpack.c.bf16 %v690_v63, %v690_v63 }
 0x390   :  { %703 = vmatmul.bf16.vlgmr.msrb.gmra.mxu3 %v694_v0  ;;  %716 = vmatmul.bf16.vlgmr.msra.gmra.mxu0 %v694_v0 }
 0x391   :  { %729 = vmatmul.bf16.vlgmr.msra.gmra.mxu1 %v694_v0  ;;  %v1706_v0 = vld [vmem:[%s2520_s7 + $0x18] sm:$0xff] }
 0x392   :  { %957 = vmatpush.bf16.msrb.mxu1 %v1706_v0 }
 0x40d   :  { %v717_v9 = vpop.f32.mrf.mxu0 }
 0x40e   :  { %v757_v12 = vadd.f32 %v755_v8, %v717_v9  ;;  %v730_v15 = vpop.f32.mrf.mxu1 }
 0x40f   :  { %v777_v6 = vadd.f32 %v2228_v42, %v730_v15 }
 0x410   :  { %v1539_v16 = vmul.f32 -1.442695, %v757_v12  ;;  %v1705_v12 = vld [vmem:[%s2520_s7 + $0x10] sm:$0xff] }
 0x411   :  { %958 = vmatpush.bf16.msrb.mxu1 %v1705_v12 }
 0x412   :  { %1800 = vpow2.f32 %v1539_v16  ;;  %v1704_v16 = vld [vmem:[%s2520_s7 + $0x8] sm:$0xff] }
 0x413   :  { %v704_v17 = vpop.f32.mrf.mxu3 }
 0x414   :  { %v734_v20 = vadd.f32 %v1537_v1, %v704_v17  ;;  %v1703_v17 = vld [vmem:[%s2520_s7] sm:$0xff] }
 0x415   :  { %v719_v21 = vpop.f32.mrf.mxu0  ;;  %959 = vmatpush.bf16.msrb.mxu1 %v1704_v16  ;;  %v1718_v16 = vld [vmem:[%s2521_s8 + $0x38] sm:$0xff] }
 0x416   :  { %v1538_v14 = vmul.f32 -1.442695, %v734_v20  ;;  %v732_v24 = vpop.f32.mrf.mxu1 }
 0x418   :  { %v1801_v25 = vpop.eup %1800  ;;  %1802 = vpow2.f32 %v1538_v14 }
 0x419   :  { %v761_v27 = vadd.f32 1.0, %v1801_v25  ;;  %960 = vmatpush.bf16.msrb.mxu1 %v1703_v17 }
 0x41b   :  { %v706_v28 = vpop.f32.mrf.mxu3  ;;  %1804 = vrcp.f32 %v761_v27  ;;  %v773_v46 = vand.u32 2147483648, %v761_v27  ;;  %vm767_vm13 = vweird.f32 %v761_v27  ;;  %v771_v7 = vand.u32 2147483647, %v761_v27 }
 0x41d   :  { %v774_v19 = vor.u32 1.1754944e-38, %v773_v46  ;;  %vm772_vm15 = vcmp.eq.f32.partialorder %v771_v7, 8.507059e+37 }
 0x41e   :  { %v1803_v4 = vpop.eup %1802 }
 0x41f   :  { %v738_v32 = vadd.f32 1.0, %v1803_v4  ;;  %v1702_v4 = vld [vmem:[%s2514_s1] sm:$0xff] }
 0x420   :  { %983 = vmatpush.bf16.xpose.msrb.mxu2 %v1702_v4  ;;  %1051 = vmatpush.bf16.msrb.mxu3 %v1702_v4 }
 0x421   :  { %1806 = vrcp.f32 %v738_v32  ;;  %v1805_v29 = vpop.eup %1804  ;;  %v750_v39 = vand.u32 2147483648, %v738_v32  ;;  %v748_v41 = vand.u32 2147483647, %v738_v32  ;;  %vm744_vm9 = vweird.f32 %v738_v32 }
 0x422   :  { %v763_v34 = vmul.f32 %v1805_v29, %v761_v27  ;;  %vm768_vm12 = vweird.f32 %v1805_v29 }
 0x423   :  { %v751_v62 = vor.u32 1.1754944e-38, %v750_v39  ;;  %vm749_vm11 = vcmp.eq.f32.partialorder %v748_v41, 8.507059e+37  ;;  %vm769_vm14 = vmor %vm767_vm13, %vm768_vm12 }
 0x424   :  { %v764_v38 = vsub.f32 1.0, %v763_v34 }
 0x426   :  { %v765_v45 = vmul.f32 %v1805_v29, %v764_v38 }
 0x427   :  { %v1807_v37 = vpop.eup %1806 }
 0x428   :  { %v740_v18 = vmul.f32 %v1807_v37, %v738_v32  ;;  %vm745_vm8 = vweird.f32 %v1807_v37  ;;  %v766_v13 = vadd.f32 %v1805_v29, %v765_v45  ;;  %v1726_v32 = vld [vmem:[%s2522_s9 + $0x38] sm:$0xff] }
 0x429   :  { %vm746_vm10 = vmor %vm744_vm9, %vm745_vm8  ;;  %vm990_vm8 = vcmask 130048   ;;  %vm994_vm9 = vcmask 128000  }
 0x42a   :  { %v741_v26 = vsub.f32 1.0, %v740_v18  ;;  %v770_v11 = vsel %vm769_vm14, %v1805_v29, %v766_v13 }
 0x42b   :  { %v775_v22 = vsel %vm772_vm15, %v774_v19, %v770_v11  ;;  %v884_v11 = vld [vmem:[#allocation2] sm:$0xff] }
 0x42c   :  { %v742_v35 = vmul.f32 %v1807_v37, %v741_v26  ;;  %v783_v30 = vsub.f32 1.0, %v775_v22  ;;  %v785_v44 = vmul.f32 %v775_v22, %v690_v63 }
 0x42e   :  { %v743_v53 = vadd.f32 %v1807_v37, %v742_v35  ;;  %v875_v35 = vrot.slane %v2367_v58, 4 }
 0x430   :  { %v747_v43 = vsel %vm746_vm10, %v1807_v37, %v743_v53 }
 0x431   :  { %v752_v23 = vsel %vm749_vm11, %v751_v62, %v747_v43 }
 0x432   :  { %v778_v3 = vmul.f32 %v777_v6, %v752_v23 }
 0x434   :  { %v781_v10 = vadd.f32 %v779_v36, %v778_v3 }
 0x436   :  { %1808 = vtanh.f32 %v781_v10 }
 0x43c   :  { %v1809_v31 = vpop.eup %1808 }
 0x43d   :  { %v784_v40 = vmul.f32 %v1809_v31, %v783_v30  ;;  %v1725_v30 = vld [vmem:[%s2522_s9 + $0x30] sm:$0xff]  ;;  %v1724_v31 = vld [vmem:[%s2522_s9 + $0x28] sm:$0xff] }
 0x43f   :  { %v2356_v48 = vadd.f32 %v785_v44, %v784_v40  ;;  %v1723_v40 = vld [vmem:[%s2522_s9 + $0x20] sm:$0xff]  ;;  %v1722_v44 = vld [vmem:[%s2522_s9 + $0x18] sm:$0xff] }
 0x441   :  { %787 = vst [vmem:[#allocation2 + $0xa] sm:$0x3] %v2356_v48  ;;  %v790_v49 = vpack.c.bf16 %v2356_v48, %v2356_v48 }
 0x443   :  { %799 = vmatmul.bf16.vlgmr.msra.gmra.mxu2 %v790_v49  ;;  %812 = vmatmul.bf16.vlgmr.msra.gmra.mxu3 %v790_v49 }
 0x444   :  { %825 = vmatmul.bf16.vlgmr.msrb.gmra.mxu0 %v790_v49  ;;  %1139 = vmatpush.bf16.msra.mxu2 %v1726_v32  ;;  %v1720_v49 = vld [vmem:[%s2522_s9 + $0x8] sm:$0xff]  ;;  %v1714_v32 = vld [vmem:[%s2521_s8 + $0x18] sm:$0xff] }
 0x445   :  { %1201 = vmatpush.bf16.msra.mxu3 %v1718_v16 }
 0x448   :  { %1140 = vmatpush.bf16.msra.mxu2 %v1725_v30 }
 0x44c   :  { %1141 = vmatpush.bf16.msra.mxu2 %v1724_v31 }
 0x450   :  { %1142 = vmatpush.bf16.msra.mxu2 %v1723_v40 }
 0x454   :  { %1143 = vmatpush.bf16.msra.mxu2 %v1722_v44  ;;  %v1731_v44 = vld [vmem:[%s2524_s11 + $0x20] sm:$0xff] }
 0x4c1   :  { %v826_v2 = vpop.f32.mrf.mxu0 }
 0x4c2   :  { %v873_v26 = vadd.f32 %v2228_v42, %v826_v2 }
 0x4c6   :  { %v800_v47 = vpop.f32.mrf.mxu2  ;;  %v813_v50 = vpop.f32.mrf.mxu3 }
 0x4c7   :  { %v830_v52 = vadd.f32 %v2367_v58, %v800_v47  ;;  %v853_v54 = vadd.f32 %v851_v33, %v813_v50  ;;  %v968_v33 = vld [vmem:[%s2515_s2] sm:$0xff] }
 0x4c9   :  { %v1541_v55 = vmul.f32 -1.442695, %v830_v52  ;;  %v1542_v56 = vmul.f32 -1.442695, %v853_v54  ;;  %v828_v59 = vpop.f32.mrf.mxu0  ;;  %v969_v52 = vld [vmem:[%s2515_s2 + $0x8] sm:$0x3f] }
 0x4cb   :  { %1810 = vpow2.f32 %v1541_v55 }
 0x4cc   :  { %1812 = vpow2.f32 %v1542_v56 }
 0x4ce   :  { %v802_v61 = vpop.f32.mrf.mxu2  ;;  %v815_v63 = vpop.f32.mrf.mxu3 }
 0x4d1   :  { %v1811_v1 = vpop.eup %1810 }
 0x4d2   :  { %v1813_v8 = vpop.eup %1812  ;;  %v834_v9 = vadd.f32 1.0, %v1811_v1 }
 0x4d3   :  { %v857_v15 = vadd.f32 1.0, %v1813_v8 }
 0x4d4   :  { %1814 = vrcp.f32 %v834_v9  ;;  %v846_v27 = vand.u32 2147483648, %v834_v9  ;;  %v844_v34 = vand.u32 2147483647, %v834_v9  ;;  %vm840_vm1 = vweird.f32 %v834_v9 }
 0x4d5   :  { %1816 = vrcp.f32 %v857_v15  ;;  %v869_v62 = vand.u32 2147483648, %v857_v15  ;;  %vm863_vm5 = vweird.f32 %v857_v15  ;;  %v867_v36 = vand.u32 2147483647, %v857_v15 }
 0x4d6   :  { %v847_v38 = vor.u32 1.1754944e-38, %v846_v27  ;;  %vm845_vm3 = vcmp.eq.f32.partialorder %v844_v34, 8.507059e+37  ;;  %v1715_v27 = vld [vmem:[%s2521_s8 + $0x20] sm:$0xff] }
 0x4d7   :  { %v870_v13 = vor.u32 1.1754944e-38, %v869_v62  ;;  %vm868_vm7 = vcmp.eq.f32.partialorder %v867_v36, 8.507059e+37 }
 0x4da   :  { %v1815_v20 = vpop.eup %1814 }
 0x4db   :  { %v1817_v21 = vpop.eup %1816  ;;  %v836_v14 = vmul.f32 %v1815_v20, %v834_v9  ;;  %vm841_vm0 = vweird.f32 %v1815_v20 }
 0x4dc   :  { %v859_v24 = vmul.f32 %v1817_v21, %v857_v15  ;;  %vm842_vm2 = vmor %vm840_vm1, %vm841_vm0  ;;  %vm864_vm4 = vweird.f32 %v1817_v21 }
 0x4dd   :  { %v837_v25 = vsub.f32 1.0, %v836_v14  ;;  %vm865_vm6 = vmor %vm863_vm5, %vm864_vm4 }
 0x4de   :  { %v860_v28 = vsub.f32 1.0, %v859_v24 }
 0x4df   :  { %v838_v29 = vmul.f32 %v1815_v20, %v837_v25 }
 0x4e0   :  { %v861_v37 = vmul.f32 %v1817_v21, %v860_v28 }
 0x4e1   :  { %v839_v18 = vadd.f32 %v1815_v20, %v838_v29 }
 0x4e2   :  { %v862_v45 = vadd.f32 %v1817_v21, %v861_v37 }
 0x4e3   :  { %v843_v39 = vsel %vm842_vm2, %v1815_v20, %v839_v18  ;;  %v1717_v20 = vld [vmem:[%s2521_s8 + $0x30] sm:$0xff]  ;;  %vm1312_vm2 = vcmask 1045504  }
 0x4e4   :  { %v848_v41 = vsel %vm845_vm3, %v847_v38, %v843_v39  ;;  %v866_v43 = vsel %vm865_vm6, %v1817_v21, %v862_v45  ;;  %1202 = vmatpush.bf16.msra.mxu3 %v1717_v20  ;;  %v1716_v21 = vld [vmem:[%s2521_s8 + $0x28] sm:$0xff] }
 0x4e5   :  { %v874_v53 = vmul.f32 %v873_v26, %v848_v41  ;;  %v871_v23 = vsel %vm868_vm7, %v870_v13, %v866_v43  ;;  %vm1362_vm7 = vcmask 7168  }
 0x4e6   :  { %v879_v46 = vsub.f32 1.0, %v871_v23  ;;  %v881_v7 = vmul.f32 %v871_v23, %v2356_v48  ;;  %v1721_v48 = vld [vmem:[%s2522_s9 + $0x10] sm:$0xff] }
 0x4e7   :  { %v877_v6 = vadd.f32 %v875_v35, %v874_v53  ;;  %1144 = vmatpush.bf16.msra.mxu2 %v1721_v48  ;;  %v1730_v48 = vld [vmem:[%s2524_s11 + $0x18] sm:$0xff] }
 0x4e8   :  { %1203 = vmatpush.bf16.msra.mxu3 %v1716_v21 }
 0x4e9   :  { %1818 = vtanh.f32 %v877_v6 }
 0x4eb   :  { %1145 = vmatpush.bf16.msra.mxu2 %v1720_v49  ;;  %v1729_v49 = vld [vmem:[%s2524_s11 + $0x10] sm:$0xff] }
 0x4ec   :  { %1204 = vmatpush.bf16.msra.mxu3 %v1715_v27 }
 0x4ef   :  { %v1819_v42 = vpop.eup %1818  ;;  %1146 = vmatpush.bf16.msra.mxu2 %v1719_v57  ;;  %v1728_v57 = vld [vmem:[%s2524_s11 + $0x8] sm:$0xff] }
 0x4f0   :  { %v880_v3 = vmul.f32 %v1819_v42, %v879_v46  ;;  %1205 = vmatpush.bf16.msra.mxu3 %v1714_v32 }
 0x4f2   :  { %v882_v10 = vadd.f32 %v881_v7, %v880_v3  ;;  %v1713_v3 = vld [vmem:[%s2521_s8 + $0x10] sm:$0xff]  ;;  %v1712_v7 = vld [vmem:[%s2521_s8 + $0x8] sm:$0xff] }
 0x4f4   :  { %883 = vst [vmem:[#allocation2 + $0xc] sm:$0x3] %v882_v10  ;;  %1206 = vmatpush.bf16.msra.mxu3 %v1713_v3  ;;  %v1711_v10 = vld [vmem:[%s2521_s8] sm:$0xff] }
 0x4f8   :  { %1207 = vmatpush.bf16.msra.mxu3 %v1712_v7 }
 0x4fb   :  { %v885_v19 = vld [vmem:[#allocation2 + $0x8] sm:$0x3f] }
 0x4fc   :  { %v888_v22 = vpack.c.bf16 %v885_v19, %v884_v11  ;;  %1208 = vmatpush.bf16.msra.mxu3 %v1711_v10  ;;  %v1734_v11 = vld [vmem:[%s2524_s11 + $0x38] sm:$0xff]  ;;  %v1733_v19 = vld [vmem:[%s2524_s11 + $0x30] sm:$0xff] }
 0x4fd   :  { %1292 = vmatpush.bf16.msra.mxu0 %v1734_v11 }
 0x4fe   :  { %961 = vmatmul.bf16.vlgmr.msrb.gmra.mxu1 %v888_v22 }
 0x501   :  { %1293 = vmatpush.bf16.msra.mxu0 %v1733_v19 }
 0x57b   :  { %v962_v58 = vpop.f32.mrf.mxu1 }
 0x583   :  { %v964_v2 = vpop.f32.mrf.mxu1 }
 0x584   :  { %v967_v5 = vpack.c.bf16 %v964_v2, %v962_v58  ;;  %v1727_v58 = vld [vmem:[%s2524_s11] sm:$0xff] }
 0x585   :  { %v2484_v2 = vld [vmem:[%s2516_s3] sm:$0xff] }
 0x586   :  { %984 = vmatmul.bf16.vlgmr.msrb.gmra.mxu2 %v967_v5  ;;  %v1334_v5 = vld [vmem:[%s2516_s3 + $0x8] sm:$0x3f]  ;;  %vm1352_vm6 = vcmp.ne.s32.totalorder %v2484_v2, 0 }
 0x587   :  { %vm1353_vm5 = vcmp.ne.s32.totalorder %v1334_v5, 0 }
 0x596   :  { %1147 = vmatmul.bf16.vlgmr.msra.gmra.mxu2 %v888_v22  ;;  %v1732_v22 = vld [vmem:[%s2524_s11 + $0x28] sm:$0xff] }
 0x597   :  { %1294 = vmatpush.bf16.msra.mxu0 %v1732_v22 }
 0x59b   :  { %1295 = vmatpush.bf16.msra.mxu0 %v1731_v44 }
 0x59f   :  { %1296 = vmatpush.bf16.msra.mxu0 %v1730_v48 }
 0x5a3   :  { %1297 = vmatpush.bf16.msra.mxu0 %v1729_v49 }
 0x5a7   :  { %1298 = vmatpush.bf16.msra.mxu0 %v1728_v57 }
 0x5ab   :  { %1299 = vmatpush.bf16.msra.mxu0 %v1727_v58 }
 0x609   :  { %v985_v47 = vpop.f32.mrf.mxu2 }
 0x60a   :  { %v986_v50 = vadd.f32 %v985_v47, %v968_v33  ;;  %v1856_v33 = vmov 0  }
 0x60b   :  { %1746 = vset.pattern.permute.xlu1 %v1856_v33  ;;  %1745 = vset.pattern.permute.xlu0 %v1856_v33 }
 0x60c   :  { %v991_v51 = vsel %vm990_vm8, %v986_v50, -inf }
 0x60d   :  { %992 = vmax.xlane.f32.xlu0 %v991_v51 }
 0x611   :  { %v987_v54 = vpop.f32.mrf.mxu2 }
 0x612   :  { %v988_v55 = vadd.f32 %v987_v54, %v969_v52  ;;  %v1748_v52 = vld [vmem:[%s2523_s10] ss:$0 sm:$0xff] }
 0x614   :  { %v995_v56 = vsel %vm994_vm9, %v988_v55, -inf }
 0x615   :  { %996 = vmax.xlane.f32.xlu0 %v995_v56 }
 0x619   :  { %v1148_v47 = vpop.f32.mrf.mxu2 }
 0x621   :  { %v1150_v54 = vpop.f32.mrf.mxu2 }
 0x629   :  { %1341 = vperm.xlu0 %1745, %v1334_v5  }
 0x680   :  { %v993_v59 = vpop.xlane.xlu0 %992 }
 0x681   :  { %v998_v60 = vsub.f32 %v986_v50, %v993_v59 }
 0x683   :  { %v1000_v61 = vmul.f32 1.442695, %v998_v60 }
 0x685   :  { %1820 = vpow2.f32 %v1000_v61 }
 0x688   :  { %v997_v63 = vpop.xlane.xlu0 %996 }
 0x689   :  { %v999_v0 = vsub.f32 %v988_v55, %v997_v63 }
 0x68b   :  { %v1821_v1 = vpop.eup %1820  ;;  %v1002_v8 = vmul.f32 1.442695, %v999_v0 }
 0x68c   :  { %v1004_v9 = vsel %vm990_vm8, %v1821_v1, 0.0 }
 0x68d   :  { %1822 = vpow2.f32 %v1002_v8  ;;  %1005 = vadd.xlane.f32.xlu1 %v1004_v9 }
 0x693   :  { %v1823_v12 = vpop.eup %1822 }
 0x694   :  { %v1007_v15 = vsel %vm994_vm9, %v1823_v12, 0.0 }
 0x695   :  { %1008 = vadd.xlane.f32.xlu1 %v1007_v15 }
 0x6ae   :  { %1338 = vperm.xlu1 %1746, %v2484_v2  }
 0x700   :  { %v1006_v17 = vpop.xlane.xlu1 %1005 }
 0x701   :  { %1824 = vrcp.f32 %v1006_v17  ;;  %v1021_v18 = vand.u32 2147483648, %v1006_v17  ;;  %vm1015_vm11 = vweird.f32 %v1006_v17  ;;  %v1019_v38 = vand.u32 2147483647, %v1006_v17 }
 0x703   :  { %v1022_v53 = vor.u32 1.1754944e-38, %v1021_v18  ;;  %vm1020_vm14 = vcmp.eq.f32.partialorder %v1019_v38, 8.507059e+37  ;;  %v1342_v38 = vpop.permute.xlu0 %1341 }
 0x707   :  { %v1825_v14 = vpop.eup %1824 }
 0x708   :  { %v1011_v24 = vmul.f32 %v1825_v14, %v1006_v17  ;;  %v1009_v25 = vpop.xlane.xlu1 %1008  ;;  %vm1016_vm10 = vweird.f32 %v1825_v14 }
 0x709   :  { %1826 = vrcp.f32 %v1009_v25  ;;  %vm1017_vm12 = vmor %vm1015_vm11, %vm1016_vm10  ;;  %v1036_v39 = vand.u32 2147483648, %v1009_v25  ;;  %v1034_v45 = vand.u32 2147483647, %v1009_v25  ;;  %vm1030_vm15 = vweird.f32 %v1009_v25 }
 0x70a   :  { %v1012_v28 = vsub.f32 1.0, %v1011_v24 }
 0x70b   :  { %v1037_v6 = vor.u32 1.1754944e-38, %v1036_v39  ;;  %vm1035_vm1 = vcmp.eq.f32.partialorder %v1034_v45, 8.507059e+37 }
 0x70c   :  { %v1013_v4 = vmul.f32 %v1825_v14, %v1012_v28 }
 0x70e   :  { %v1014_v34 = vadd.f32 %v1825_v14, %v1013_v4 }
 0x70f   :  { %v1827_v29 = vpop.eup %1826 }
 0x710   :  { %v1026_v37 = vmul.f32 %v1827_v29, %v1009_v25  ;;  %v1018_v35 = vsel %vm1017_vm12, %v1825_v14, %v1014_v34  ;;  %vm1031_vm13 = vweird.f32 %v1827_v29 }
 0x711   :  { %v1023_v36 = vsel %vm1020_vm14, %v1022_v53, %v1018_v35  ;;  %vm1032_vm0 = vmor %vm1030_vm15, %vm1031_vm13 }
 0x712   :  { %v1027_v26 = vsub.f32 1.0, %v1026_v37  ;;  %v1024_v23 = vmul.f32 %v1821_v1, %v1023_v36  ;;  %v1749_v1 = vld [vmem:[%s2525_s12] ss:$0 sm:$0xff] }
 0x714   :  { %v1028_v41 = vmul.f32 %v1827_v29, %v1027_v26 }
 0x716   :  { %v1029_v62 = vadd.f32 %v1827_v29, %v1028_v41  ;;  %v1857_v41 = vmov 0.0  }
 0x717   :  { %v1677_v45 = vsel %vm1353_vm5, 1.0, %v1857_v41  ;;  %v1676_v53 = vsel %vm1352_vm6, 1.0, %v1857_v41 }
 0x718   :  { %v1033_v43 = vsel %vm1032_vm0, %v1827_v29, %v1029_v62  ;;  %v1335_v29 = vlaneseq  ;;  %v1376_v62 = vsel %vm1362_vm7, %v1676_v53, 0.0 }
 0x719   :  { %v1038_v13 = vsel %vm1035_vm1, %v1037_v6, %v1033_v43 }
 0x71a   :  { %v1039_v46 = vmul.f32 %v1823_v12, %v1038_v13  ;;  %v1336_v37 = vand.u32 127, %v1335_v29 }
 0x71c   :  { %v1040_v42 = vpack.c.bf16 %v1039_v46, %v1024_v23  ;;  %vm1344_vm4 = vcmp.eq.s32.totalorder %v1336_v37, %v1342_v38 }
 0x71e   :  { %1579 = vmatmul.msk.bf16.vlgmr.msrb.gmra.mxu3 %vm990_vm8, %v1040_v42  ;;  %vm1364_vm8 = vcmask 5120  }
 0x71f   :  { %v1377_v36 = vsel %vm1364_vm8, %v1677_v45, 0.0 }
 0x720   :  { %v1339_v18 = vpop.permute.xlu1 %1338  ;;  %v1378_v6 = vadd.f32 %v1377_v36, %v1376_v62 }
 0x721   :  { %vm1343_vm3 = vcmp.eq.s32.totalorder %v1336_v37, %v1339_v18 }
 0x7a1   :  { %v1053_v30 = vpop.f32.mrf.mxu3 }
 0x7a9   :  { %v1055_v31 = vpop.f32.mrf.mxu3 }
 0x7aa   :  { %v1058_v40 = vpack.c.bf16 %v1055_v31, %v1053_v30 }
 0x7ac   :  { %1209 = vmatmul.bf16.vlgmr.msra.gmra.mxu3 %v1058_v40 }
 0x82f   :  { %v1210_v50 = vpop.f32.mrf.mxu3 }
 0x830   :  { %v1211_v51 = vadd.f32 %v1210_v50, %v1148_v47 }
 0x832   :  { %v1219_v55 = vadd.f32 %v1748_v52, %v1211_v51 }
 0x834   :  { %1828 = vtanh.f32 %v1219_v55 }
 0x837   :  { %v1212_v56 = vpop.f32.mrf.mxu3 }
 0x838   :  { %v1213_v59 = vadd.f32 %v1212_v56, %v1150_v54 }
 0x83a   :  { %v1220_v60 = vadd.f32 %v1748_v52, %v1213_v59  ;;  %v1829_v61 = vpop.eup %1828 }
 0x83c   :  { %1830 = vtanh.f32 %v1220_v60 }
 0x842   :  { %v1831_v63 = vpop.eup %1830 }
 0x843   :  { %v1223_v0 = vpack.c.bf16 %v1831_v63, %v1829_v61 }
 0x845   :  { %1300 = vmatmul.bf16.vlgmr.msra.gmra.mxu0 %v1223_v0 }
 0x8c2   :  { %v1301_v8 = vpop.f32.mrf.mxu0 }
 0x8c3   :  { %v1302_v9 = vadd.f32 %v1749_v1, %v1301_v8 }
 0x8c5   :  { %v1306_v12 = vpack.c.bf16 %v1302_v9, %v1302_v9  ;;  %v1345_v26 = vsel %vm1343_vm3, %v1302_v9, 0.0 }
 0x8c7   :  { %1308 = vst [vmem:[%s2526_s13] sm:$0xf] %v1306_v12 }
 0x8ca   :  { %v1303_v15 = vpop.f32.mrf.mxu0 }
 0x8cb   :  { %v1304_v16 = vadd.f32 %v1749_v1, %v1303_v15 }
 0x8cd   :  { %v1307_v17 = vpack.c.bf16 %v1304_v16, %v1304_v16  ;;  %v1313_v20 = vsel %vm1312_vm2, %v1304_v16, -inf  ;;  %v1346_v39 = vsel %vm1344_vm4, %v1304_v16, 0.0 }
 0x8ce   :  { %1314 = vmax.xlane.f32.xlu2 %v1313_v20  ;;  %v1349_v35 = vsel %vm1312_vm2, %v1346_v39, 0.0 }
 0x8cf   :  { %1309 = vst [vmem:[%s2526_s13 + $0x4] sm:$0x7] %v1307_v17 }
 0x8d6   :  { %1310 = vmax.xlane.f32.xlu2 %v1302_v9 }
 0x941   :  { %v1315_v21 = vpop.xlane.xlu2 %1314 }
 0x942   :  { %v1317_v25 = vsub.f32 %v1304_v16, %v1315_v21 }
 0x944   :  { %v1320_v28 = vmul.f32 1.442695, %v1317_v25 }
 0x949   :  { %v1311_v14 = vpop.xlane.xlu2 %1310 }
 0x94a   :  { %v1316_v24 = vsub.f32 %v1302_v9, %v1311_v14 }
 0x94c   :  { %v1318_v27 = vmul.f32 1.442695, %v1316_v24 }
 0x94e   :  { %1832 = vpow2.f32 %v1318_v27 }
 0x94f   :  { %1834 = vpow2.f32 %v1320_v28 }
 0x954   :  { %v1833_v4 = vpop.eup %1832 }
 0x955   :  { %1322 = vadd.xlane.f32.xlu2 %v1833_v4  ;;  %v1835_v32 = vpop.eup %1834 }
 0x956   :  { %v1324_v34 = vsel %vm1312_vm2, %v1835_v32, 0.0 }
 0x95d   :  { %1325 = vadd.xlane.f32.xlu2 %v1324_v34 }
 0x965   :  { %1347 = vadd.xlane.f32.xlu2 %v1345_v26 }
 0x96d   :  { %1350 = vadd.xlane.f32.xlu2 %v1349_v35 }
 0x975   :  { %1379 = vadd.xlane.f32.xlu2 %v1378_v6 }
 0x9c8   :  { %v1323_v43 = vpop.xlane.xlu2 %1322 }
 0x9c9   :  { %1836 = vlog2.f32 %v1323_v43 }
 0x9cf   :  { %v1837_v23 = vpop.eup %1836 }
 0x9d0   :  { %v1326_v13 = vpop.xlane.xlu2 %1325  ;;  %v1328_v46 = vmul.f32 0.6931472, %v1837_v23 }
 0x9d1   :  { %1838 = vlog2.f32 %v1326_v13 }
 0x9d2   :  { %v1331_v10 = vadd.f32 %v1328_v46, %v1311_v14 }
 0x9d7   :  { %v1839_v42 = vpop.eup %1838 }
 0x9d8   :  { %v1348_v3 = vpop.xlane.xlu2 %1347  ;;  %v1330_v7 = vmul.f32 0.6931472, %v1839_v42 }
 0x9d9   :  { %v1358_v11 = vsub.f32 %v1331_v10, %v1348_v3 }
 0x9da   :  { %v1332_v19 = vadd.f32 %v1330_v7, %v1315_v21 }
 0x9db   :  { %v1360_v30 = vmul.f32 %v1676_v53, %v1358_v11 }
 0x9dd   :  { %v1363_v44 = vsel %vm1362_vm7, %v1360_v30, 0.0 }
 0x9e0   :  { %v1351_v22 = vpop.xlane.xlu2 %1350 }
 0x9e1   :  { %v1359_v31 = vsub.f32 %v1332_v19, %v1351_v22 }
 0x9e3   :  { %v1361_v40 = vmul.f32 %v1677_v45, %v1359_v31 }
 0x9e5   :  { %v1365_v48 = vsel %vm1364_vm8, %v1361_v40, 0.0 }
 0x9e6   :  { %v1366_v49 = vadd.f32 %v1365_v48, %v1363_v44 }
 0x9e8   :  { %1367 = vadd.xlane.f32.xlu1 %v1366_v49  ;;  %v1380_v57 = vpop.xlane.xlu2 %1379 }
 0x9e9   :  { %v1381_v58 = vrot.slane %v1380_v57, 4 }
 0x9eb   :  { %v1382_v2 = vadd.f32 %v1381_v58, %v1380_v57 }
 0x9ed   :  { %v1383_v5 = vrot.slane %v1382_v2, 2 }
 0x9ef   :  { %v1384_v51 = vadd.f32 %v1383_v5, %v1382_v2 }
 0x9f1   :  { %v1385_v55 = vrot.slane %v1384_v51, 1 }
 0x9f3   :  { %v1386_v60 = vadd.f32 %v1385_v55, %v1384_v51 }
 0xa5b   :  { %v1368_v33 = vpop.xlane.xlu1 %1367 }
 0xa5c   :  { %v1369_v47 = vrot.slane %v1368_v33, 4 }
 0xa5e   :  { %v1370_v50 = vadd.f32 %v1369_v47, %v1368_v33 }
 0xa60   :  { %v1371_v52 = vrot.slane %v1370_v50, 2 }
 0xa62   :  { %v1372_v54 = vadd.f32 %v1371_v52, %v1370_v50 }
 0xa64   :  { %v1373_v56 = vrot.slane %v1372_v54, 1 }
 0xa66   :  { %v1374_v59 = vadd.f32 %v1373_v56, %v1372_v54 }
 0xa68   :  { %1735 = vpush %v1374_v59 }
 0xa69   :  { %1737 = vpush %v1386_v60 }
 0xa99   :  { %s1736_s12 = spop %1735 }
 0xa9a   :  { %s1738_s13 = spop %1737 }
 0xa9b   :  { %s1388_s17 = smax.f32 %s1858_s6, %s1738_s13 }
 0xa9c   :  { %v1389_v61 = vstv %s1388_s17 }
 0xa9d   :  { %1840 = vrcp.f32 %v1389_v61  ;;  %v1401_v8 = vand.u32 2147483648, %v1389_v61  ;;  %v1399_v12 = vand.u32 2147483647, %v1389_v61  ;;  %vm1395_vm10 = vweird.f32 %v1389_v61 }
 0xa9f   :  { %v1402_v16 = vor.u32 1.1754944e-38, %v1401_v8  ;;  %vm1400_vm12 = vcmp.eq.f32.partialorder %v1399_v12, 8.507059e+37 }
 0xaa3   :  { %v1841_v63 = vpop.eup %1840 }
 0xaa4   :  { %v1391_v0 = vmul.f32 %v1841_v63, %v1389_v61  ;;  %vm1396_vm9 = vweird.f32 %v1841_v63 }
 0xaa5   :  { %vm1397_vm11 = vmor %vm1395_vm10, %vm1396_vm9 }
 0xaa6   :  { %v1392_v1 = vsub.f32 1.0, %v1391_v0 }
 0xaa8   :  { %v1393_v9 = vmul.f32 %v1841_v63, %v1392_v1 }
 0xaaa   :  { %v1394_v15 = vadd.f32 %v1841_v63, %v1393_v9 }
 0xaac   :  { %v1398_v17 = vsel %vm1397_vm11, %v1841_v63, %v1394_v15 }
 0xaad   :  { %v1403_v20 = vsel %vm1400_vm12, %v1402_v16, %v1398_v17 }
 0xaae   :  { %1739 = vpush %v1403_v20 }
 0xadf   :  { %s1740_s21 = spop %1739 }
 0xae0   :  { %s1405_s8 = smul.f32 %s1740_s21, %s1736_s12 }
 0xae2   :  { %1407 = sst [smem:[#allocation3]] %s1405_s8 }
 0xae3   :  { %1418 = dma.smem_to_hbm %s1859_s22, 16, %s1416_s20, [#allocation4]  }
 0xae4   :  { %1854 = dma.done.wait [#allocation4], 16  }
 0xae5   :  { %1855 = vsyncadd [#allocation4], 4294967280 }
 0xae6   :  { %1425 = sfence }
 0xae7   :  { %1426 = vsyncpa [#allocation4], 1 }

// kernel: encoder_decoder_forward.2
= control target key start
LH: loop header
LB: loop body
LE: loop exit
PB: predicated region body
PF: predicated region fallthrough
CT: control target
= control target key end

     0   :  { %v1930_v3 = vmov 0   ;;  %s1931_s9 = smov 64   ;;  %vm306_vm8 = vcmask 517120   ;;  %vm97_vm9 = vcmask 523264   ;;  %s2611_s3 = inlined_call_operand.vmem [shape: bf16[64,192], index: 3, kind: input, shape index: {}]   ;;  %s2612_s5 = inlined_call_operand.vmem [shape: bf16[64,192], index: 5, kind: input, shape index: {}]   ;;  %s2613_s4 = inlined_call_operand.vmem [shape: f32[1,64], index: 4, kind: input, shape index: {}]   ;;  %s2614_s6 = inlined_call_operand.vmem [shape: f32[1,64], index: 6, kind: input, shape index: {}]   ;;  %s2615_s0 = inlined_call_operand.vmem [shape: f32[8,2,192], index: 0, kind: input, shape index: {}]   ;;  %s2616_s1 = inlined_call_operand.vmem [shape: f32[8,2,192], index: 1, kind: input, shape index: {}]   ;;  %s2617_s2 = inlined_call_operand.vmem [shape: f32[8,2,1], index: 2, kind: input, shape index: {}]   ;;  %s2618_s8 = inlined_call_operand.vmem [shape: f32[2,128], index: 8, kind: output, shape index: {1}]   ;;  %s2619_s7 = inlined_call_operand.vmem [shape: bf16[16,128], index: 7, kind: output, shape index: {0}]  }
   0x1   :  { %v1690_v0 = vld [vmem:[%s2611_s3 + $0x30] sm:$0xf]  ;;  %v1806_v1 = vld [vmem:[%s2611_s3 + $0x34] sm:$0xf0]  ;;  %1822 = vset.pattern.permute.xlu1 %v1930_v3  ;;  %1823 = vset.pattern.permute.xlu2 %v1930_v3  ;;  %v1682_v6 = vld [vmem:[%s2611_s3 + $0x20] sm:$0xf] }
   0x2   :  { %v1724_v2 = vld [vmem:[%s2612_s5 + $0x30] sm:$0xf]  ;;  %v1988_v4 = vor.u32 %v1806_v1, %v1690_v0  ;;  %v1814_v5 = vld [vmem:[%s2612_s5 + $0x34] sm:$0xf0]  ;;  %v1804_v7 = vld [vmem:[%s2611_s3 + $0x24] sm:$0xf0]  ;;  %1824 = vset.pattern.permute.xlu0 %v1930_v3 }
   0x3   :  { %v2000_v8 = vor.u32 %v1814_v5, %v1724_v2  ;;  %v1716_v9 = vld [vmem:[%s2612_s5 + $0x20] sm:$0xf]  ;;  %v1812_v10 = vld [vmem:[%s2612_s5 + $0x24] sm:$0xf0]  ;;  %v2009_v11 = vor.u32 %v1804_v7, %v1682_v6  ;;  %v1674_v13 = vld [vmem:[%s2611_s3 + $0x10] sm:$0xf] }
   0x4   :  { %105 = vmatpush.bf16.msra.mxu0 %v1988_v4  ;;  %v2012_v12 = vor.u32 %v1812_v10, %v1716_v9  ;;  %v1802_v14 = vld [vmem:[%s2611_s3 + $0x14] sm:$0xf0]  ;;  %v1708_v15 = vld [vmem:[%s2612_s5 + $0x10] sm:$0xf]  ;;  %v1805_v17 = vld [vmem:[%s2611_s3 + $0x34] sm:$0xf] }
   0x5   :  { %208 = vmatpush.bf16.msra.mxu2 %v2000_v8  ;;  %v1810_v16 = vld [vmem:[%s2612_s5 + $0x14] sm:$0xf0]  ;;  %v1692_v18 = vld [vmem:[%s2611_s3 + $0x38] sm:$0xf0]  ;;  %v1813_v20 = vld [vmem:[%s2612_s5 + $0x34] sm:$0xf]  ;;  %v2044_v23 = vor.u32 %v1802_v14, %v1674_v13 }
   0x6   :  { %v2032_v19 = vor.u32 %v1805_v17, %v1692_v18  ;;  %v1726_v21 = vld [vmem:[%s2612_s5 + $0x38] sm:$0xf0]  ;;  %v1803_v22 = vld [vmem:[%s2611_s3 + $0x24] sm:$0xf]  ;;  %v1684_v25 = vld [vmem:[%s2611_s3 + $0x28] sm:$0xf0]  ;;  %v2058_v28 = vor.u32 %v1810_v16, %v1708_v15 }
   0x7   :  { %v2046_v24 = vor.u32 %v1813_v20, %v1726_v21  ;;  %v1811_v26 = vld [vmem:[%s2612_s5 + $0x24] sm:$0xf]  ;;  %v1718_v27 = vld [vmem:[%s2612_s5 + $0x28] sm:$0xf0]  ;;  %v1666_v29 = vld [vmem:[%s2611_s3] sm:$0xf]  ;;  %v2070_v32 = vor.u32 %v1803_v22, %v1684_v25 }
   0x8   :  { %106 = vmatpush.bf16.msra.mxu0 %v2009_v11  ;;  %v1800_v30 = vld [vmem:[%s2611_s3 + $0x4] sm:$0xf0]  ;;  %v1700_v31 = vld [vmem:[%s2612_s5] sm:$0xf]  ;;  %118 = vmatpush.bf16.msra.mxu1 %v2032_v19  ;;  %v2076_v34 = vor.u32 %v1811_v26, %v1718_v27  ;;  %v1801_v35 = vld [vmem:[%s2611_s3 + $0x14] sm:$0xf] }
   0x9   :  { %209 = vmatpush.bf16.msra.mxu2 %v2012_v12  ;;  %v1808_v33 = vld [vmem:[%s2612_s5 + $0x4] sm:$0xf0]  ;;  %221 = vmatpush.bf16.msra.mxu3 %v2046_v24  ;;  %v1676_v36 = vld [vmem:[%s2611_s3 + $0x18] sm:$0xf0]  ;;  %v1809_v37 = vld [vmem:[%s2612_s5 + $0x14] sm:$0xf]  ;;  %v2091_v39 = vor.u32 %v1800_v30, %v1666_v29 }
   0xa   :  { %v1710_v38 = vld [vmem:[%s2612_s5 + $0x18] sm:$0xf0]  ;;  %v2094_v40 = vor.u32 %v1808_v33, %v1700_v31  ;;  %v2097_v41 = vor.u32 %v1801_v35, %v1676_v36  ;;  %v1799_v43 = vld [vmem:[%s2611_s3 + $0x4] sm:$0xf]  ;;  %v1668_v44 = vld [vmem:[%s2611_s3 + $0x8] sm:$0xf0] }
   0xb   :  { %v2100_v42 = vor.u32 %v1809_v37, %v1710_v38  ;;  %v1807_v45 = vld [vmem:[%s2612_s5 + $0x4] sm:$0xf]  ;;  %v1702_v46 = vld [vmem:[%s2612_s5 + $0x8] sm:$0xf0]  ;;  %v2117_v47 = vor.u32 %v1799_v43, %v1668_v44  ;;  %v56_v49 = vld [vmem:[%s2615_s0] sm:$0xf] }
   0xc   :  { %107 = vmatpush.bf16.msra.mxu0 %v2044_v23  ;;  %119 = vmatpush.bf16.msra.mxu1 %v2070_v32  ;;  %v2120_v48 = vor.u32 %v1807_v45, %v1702_v46  ;;  %v1697_v53 = vld [vmem:[%s2616_s1 + $0x1c] sm:$0xf]  ;;  %v2169_v6 = vld [vmem:[%s2613_s4] ss:$0 sm:$0xff]  ;;  %v150_v20 = vrot.slane %v56_v49, 2 }
   0xd   :  { %210 = vmatpush.bf16.msra.mxu2 %v2058_v28  ;;  %222 = vmatpush.bf16.msra.mxu3 %v2076_v34  ;;  %v2175_v25 = vld [vmem:[%s2614_s6] ss:$0 sm:$0xff]  ;;  %v253_v38 = vrot.slane %v1697_v53, 2 }
  0x10   :  { %108 = vmatpush.bf16.msra.mxu0 %v2091_v39  ;;  %120 = vmatpush.bf16.msra.mxu1 %v2097_v41 }
  0x11   :  { %211 = vmatpush.bf16.msra.mxu2 %v2094_v40  ;;  %223 = vmatpush.bf16.msra.mxu3 %v2100_v42 }
  0x13   :  { %109 = vmatmul.bf16.vlgmr.msra.gmra.mxu0 %v1930_v3 }
  0x14   :  { %324 = vmatpush.bf16.msrb.mxu0 %v1988_v4  ;;  %212 = vmatmul.bf16.vlgmr.msra.gmra.mxu2 %v1930_v3 }
  0x15   :  { %395 = vmatpush.bf16.msrb.mxu2 %v2000_v8  ;;  %121 = vmatpush.bf16.msra.mxu1 %v2117_v47 }
  0x16   :  { %224 = vmatpush.bf16.msra.mxu3 %v2120_v48 }
  0x18   :  { %325 = vmatpush.bf16.msrb.mxu0 %v2009_v11  ;;  %122 = vmatmul.bf16.vlgmr.msra.gmra.mxu1 %v1930_v3 }
  0x19   :  { %337 = vmatpush.bf16.msrb.mxu1 %v2032_v19  ;;  %396 = vmatpush.bf16.msrb.mxu2 %v2012_v12 }
  0x1a   :  { %408 = vmatpush.bf16.msrb.mxu3 %v2046_v24 }
  0x1b   :  { %225 = vmatmul.bf16.vlgmr.msra.gmra.mxu3 %v1930_v3 }
  0x1c   :  { %326 = vmatpush.bf16.msrb.mxu0 %v2044_v23 }
  0x1d   :  { %338 = vmatpush.bf16.msrb.mxu1 %v2070_v32  ;;  %397 = vmatpush.bf16.msrb.mxu2 %v2058_v28 }
  0x1e   :  { %409 = vmatpush.bf16.msrb.mxu3 %v2076_v34 }
  0x20   :  { %327 = vmatpush.bf16.msrb.mxu0 %v2091_v39 }
  0x21   :  { %339 = vmatpush.bf16.msrb.mxu1 %v2097_v41  ;;  %398 = vmatpush.bf16.msrb.mxu2 %v2094_v40 }
  0x22   :  { %410 = vmatpush.bf16.msrb.mxu3 %v2100_v42 }
  0x24   :  { %514 = vmatpush.bf16.msra.mxu0 %v1988_v4 }
  0x25   :  { %585 = vmatpush.bf16.msra.mxu2 %v2000_v8  ;;  %340 = vmatpush.bf16.msrb.mxu1 %v2117_v47 }
  0x26   :  { %411 = vmatpush.bf16.msrb.mxu3 %v2120_v48 }
  0x28   :  { %515 = vmatpush.bf16.msra.mxu0 %v2009_v11 }
  0x29   :  { %527 = vmatpush.bf16.msra.mxu1 %v2032_v19  ;;  %586 = vmatpush.bf16.msra.mxu2 %v2012_v12 }
  0x2a   :  { %598 = vmatpush.bf16.msra.mxu3 %v2046_v24 }
  0x2c   :  { %516 = vmatpush.bf16.msra.mxu0 %v2044_v23 }
  0x2d   :  { %528 = vmatpush.bf16.msra.mxu1 %v2070_v32  ;;  %587 = vmatpush.bf16.msra.mxu2 %v2058_v28 }
  0x2e   :  { %599 = vmatpush.bf16.msra.mxu3 %v2076_v34 }
  0x30   :  { %517 = vmatpush.bf16.msra.mxu0 %v2091_v39 }
  0x31   :  { %529 = vmatpush.bf16.msra.mxu1 %v2097_v41  ;;  %588 = vmatpush.bf16.msra.mxu2 %v2094_v40 }
  0x32   :  { %600 = vmatpush.bf16.msra.mxu3 %v2100_v42 }
  0x35   :  { %530 = vmatpush.bf16.msra.mxu1 %v2117_v47 }
  0x36   :  { %601 = vmatpush.bf16.msra.mxu3 %v2120_v48 }
  0x90   :  { %v110_v50 = vpop.f32.mrf.mxu0 }
  0x91   :  { %v127_v51 = vadd.f32 %v110_v50, %v56_v49 }
  0x93   :  { %v1696_v52 = vmul.f32 -1.442695, %v127_v51  ;;  %v53_v51 = vld [vmem:[%s2617_s2] sm:$0x3] }
  0x94   :  { %267 = vperm.xlu1 %1822, %v53_v51  }
  0x95   :  { %1832 = vpow2.f32 %v1696_v52  ;;  %v123_v54 = vpop.f32.mrf.mxu1  ;;  %v277_v52 = vsub.f32 1.0, %v53_v51 }
  0x96   :  { %v147_v16 = vadd.f32 %v2169_v6, %v123_v54 }
  0x97   :  { %v213_v55 = vpop.f32.mrf.mxu2  ;;  %280 = vperm.xlu2 %1823, %v277_v52  }
  0x98   :  { %v230_v56 = vadd.f32 %v1697_v53, %v213_v55  ;;  %v112_v57 = vpop.f32.mrf.mxu0  ;;  %v1663_v53 = vld [vmem:[%s2617_s2 + $0xe] sm:$0x3] }
  0x9a   :  { %v1730_v58 = vmul.f32 -1.442695, %v230_v56 }
  0x9b   :  { %v1833_v59 = vpop.eup %1832 }
  0x9c   :  { %v131_v60 = vadd.f32 1.0, %v1833_v59  ;;  %1834 = vpow2.f32 %v1730_v58 }
  0x9d   :  { %v125_v62 = vpop.f32.mrf.mxu1 }
  0x9e   :  { %v226_v61 = vpop.f32.mrf.mxu3  ;;  %1836 = vrcp.f32 %v131_v60  ;;  %v143_v9 = vand.u32 2147483648, %v131_v60  ;;  %v141_v13 = vand.u32 2147483647, %v131_v60  ;;  %vm137_vm1 = vweird.f32 %v131_v60 }
  0x9f   :  { %v215_v63 = vpop.f32.mrf.mxu2  ;;  %v250_v36 = vadd.f32 %v2175_v25, %v226_v61  ;;  %287 = vperm.xlu2 %1823, %v1663_v53  }
  0xa0   :  { %v144_v18 = vor.u32 1.1754944e-38, %v143_v9  ;;  %vm142_vm3 = vcmp.eq.f32.partialorder %v141_v13, 8.507059e+37 }
  0xa2   :  { %v1835_v0 = vpop.eup %1834 }
  0xa3   :  { %v234_v1 = vadd.f32 1.0, %v1835_v0 }
  0xa4   :  { %v1837_v2 = vpop.eup %1836 }
  0xa5   :  { %v133_v5 = vmul.f32 %v1837_v2, %v131_v60  ;;  %1838 = vrcp.f32 %v234_v1  ;;  %vm138_vm0 = vweird.f32 %v1837_v2  ;;  %v246_v29 = vand.u32 2147483648, %v234_v1 }
  0xa6   :  { %v228_v3 = vpop.f32.mrf.mxu3  ;;  %vm139_vm2 = vmor %vm137_vm1, %vm138_vm0  ;;  %v244_v31 = vand.u32 2147483647, %v234_v1  ;;  %vm240_vm5 = vweird.f32 %v234_v1 }
  0xa7   :  { %v134_v7 = vsub.f32 1.0, %v133_v5  ;;  %v247_v37 = vor.u32 1.1754944e-38, %v246_v29 }
  0xa8   :  { %vm245_vm7 = vcmp.eq.f32.partialorder %v244_v31, 8.507059e+37 }
  0xa9   :  { %v135_v10 = vmul.f32 %v1837_v2, %v134_v7 }
  0xab   :  { %v1839_v14 = vpop.eup %1838  ;;  %v136_v15 = vadd.f32 %v1837_v2, %v135_v10 }
  0xac   :  { %v236_v17 = vmul.f32 %v1839_v14, %v234_v1  ;;  %vm241_vm4 = vweird.f32 %v1839_v14  ;;  %v297_v1 = vsub.f32 1.0, %v1663_v53 }
  0xad   :  { %v140_v21 = vsel %vm139_vm2, %v1837_v2, %v136_v15  ;;  %vm242_vm6 = vmor %vm240_vm5, %vm241_vm4 }
  0xae   :  { %v145_v22 = vsel %vm142_vm3, %v144_v18, %v140_v21  ;;  %v237_v26 = vsub.f32 1.0, %v236_v17 }
  0xaf   :  { %v148_v27 = vmul.f32 %v147_v16, %v145_v22  ;;  %v154_v54 = vsub.f32 1.0, %v145_v22  ;;  %v160_v56 = vmul.f32 0.0, %v145_v22  ;;  %v2203_v22 = vld [vmem:[%s2617_s2 + $0x2] sm:$0x3] }
  0xb0   :  { %v238_v30 = vmul.f32 %v1839_v14, %v237_v26 }
  0xb1   :  { %v152_v33 = vadd.f32 %v150_v20, %v148_v27 }
  0xb2   :  { %v239_v35 = vadd.f32 %v1839_v14, %v238_v30  ;;  %v2216_v30 = vld [vmem:[%s2617_s2 + $0xc] sm:$0x3] }
  0xb3   :  { %1840 = vtanh.f32 %v152_v33  ;;  %v488_v31 = vsub.f32 1.0, %v2216_v30  ;;  %v1733_v33 = vld [vmem:[%s2615_s0 + $0x4] sm:$0xf] }
  0xb4   :  { %v243_v43 = vsel %vm242_vm6, %v1839_v14, %v239_v35 }
  0xb5   :  { %v248_v44 = vsel %vm245_vm7, %v247_v37, %v243_v43 }
  0xb6   :  { %v251_v45 = vmul.f32 %v250_v36, %v248_v44  ;;  %v257_v59 = vsub.f32 1.0, %v248_v44  ;;  %v263_v61 = vmul.f32 0.0, %v248_v44 }
  0xb8   :  { %v255_v46 = vadd.f32 %v253_v38, %v251_v45 }
  0xb9   :  { %v1841_v49 = vpop.eup %1840 }
  0xba   :  { %156 = vrot.lane.b32.xlu0 %v1841_v49, %s1931_s9  ;;  %1842 = vtanh.f32 %v255_v46  ;;  %v1737_v49 = vld [vmem:[%s2616_s1 + $0x18] sm:$0xf] }
  0xc0   :  { %v1843_v50 = vpop.eup %1842 }
  0xc2   :  { %259 = vrot.lane.b32.xlu0 %v1843_v50, %s1931_s9 }
  0xf1   :  { %v281_v5 = vpop.permute.xlu2 %280 }
  0xf2   :  { %v283_v7 = vmul.f32 0.0, %v281_v5 }
  0xf9   :  { %v288_v16 = vpop.permute.xlu2 %287 }
 0x106   :  { %v268_v3 = vpop.permute.xlu1 %267 }
 0x12c   :  { %v157_v55 = vpop.permute.xlu0 %156 }
 0x12d   :  { %v159_v57 = vmul.f32 %v157_v55, %v154_v54 }
 0x12f   :  { %v161_v58 = vadd.f32 %v160_v56, %v159_v57 }
 0x131   :  { %271 = vst [vmem:[#allocation1] ss:$4 sm:$0xff] %v161_v58 }
 0x134   :  { %v260_v60 = vpop.permute.xlu0 %259 }
 0x135   :  { %v262_v62 = vmul.f32 %v260_v60, %v257_v59 }
 0x137   :  { %v264_v63 = vadd.f32 %v263_v61, %v262_v62 }
 0x138   :  { %v272_v0 = vld.sshfl [vmem:[#allocation1] sm:$0xff pattern:$0x73625140] }
 0x139   :  { %291 = vst [vmem:[#allocation1] ss:$4 sm:$0xff] %v264_v63  ;;  %273 = vrot.lane.b32.xlu1 %v272_v0, %s1931_s9 }
 0x140   :  { %v292_v2 = vld.sshfl [vmem:[#allocation1] sm:$0xff pattern:$0x73625140] }
 0x141   :  { %300 = vperm.xlu1 %1822, %v297_v1   ;;  %293 = vrot.lane.b32.xlu0 %v292_v2, %s1931_s9  ;;  %v369_v2 = vrot.slane %v1733_v33, 2 }
 0x1ab   :  { %v274_v9 = vpop.permute.xlu1 %273 }
 0x1ac   :  { %v276_v10 = vmul.f32 %v274_v9, %v268_v3 }
 0x1ae   :  { %v2188_v13 = vadd.f32 %v283_v7, %v276_v10 }
 0x1b0   :  { %v305_v14 = vmul.f32 %v2188_v13, %v268_v3  ;;  %380 = vrot.lane.b32.xlu0 %v2188_v13, %s1931_s9  ;;  %v316_v15 = vpack.c.bf16 %v2188_v13, %v2188_v13 }
 0x1b2   :  { %307 = vst.msk [vmem:[#allocation2] sm:$0x3] %vm306_vm8, %v305_v14  ;;  %1734 = vmatmul.msk.bf16.vlgmr.msrb.gmra.mxu0 %vm97_vm9, %v316_v15  ;;  %1735 = vmatmul.msk.bf16.vlgmr.msrb.gmra.mxu1 %vm97_vm9, %v316_v15 }
 0x1b3   :  { %v301_v17 = vpop.permute.xlu1 %300  ;;  %v294_v18 = vpop.permute.xlu0 %293  ;;  %704 = vmatpush.bf16.msrb.mxu0 %v1988_v4  ;;  %717 = vmatpush.bf16.msrb.mxu1 %v2032_v19 }
 0x1b4   :  { %v303_v20 = vmul.f32 0.0, %v301_v17  ;;  %v296_v21 = vmul.f32 %v294_v18, %v288_v16 }
 0x1b6   :  { %v2205_v26 = vadd.f32 %v303_v20, %v296_v21 }
 0x1b7   :  { %705 = vmatpush.bf16.msrb.mxu0 %v2009_v11  ;;  %718 = vmatpush.bf16.msrb.mxu1 %v2070_v32 }
 0x1b8   :  { %v308_v27 = vmul.f32 %v2205_v26, %v288_v16  ;;  %458 = vperm.xlu0 %1824, %v2203_v22   ;;  %v387_v29 = vpack.c.bf16 %v2205_v26, %v2205_v26 }
 0x1ba   :  { %309 = vst.msk [vmem:[#allocation3 + $0xe] sm:$0x3] %vm306_vm8, %v308_v27  ;;  %1738 = vmatmul.msk.bf16.vlgmr.msrb.gmra.mxu2 %vm97_vm9, %v387_v29  ;;  %1739 = vmatmul.msk.bf16.vlgmr.msrb.gmra.mxu3 %vm97_vm9, %v387_v29 }
 0x1bb   :  { %706 = vmatpush.bf16.msrb.mxu0 %v2044_v23  ;;  %719 = vmatpush.bf16.msrb.mxu1 %v2097_v41 }
 0x1bc   :  { %775 = vmatpush.bf16.msrb.mxu2 %v2000_v8  ;;  %788 = vmatpush.bf16.msrb.mxu3 %v2046_v24 }
 0x1bf   :  { %707 = vmatpush.bf16.msrb.mxu0 %v2091_v39  ;;  %720 = vmatpush.bf16.msrb.mxu1 %v2117_v47 }
 0x1c0   :  { %491 = vperm.xlu0 %1824, %v488_v31   ;;  %776 = vmatpush.bf16.msrb.mxu2 %v2012_v12  ;;  %v440_v31 = vrot.slane %v1737_v49, 2 }
 0x1c1   :  { %789 = vmatpush.bf16.msrb.mxu3 %v2076_v34 }
 0x1c4   :  { %777 = vmatpush.bf16.msrb.mxu2 %v2058_v28 }
 0x1c5   :  { %790 = vmatpush.bf16.msrb.mxu3 %v2100_v42 }
 0x1c8   :  { %778 = vmatpush.bf16.msrb.mxu2 %v2094_v40 }
 0x1c9   :  { %791 = vmatpush.bf16.msrb.mxu3 %v2120_v48 }
 0x22f   :  { %v329_v35 = vpop.f32.mrf.mxu0  ;;  %v342_v36 = vpop.f32.mrf.mxu1 }
 0x230   :  { %v346_v37 = vadd.f32 %v1733_v33, %v329_v35  ;;  %v366_v5 = vadd.f32 %v2169_v6, %v342_v36 }
 0x232   :  { %v1736_v38 = vmul.f32 -1.442695, %v346_v37 }
 0x234   :  { %1844 = vpow2.f32 %v1736_v38 }
 0x237   :  { %v331_v43 = vpop.f32.mrf.mxu0  ;;  %v344_v44 = vpop.f32.mrf.mxu1 }
 0x238   :  { %v468_v43 = vsub.f32 1.0, %v2203_v22 }
 0x23a   :  { %v1845_v45 = vpop.eup %1844 }
 0x23b   :  { %v350_v46 = vadd.f32 1.0, %v1845_v45 }
 0x23d   :  { %1846 = vrcp.f32 %v350_v46  ;;  %v400_v50 = vpop.f32.mrf.mxu2  ;;  %v413_v51 = vpop.f32.mrf.mxu3  ;;  %v362_v59 = vand.u32 2147483648, %v350_v46  ;;  %v360_v62 = vand.u32 2147483647, %v350_v46  ;;  %vm356_vm11 = vweird.f32 %v350_v46 }
 0x23e   :  { %v417_v52 = vadd.f32 %v1737_v49, %v400_v50  ;;  %v437_v35 = vadd.f32 %v2175_v25, %v413_v51 }
 0x23f   :  { %v363_v1 = vor.u32 1.1754944e-38, %v362_v59  ;;  %vm361_vm13 = vcmp.eq.f32.partialorder %v360_v62, 8.507059e+37 }
 0x240   :  { %v1740_v53 = vmul.f32 -1.442695, %v417_v52 }
 0x242   :  { %1848 = vpow2.f32 %v1740_v53 }
 0x243   :  { %v1847_v54 = vpop.eup %1846 }
 0x244   :  { %v352_v55 = vmul.f32 %v1847_v54, %v350_v46  ;;  %vm357_vm10 = vweird.f32 %v1847_v54  ;;  %v381_v46 = vpop.permute.xlu0 %380 }
 0x245   :  { %v402_v56 = vpop.f32.mrf.mxu2  ;;  %v415_v57 = vpop.f32.mrf.mxu3  ;;  %vm358_vm12 = vmor %vm356_vm11, %vm357_vm10 }
 0x246   :  { %v353_v58 = vsub.f32 1.0, %v352_v55 }
 0x248   :  { %v1849_v60 = vpop.eup %1848  ;;  %v354_v61 = vmul.f32 %v1847_v54, %v353_v58 }
 0x249   :  { %v421_v63 = vadd.f32 1.0, %v1849_v60 }
 0x24a   :  { %v355_v0 = vadd.f32 %v1847_v54, %v354_v61 }
 0x24b   :  { %1850 = vrcp.f32 %v421_v63  ;;  %v433_v17 = vand.u32 2147483648, %v421_v63  ;;  %v431_v20 = vand.u32 2147483647, %v421_v63  ;;  %vm427_vm15 = vweird.f32 %v421_v63 }
 0x24c   :  { %v359_v3 = vsel %vm358_vm12, %v1847_v54, %v355_v0  ;;  %v459_v61 = vpop.permute.xlu0 %458 }
 0x24d   :  { %v364_v7 = vsel %vm361_vm13, %v363_v1, %v359_v3  ;;  %v434_v29 = vor.u32 1.1754944e-38, %v433_v17  ;;  %vm432_vm1 = vcmp.eq.f32.partialorder %v431_v20, 8.507059e+37 }
 0x24e   :  { %v367_v9 = vmul.f32 %v366_v5, %v364_v7  ;;  %v373_v45 = vsub.f32 1.0, %v364_v7  ;;  %v383_v52 = vmul.f32 %v381_v46, %v364_v7 }
 0x250   :  { %v371_v10 = vadd.f32 %v369_v2, %v367_v9 }
 0x251   :  { %v1851_v14 = vpop.eup %1850 }
 0x252   :  { %1852 = vtanh.f32 %v371_v10  ;;  %v423_v15 = vmul.f32 %v1851_v14, %v421_v63  ;;  %vm428_vm14 = vweird.f32 %v1851_v14 }
 0x253   :  { %vm429_vm0 = vmor %vm427_vm15, %vm428_vm14 }
 0x254   :  { %v424_v16 = vsub.f32 1.0, %v423_v15  ;;  %v492_v3 = vpop.permute.xlu0 %491  ;;  %v2279_v15 = vld [vmem:[%s2617_s2 + $0xa] sm:$0x3] }
 0x255   :  { %v494_v9 = vmul.f32 %v492_v3, %v2205_v26 }
 0x256   :  { %v425_v18 = vmul.f32 %v1851_v14, %v424_v16 }
 0x258   :  { %v1853_v21 = vpop.eup %1852  ;;  %v426_v27 = vadd.f32 %v1851_v14, %v425_v18 }
 0x259   :  { %375 = vrot.lane.b32.xlu2 %v1853_v21, %s1931_s9 }
 0x25a   :  { %v430_v33 = vsel %vm429_vm0, %v1851_v14, %v426_v27 }
 0x25b   :  { %v435_v36 = vsel %vm432_vm1, %v434_v29, %v430_v33 }
 0x25c   :  { %v438_v37 = vmul.f32 %v437_v35, %v435_v36  ;;  %v444_v55 = vsub.f32 1.0, %v435_v36 }
 0x25e   :  { %v442_v38 = vadd.f32 %v440_v31, %v438_v37 }
 0x260   :  { %1854 = vtanh.f32 %v442_v38 }
 0x261   :  { %451 = vrot.lane.b32.xlu2 %v2205_v26, %s1931_s9  ;;  %v1743_v26 = vld [vmem:[%s2615_s0 + $0x8] sm:$0xf] }
 0x266   :  { %v1855_v44 = vpop.eup %1854 }
 0x267   :  { %446 = vrot.lane.b32.xlu1 %v1855_v44, %s1931_s9 }
 0x269   :  { %471 = vperm.xlu2 %1823, %v468_v43  }
 0x2b3   :  { %v376_v49 = vpop.permute.xlu2 %375 }
 0x2b4   :  { %v378_v50 = vmul.f32 %v376_v49, %v373_v45 }
 0x2b6   :  { %v384_v53 = vadd.f32 %v383_v52, %v378_v50 }
 0x2b8   :  { %462 = vst [vmem:[#allocation1] ss:$4 sm:$0xff] %v384_v53 }
 0x2bb   :  { %v452_v54 = vpop.permute.xlu2 %451 }
 0x2bc   :  { %v454_v22 = vmul.f32 %v452_v54, %v435_v36  ;;  %v1747_v36 = vld [vmem:[%s2616_s1 + $0x14] sm:$0xf] }
 0x2bf   :  { %v463_v51 = vld.sshfl [vmem:[#allocation1] sm:$0xff pattern:$0x73625140] }
 0x2c0   :  { %464 = vrot.lane.b32.xlu1 %v463_v51, %s1931_s9 }
 0x2c3   :  { %v472_v60 = vpop.permute.xlu2 %471 }
 0x2c4   :  { %v474_v63 = vmul.f32 %v472_v60, %v2188_v13  ;;  %v2266_v13 = vld [vmem:[%s2617_s2 + $0x4] sm:$0x3] }
 0x2c8   :  { %478 = vperm.xlu1 %1822, %v2216_v30  }
 0x2d9   :  { %v447_v56 = vpop.permute.xlu1 %446 }
 0x2da   :  { %v449_v57 = vmul.f32 %v447_v56, %v444_v55  ;;  %v559_v56 = vrot.slane %v1743_v26, 2 }
 0x2dc   :  { %v455_v58 = vadd.f32 %v454_v22, %v449_v57 }
 0x2de   :  { %482 = vst [vmem:[#allocation1] ss:$4 sm:$0xff] %v455_v58 }
 0x2e5   :  { %v483_v59 = vld.sshfl [vmem:[#allocation1] sm:$0xff pattern:$0x73625140] }
 0x2e6   :  { %484 = vrot.lane.b32.xlu2 %v483_v59, %s1931_s9 }
 0x332   :  { %v465_v62 = vpop.permute.xlu1 %464 }
 0x333   :  { %v467_v0 = vmul.f32 %v465_v62, %v459_v61 }
 0x335   :  { %v2251_v1 = vadd.f32 %v474_v63, %v467_v0 }
 0x337   :  { %v496_v30 = vmul.f32 %v2251_v1, %v459_v61  ;;  %v506_v2 = vpack.c.bf16 %v2251_v1, %v2251_v1  ;;  %570 = vrot.lane.b32.xlu2 %v2251_v1, %s1931_s9 }
 0x339   :  { %497 = vst.msk [vmem:[#allocation2 + $0x2] sm:$0x3] %vm306_vm8, %v496_v30  ;;  %1744 = vmatmul.msk.bf16.vlgmr.msra.gmra.mxu0 %vm97_vm9, %v506_v2  ;;  %1745 = vmatmul.msk.bf16.vlgmr.msra.gmra.mxu1 %vm97_vm9, %v506_v2 }
 0x33a   :  { %892 = vmatpush.bf16.msra.mxu0 %v1988_v4  ;;  %905 = vmatpush.bf16.msra.mxu1 %v2032_v19  ;;  %v479_v5 = vpop.permute.xlu1 %478 }
 0x33e   :  { %893 = vmatpush.bf16.msra.mxu0 %v2009_v11  ;;  %906 = vmatpush.bf16.msra.mxu1 %v2070_v32 }
 0x33f   :  { %648 = vperm.xlu2 %1823, %v2266_v13  }
 0x340   :  { %v485_v7 = vpop.permute.xlu2 %484 }
 0x341   :  { %v487_v10 = vmul.f32 %v485_v7, %v479_v5 }
 0x342   :  { %894 = vmatpush.bf16.msra.mxu0 %v2044_v23  ;;  %907 = vmatpush.bf16.msra.mxu1 %v2097_v41 }
 0x343   :  { %v2274_v14 = vadd.f32 %v494_v9, %v487_v10 }
 0x345   :  { %v498_v16 = vmul.f32 %v2274_v14, %v479_v5  ;;  %v577_v17 = vpack.c.bf16 %v2274_v14, %v2274_v14 }
 0x346   :  { %895 = vmatpush.bf16.msra.mxu0 %v2091_v39  ;;  %908 = vmatpush.bf16.msra.mxu1 %v2117_v47 }
 0x347   :  { %499 = vst.msk [vmem:[#allocation3 + $0xc] sm:$0x3] %vm306_vm8, %v498_v16  ;;  %668 = vperm.xlu2 %1823, %v2279_v15   ;;  %1748 = vmatmul.msk.bf16.vlgmr.msra.gmra.mxu2 %vm97_vm9, %v577_v17 }
 0x348   :  { %1749 = vmatmul.msk.bf16.vlgmr.msra.gmra.mxu3 %vm97_vm9, %v577_v17  ;;  %963 = vmatpush.bf16.msra.mxu2 %v2000_v8  ;;  %v630_v17 = vrot.slane %v1747_v36, 2 }
 0x349   :  { %976 = vmatpush.bf16.msra.mxu3 %v2046_v24 }
 0x34c   :  { %964 = vmatpush.bf16.msra.mxu2 %v2012_v12 }
 0x34d   :  { %977 = vmatpush.bf16.msra.mxu3 %v2076_v34 }
 0x350   :  { %965 = vmatpush.bf16.msra.mxu2 %v2058_v28 }
 0x351   :  { %978 = vmatpush.bf16.msra.mxu3 %v2100_v42 }
 0x354   :  { %966 = vmatpush.bf16.msra.mxu2 %v2094_v40 }
 0x355   :  { %979 = vmatpush.bf16.msra.mxu3 %v2120_v48 }
 0x3b6   :  { %v519_v18 = vpop.f32.mrf.mxu0  ;;  %v532_v20 = vpop.f32.mrf.mxu1 }
 0x3b7   :  { %v536_v21 = vadd.f32 %v1743_v26, %v519_v18  ;;  %v556_v57 = vadd.f32 %v2169_v6, %v532_v20 }
 0x3b9   :  { %v1746_v27 = vmul.f32 -1.442695, %v536_v21 }
 0x3bb   :  { %1856 = vpow2.f32 %v1746_v27 }
 0x3be   :  { %v521_v29 = vpop.f32.mrf.mxu0  ;;  %v534_v31 = vpop.f32.mrf.mxu1 }
 0x3bf   :  { %v658_v29 = vsub.f32 1.0, %v2266_v13 }
 0x3c1   :  { %v1857_v33 = vpop.eup %1856 }
 0x3c2   :  { %v540_v35 = vadd.f32 1.0, %v1857_v33  ;;  %v678_v33 = vsub.f32 1.0, %v2279_v15 }
 0x3c4   :  { %1858 = vrcp.f32 %v540_v35  ;;  %v552_v50 = vand.u32 2147483648, %v540_v35  ;;  %v550_v53 = vand.u32 2147483647, %v540_v35  ;;  %vm546_vm3 = vweird.f32 %v540_v35 }
 0x3c6   :  { %v553_v54 = vor.u32 1.1754944e-38, %v552_v50  ;;  %vm551_vm5 = vcmp.eq.f32.partialorder %v550_v53, 8.507059e+37 }
 0x3ca   :  { %v1859_v37 = vpop.eup %1858  ;;  %v590_v38 = vpop.f32.mrf.mxu2 }
 0x3cb   :  { %v542_v43 = vmul.f32 %v1859_v37, %v540_v35  ;;  %v607_v44 = vadd.f32 %v1747_v36, %v590_v38  ;;  %v603_v45 = vpop.f32.mrf.mxu3  ;;  %vm547_vm2 = vweird.f32 %v1859_v37  ;;  %v571_v36 = vpop.permute.xlu2 %570 }
 0x3cc   :  { %vm548_vm4 = vmor %vm546_vm3, %vm547_vm2  ;;  %v627_v18 = vadd.f32 %v2175_v25, %v603_v45 }
 0x3cd   :  { %v543_v46 = vsub.f32 1.0, %v542_v43  ;;  %v1750_v49 = vmul.f32 -1.442695, %v607_v44 }
 0x3cf   :  { %v544_v52 = vmul.f32 %v1859_v37, %v543_v46  ;;  %1860 = vpow2.f32 %v1750_v49 }
 0x3d1   :  { %v545_v51 = vadd.f32 %v1859_v37, %v544_v52 }
 0x3d2   :  { %v592_v55 = vpop.f32.mrf.mxu2 }
 0x3d3   :  { %v549_v22 = vsel %vm548_vm4, %v1859_v37, %v545_v51  ;;  %v605_v58 = vpop.f32.mrf.mxu3 }
 0x3d4   :  { %v554_v59 = vsel %vm551_vm5, %v553_v54, %v549_v22  ;;  %v649_v54 = vpop.permute.xlu2 %648 }
 0x3d5   :  { %v1861_v60 = vpop.eup %1860  ;;  %v557_v61 = vmul.f32 %v556_v57, %v554_v59  ;;  %v563_v35 = vsub.f32 1.0, %v554_v59  ;;  %v573_v38 = vmul.f32 %v571_v36, %v554_v59 }
 0x3d6   :  { %v611_v62 = vadd.f32 1.0, %v1861_v60 }
 0x3d7   :  { %v561_v63 = vadd.f32 %v559_v56, %v557_v61  ;;  %v2340_v61 = vld [vmem:[%s2617_s2 + $0x8] sm:$0x3] }
 0x3d8   :  { %1862 = vrcp.f32 %v611_v62  ;;  %v623_v5 = vand.u32 2147483648, %v611_v62  ;;  %v621_v9 = vand.u32 2147483647, %v611_v62  ;;  %vm617_vm7 = vweird.f32 %v611_v62 }
 0x3d9   :  { %1864 = vtanh.f32 %v561_v63 }
 0x3da   :  { %v624_v16 = vor.u32 1.1754944e-38, %v623_v5  ;;  %vm622_vm11 = vcmp.eq.f32.partialorder %v621_v9, 8.507059e+37 }
 0x3de   :  { %v1863_v0 = vpop.eup %1862 }
 0x3df   :  { %v1865_v30 = vpop.eup %1864  ;;  %v613_v2 = vmul.f32 %v1863_v0, %v611_v62  ;;  %vm618_vm6 = vweird.f32 %v1863_v0  ;;  %v669_v62 = vpop.permute.xlu2 %668 }
 0x3e0   :  { %565 = vrot.lane.b32.xlu1 %v1865_v30, %s1931_s9  ;;  %vm619_vm10 = vmor %vm617_vm7, %vm618_vm6 }
 0x3e1   :  { %v614_v3 = vsub.f32 1.0, %v613_v2 }
 0x3e3   :  { %v615_v7 = vmul.f32 %v1863_v0, %v614_v3 }
 0x3e5   :  { %v616_v10 = vadd.f32 %v1863_v0, %v615_v7 }
 0x3e7   :  { %v620_v26 = vsel %vm619_vm10, %v1863_v0, %v616_v10 }
 0x3e8   :  { %v625_v20 = vsel %vm622_vm11, %v624_v16, %v620_v26  ;;  %641 = vrot.lane.b32.xlu1 %v2274_v14, %s1931_s9 }
 0x3e9   :  { %v628_v21 = vmul.f32 %v627_v18, %v625_v20  ;;  %v634_v13 = vsub.f32 1.0, %v625_v20 }
 0x3eb   :  { %v632_v27 = vadd.f32 %v630_v17, %v628_v21 }
 0x3ed   :  { %1866 = vtanh.f32 %v632_v27 }
 0x3f0   :  { %661 = vperm.xlu1 %1822, %v658_v29  }
 0x3f3   :  { %v1867_v31 = vpop.eup %1866 }
 0x3f4   :  { %636 = vrot.lane.b32.xlu0 %v1867_v31, %s1931_s9 }
 0x3f8   :  { %681 = vperm.xlu1 %1822, %v678_v33   ;;  %v1757_v33 = vld [vmem:[%s2616_s1 + $0x10] sm:$0xf] }
 0x452   :  { %v566_v37 = vpop.permute.xlu1 %565 }
 0x453   :  { %v568_v43 = vmul.f32 %v566_v37, %v563_v35 }
 0x455   :  { %v574_v44 = vadd.f32 %v573_v38, %v568_v43 }
 0x457   :  { %652 = vst [vmem:[#allocation1] ss:$4 sm:$0xff] %v574_v44 }
 0x45a   :  { %v642_v46 = vpop.permute.xlu1 %641 }
 0x45b   :  { %v644_v50 = vmul.f32 %v642_v46, %v625_v20 }
 0x45e   :  { %v653_v45 = vld.sshfl [vmem:[#allocation1] sm:$0xff pattern:$0x73625140] }
 0x45f   :  { %654 = vrot.lane.b32.xlu0 %v653_v45, %s1931_s9 }
 0x462   :  { %v662_v51 = vpop.permute.xlu1 %661 }
 0x463   :  { %v664_v56 = vmul.f32 %v662_v51, %v2251_v1  ;;  %v2330_v1 = vld [vmem:[%s2617_s2 + $0x6] sm:$0x3] }
 0x466   :  { %v637_v49 = vpop.permute.xlu0 %636 }
 0x467   :  { %v639_v52 = vmul.f32 %v637_v49, %v634_v13 }
 0x469   :  { %v645_v53 = vadd.f32 %v644_v50, %v639_v52 }
 0x46a   :  { %v682_v60 = vpop.permute.xlu1 %681 }
 0x46b   :  { %672 = vst [vmem:[#allocation1] ss:$4 sm:$0xff] %v645_v53  ;;  %v684_v0 = vmul.f32 %v682_v60, %v2274_v14  ;;  %v1753_v14 = vld [vmem:[%s2615_s0 + $0xc] sm:$0xf] }
 0x46c   :  { %v749_v45 = vrot.slane %v1753_v14, 2 }
 0x472   :  { %v673_v15 = vld.sshfl [vmem:[#allocation1] sm:$0xff pattern:$0x73625140] }
 0x473   :  { %674 = vrot.lane.b32.xlu0 %v673_v15, %s1931_s9 }
 0x4d1   :  { %v655_v55 = vpop.permute.xlu0 %654 }
 0x4d2   :  { %v657_v22 = vmul.f32 %v655_v55, %v649_v54 }
 0x4d4   :  { %v2315_v57 = vadd.f32 %v664_v56, %v657_v22 }
 0x4d6   :  { %v686_v58 = vmul.f32 %v2315_v57, %v649_v54  ;;  %v696_v59 = vpack.c.bf16 %v2315_v57, %v2315_v57  ;;  %760 = vrot.lane.b32.xlu0 %v2315_v57, %s1931_s9 }
 0x4d8   :  { %687 = vst.msk [vmem:[#allocation2 + $0x4] sm:$0x3] %vm306_vm8, %v686_v58  ;;  %1754 = vmatmul.msk.bf16.vlgmr.msrb.gmra.mxu0 %vm97_vm9, %v696_v59  ;;  %1755 = vmatmul.msk.bf16.vlgmr.msrb.gmra.mxu1 %vm97_vm9, %v696_v59 }
 0x4d9   :  { %1080 = vmatpush.bf16.msrb.mxu0 %v1988_v4  ;;  %1093 = vmatpush.bf16.msrb.mxu1 %v2032_v19 }
 0x4dd   :  { %1081 = vmatpush.bf16.msrb.mxu0 %v2009_v11  ;;  %1094 = vmatpush.bf16.msrb.mxu1 %v2070_v32 }
 0x4de   :  { %838 = vperm.xlu0 %1824, %v2330_v1  }
 0x4e1   :  { %1082 = vmatpush.bf16.msrb.mxu0 %v2044_v23  ;;  %1095 = vmatpush.bf16.msrb.mxu1 %v2097_v41 }
 0x4e5   :  { %v675_v63 = vpop.permute.xlu0 %674  ;;  %1083 = vmatpush.bf16.msrb.mxu0 %v2091_v39  ;;  %1096 = vmatpush.bf16.msrb.mxu1 %v2117_v47 }
 0x4e6   :  { %v677_v30 = vmul.f32 %v675_v63, %v669_v62  ;;  %858 = vperm.xlu0 %1824, %v2340_v61  }
 0x4e8   :  { %v2346_v2 = vadd.f32 %v684_v0, %v677_v30  ;;  %v848_v30 = vsub.f32 1.0, %v2330_v1 }
 0x4ea   :  { %v688_v3 = vmul.f32 %v2346_v2, %v669_v62  ;;  %v767_v5 = vpack.c.bf16 %v2346_v2, %v2346_v2 }
 0x4ec   :  { %689 = vst.msk [vmem:[#allocation3 + $0xa] sm:$0x3] %vm306_vm8, %v688_v3  ;;  %1758 = vmatmul.msk.bf16.vlgmr.msrb.gmra.mxu2 %vm97_vm9, %v767_v5  ;;  %1759 = vmatmul.msk.bf16.vlgmr.msrb.gmra.mxu3 %vm97_vm9, %v767_v5  ;;  %v820_v5 = vrot.slane %v1757_v33, 2 }
 0x4ed   :  { %1151 = vmatpush.bf16.msrb.mxu2 %v2000_v8  ;;  %1164 = vmatpush.bf16.msrb.mxu3 %v2046_v24 }
 0x4f1   :  { %1152 = vmatpush.bf16.msrb.mxu2 %v2012_v12  ;;  %1165 = vmatpush.bf16.msrb.mxu3 %v2076_v34 }
 0x4f5   :  { %1153 = vmatpush.bf16.msrb.mxu2 %v2058_v28  ;;  %1166 = vmatpush.bf16.msrb.mxu3 %v2100_v42 }
 0x4f9   :  { %1154 = vmatpush.bf16.msrb.mxu2 %v2094_v40  ;;  %1167 = vmatpush.bf16.msrb.mxu3 %v2120_v48 }
 0x548   :  { %v761_v1 = vpop.permute.xlu0 %760 }
 0x555   :  { %v709_v7 = vpop.f32.mrf.mxu0  ;;  %v722_v9 = vpop.f32.mrf.mxu1 }
 0x556   :  { %v726_v10 = vadd.f32 %v1753_v14, %v709_v7  ;;  %v746_v49 = vadd.f32 %v2169_v6, %v722_v9 }
 0x558   :  { %v1756_v16 = vmul.f32 -1.442695, %v726_v10 }
 0x55a   :  { %1868 = vpow2.f32 %v1756_v16 }
 0x55d   :  { %v711_v17 = vpop.f32.mrf.mxu0  ;;  %v724_v26 = vpop.f32.mrf.mxu1 }
 0x55e   :  { %v868_v17 = vsub.f32 1.0, %v2340_v61 }
 0x560   :  { %v1869_v18 = vpop.eup %1868 }
 0x561   :  { %v730_v20 = vadd.f32 1.0, %v1869_v18 }
 0x563   :  { %1870 = vrcp.f32 %v730_v20  ;;  %v742_v31 = vand.u32 2147483648, %v730_v20  ;;  %v740_v36 = vand.u32 2147483647, %v730_v20  ;;  %vm736_vm13 = vweird.f32 %v730_v20 }
 0x565   :  { %v743_v46 = vor.u32 1.1754944e-38, %v742_v31  ;;  %vm741_vm15 = vcmp.eq.f32.partialorder %v740_v36, 8.507059e+37 }
 0x569   :  { %v1871_v21 = vpop.eup %1870 }
 0x56a   :  { %v732_v27 = vmul.f32 %v1871_v21, %v730_v20  ;;  %vm737_vm12 = vweird.f32 %v1871_v21 }
 0x56b   :  { %vm738_vm14 = vmor %vm736_vm13, %vm737_vm12 }
 0x56c   :  { %v733_v29 = vsub.f32 1.0, %v732_v27 }
 0x56e   :  { %v734_v35 = vmul.f32 %v1871_v21, %v733_v29 }
 0x56f   :  { %v780_v37 = vpop.f32.mrf.mxu2  ;;  %v793_v38 = vpop.f32.mrf.mxu3 }
 0x570   :  { %v735_v43 = vadd.f32 %v1871_v21, %v734_v35  ;;  %v797_v44 = vadd.f32 %v1757_v33, %v780_v37  ;;  %v817_v7 = vadd.f32 %v2175_v25, %v793_v38 }
 0x572   :  { %v739_v13 = vsel %vm738_vm14, %v1871_v21, %v735_v43  ;;  %v1760_v50 = vmul.f32 -1.442695, %v797_v44  ;;  %v839_v44 = vpop.permute.xlu0 %838 }
 0x573   :  { %v744_v52 = vsel %vm741_vm15, %v743_v46, %v739_v13 }
 0x574   :  { %v747_v53 = vmul.f32 %v746_v49, %v744_v52  ;;  %1872 = vpow2.f32 %v1760_v50  ;;  %v753_v18 = vsub.f32 1.0, %v744_v52  ;;  %v763_v27 = vmul.f32 %v761_v1, %v744_v52 }
 0x576   :  { %v751_v15 = vadd.f32 %v749_v45, %v747_v53  ;;  %v2404_v53 = vld [vmem:[%s2617_s2 + $0x6] sm:$0x3] }
 0x577   :  { %v782_v51 = vpop.f32.mrf.mxu2  ;;  %v795_v54 = vpop.f32.mrf.mxu3 }
 0x578   :  { %1874 = vtanh.f32 %v751_v15 }
 0x57a   :  { %v1873_v55 = vpop.eup %1872  ;;  %v859_v51 = vpop.permute.xlu0 %858 }
 0x57b   :  { %v801_v56 = vadd.f32 1.0, %v1873_v55 }
 0x57d   :  { %1876 = vrcp.f32 %v801_v56  ;;  %v813_v62 = vand.u32 2147483648, %v801_v56  ;;  %v811_v63 = vand.u32 2147483647, %v801_v56  ;;  %vm807_vm1 = vweird.f32 %v801_v56 }
 0x57e   :  { %v1875_v22 = vpop.eup %1874 }
 0x57f   :  { %755 = vrot.lane.b32.xlu2 %v1875_v22, %s1931_s9  ;;  %v814_v3 = vor.u32 1.1754944e-38, %v813_v62  ;;  %vm812_vm3 = vcmp.eq.f32.partialorder %v811_v63, 8.507059e+37 }
 0x583   :  { %v1877_v58 = vpop.eup %1876 }
 0x584   :  { %v803_v59 = vmul.f32 %v1877_v58, %v801_v56  ;;  %vm808_vm0 = vweird.f32 %v1877_v58 }
 0x585   :  { %vm809_vm2 = vmor %vm807_vm1, %vm808_vm0 }
 0x586   :  { %v804_v60 = vsub.f32 1.0, %v803_v59 }
 0x587   :  { %831 = vrot.lane.b32.xlu2 %v2346_v2, %s1931_s9 }
 0x588   :  { %v805_v6 = vmul.f32 %v1877_v58, %v804_v60 }
 0x58a   :  { %v806_v0 = vadd.f32 %v1877_v58, %v805_v6 }
 0x58c   :  { %v810_v14 = vsel %vm809_vm2, %v1877_v58, %v806_v0 }
 0x58d   :  { %v815_v9 = vsel %vm812_vm3, %v814_v3, %v810_v14 }
 0x58e   :  { %v818_v10 = vmul.f32 %v817_v7, %v815_v9  ;;  %v824_v33 = vsub.f32 1.0, %v815_v9 }
 0x58f   :  { %851 = vperm.xlu2 %1823, %v848_v30  }
 0x590   :  { %v822_v16 = vadd.f32 %v820_v5, %v818_v10 }
 0x592   :  { %1878 = vtanh.f32 %v822_v16 }
 0x597   :  { %871 = vperm.xlu2 %1823, %v868_v17  }
 0x598   :  { %v1879_v26 = vpop.eup %1878 }
 0x599   :  { %826 = vrot.lane.b32.xlu1 %v1879_v26, %s1931_s9 }
 0x5d9   :  { %v756_v20 = vpop.permute.xlu2 %755 }
 0x5da   :  { %v758_v21 = vmul.f32 %v756_v20, %v753_v18 }
 0x5dc   :  { %v764_v29 = vadd.f32 %v763_v27, %v758_v21  ;;  %v2432_v21 = vld [vmem:[%s2613_s4] ss:$0 sm:$0xff] }
 0x5de   :  { %842 = vst [vmem:[#allocation1] ss:$4 sm:$0xff] %v764_v29 }
 0x5e1   :  { %v832_v25 = vpop.permute.xlu2 %831 }
 0x5e2   :  { %v834_v36 = vmul.f32 %v832_v25, %v815_v9 }
 0x5e5   :  { %v843_v31 = vld.sshfl [vmem:[#allocation1] sm:$0xff pattern:$0x73625140] }
 0x5e6   :  { %844 = vrot.lane.b32.xlu1 %v843_v31, %s1931_s9 }
 0x5e9   :  { %v852_v43 = vpop.permute.xlu2 %851 }
 0x5ea   :  { %v854_v46 = vmul.f32 %v852_v43, %v2315_v57  ;;  %v2394_v57 = vld [vmem:[%s2617_s2 + $0x8] sm:$0x3] }
 0x5f1   :  { %v872_v15 = vpop.permute.xlu2 %871 }
 0x5f2   :  { %v874_v55 = vmul.f32 %v872_v15, %v2346_v2  ;;  %v1763_v2 = vld [vmem:[%s2615_s0 + $0x10] sm:$0xf] }
 0x5f3   :  { %v937_v1 = vrot.slane %v1763_v2, 2 }
 0x60b   :  { %v827_v35 = vpop.permute.xlu1 %826 }
 0x60c   :  { %v829_v37 = vmul.f32 %v827_v35, %v824_v33  ;;  %v1036_v35 = vsub.f32 1.0, %v2394_v57 }
 0x60e   :  { %v835_v61 = vadd.f32 %v834_v36, %v829_v37  ;;  %v1767_v36 = vld [vmem:[%s2616_s1 + $0xc] sm:$0xf] }
 0x610   :  { %862 = vst [vmem:[#allocation1] ss:$4 sm:$0xff] %v835_v61 }
 0x617   :  { %v863_v38 = vld.sshfl [vmem:[#allocation1] sm:$0xff pattern:$0x73625140] }
 0x618   :  { %864 = vrot.lane.b32.xlu1 %v863_v38, %s1931_s9 }
 0x658   :  { %v845_v45 = vpop.permute.xlu1 %844 }
 0x659   :  { %v847_v13 = vmul.f32 %v845_v45, %v839_v44 }
 0x65b   :  { %v2379_v49 = vadd.f32 %v854_v46, %v847_v13 }
 0x65d   :  { %v876_v50 = vmul.f32 %v2379_v49, %v839_v44  ;;  %v884_v52 = vpack.c.bf16 %v2379_v49, %v2379_v49  ;;  %948 = vrot.lane.b32.xlu1 %v2379_v49, %s1931_s9  ;;  %v1056_v44 = vsub.f32 1.0, %v2404_v53 }
 0x65f   :  { %877 = vst.msk [vmem:[#allocation2 + $0x6] sm:$0x3] %vm306_vm8, %v876_v50  ;;  %1764 = vmatmul.msk.bf16.vlgmr.msra.gmra.mxu0 %vm97_vm9, %v884_v52  ;;  %1765 = vmatmul.msk.bf16.vlgmr.msra.gmra.mxu1 %vm97_vm9, %v884_v52 }
 0x660   :  { %1268 = vmatpush.bf16.msra.mxu0 %v1988_v4  ;;  %1281 = vmatpush.bf16.msra.mxu1 %v2032_v19 }
 0x664   :  { %1269 = vmatpush.bf16.msra.mxu0 %v2009_v11  ;;  %1282 = vmatpush.bf16.msra.mxu1 %v2070_v32 }
 0x665   :  { %1026 = vperm.xlu1 %1822, %v2394_v57  }
 0x668   :  { %1270 = vmatpush.bf16.msra.mxu0 %v2044_v23  ;;  %1283 = vmatpush.bf16.msra.mxu1 %v2097_v41 }
 0x66c   :  { %1271 = vmatpush.bf16.msra.mxu0 %v2091_v39  ;;  %1284 = vmatpush.bf16.msra.mxu1 %v2117_v47 }
 0x66d   :  { %1046 = vperm.xlu1 %1822, %v2404_v53   ;;  %v2446_v53 = vld [vmem:[%s2614_s6] ss:$0 sm:$0xff] }
 0x68a   :  { %v865_v54 = vpop.permute.xlu1 %864 }
 0x68b   :  { %v867_v56 = vmul.f32 %v865_v54, %v859_v51 }
 0x68d   :  { %v2410_v22 = vadd.f32 %v874_v55, %v867_v56 }
 0x68f   :  { %v878_v58 = vmul.f32 %v2410_v22, %v859_v51  ;;  %v955_v59 = vpack.c.bf16 %v2410_v22, %v2410_v22 }
 0x691   :  { %879 = vst.msk [vmem:[#allocation3 + $0x8] sm:$0x3] %vm306_vm8, %v878_v58  ;;  %1768 = vmatmul.msk.bf16.vlgmr.msra.gmra.mxu2 %vm97_vm9, %v955_v59  ;;  %1769 = vmatmul.msk.bf16.vlgmr.msra.gmra.mxu3 %vm97_vm9, %v955_v59  ;;  %v1008_v59 = vrot.slane %v1767_v36, 2 }
 0x692   :  { %1339 = vmatpush.bf16.msra.mxu2 %v2000_v8  ;;  %1352 = vmatpush.bf16.msra.mxu3 %v2046_v24 }
 0x696   :  { %1340 = vmatpush.bf16.msra.mxu2 %v2012_v12  ;;  %1353 = vmatpush.bf16.msra.mxu3 %v2076_v34 }
 0x69a   :  { %1341 = vmatpush.bf16.msra.mxu2 %v2058_v28  ;;  %1354 = vmatpush.bf16.msra.mxu3 %v2100_v42 }
 0x69e   :  { %1342 = vmatpush.bf16.msra.mxu2 %v2094_v40  ;;  %1355 = vmatpush.bf16.msra.mxu3 %v2120_v48 }
 0x6dc   :  { %v897_v60 = vpop.f32.mrf.mxu0  ;;  %v910_v62 = vpop.f32.mrf.mxu1 }
 0x6dd   :  { %v914_v6 = vadd.f32 %v1763_v2, %v897_v60  ;;  %v934_v27 = vadd.f32 %v2432_v21, %v910_v62 }
 0x6df   :  { %v1766_v63 = vmul.f32 -1.442695, %v914_v6 }
 0x6e1   :  { %1880 = vpow2.f32 %v1766_v63 }
 0x6e4   :  { %v899_v0 = vpop.f32.mrf.mxu0  ;;  %v912_v30 = vpop.f32.mrf.mxu1 }
 0x6e7   :  { %v1881_v3 = vpop.eup %1880 }
 0x6e8   :  { %v918_v5 = vadd.f32 1.0, %v1881_v3  ;;  %v949_v3 = vpop.permute.xlu1 %948 }
 0x6ea   :  { %1882 = vrcp.f32 %v918_v5  ;;  %v930_v10 = vand.u32 2147483648, %v918_v5  ;;  %v928_v17 = vand.u32 2147483647, %v918_v5  ;;  %vm924_vm5 = vweird.f32 %v918_v5 }
 0x6ec   :  { %v931_v18 = vor.u32 1.1754944e-38, %v930_v10  ;;  %vm929_vm7 = vcmp.eq.f32.partialorder %v928_v17, 8.507059e+37 }
 0x6f0   :  { %v1883_v14 = vpop.eup %1882 }
 0x6f1   :  { %v920_v7 = vmul.f32 %v1883_v14, %v918_v5  ;;  %vm925_vm4 = vweird.f32 %v1883_v14 }
 0x6f2   :  { %vm926_vm6 = vmor %vm924_vm5, %vm925_vm4 }
 0x6f3   :  { %v921_v9 = vsub.f32 1.0, %v920_v7 }
 0x6f5   :  { %v922_v16 = vmul.f32 %v1883_v14, %v921_v9 }
 0x6f7   :  { %v923_v26 = vadd.f32 %v1883_v14, %v922_v16 }
 0x6f9   :  { %v927_v20 = vsel %vm926_vm6, %v1883_v14, %v923_v26 }
 0x6fa   :  { %v932_v29 = vsel %vm929_vm7, %v931_v18, %v927_v20 }
 0x6fb   :  { %v935_v31 = vmul.f32 %v934_v27, %v932_v29  ;;  %v941_v30 = vsub.f32 1.0, %v932_v29  ;;  %v951_v7 = vmul.f32 %v949_v3, %v932_v29 }
 0x6fd   :  { %v939_v25 = vadd.f32 %v937_v1, %v935_v31 }
 0x6ff   :  { %1884 = vtanh.f32 %v939_v25  ;;  %v1027_v25 = vpop.permute.xlu1 %1026 }
 0x705   :  { %v1885_v33 = vpop.eup %1884 }
 0x706   :  { %943 = vrot.lane.b32.xlu0 %v1885_v33, %s1931_s9 }
 0x70e   :  { %1019 = vrot.lane.b32.xlu0 %v2410_v22, %s1931_s9 }
 0x714   :  { %v968_v37 = vpop.f32.mrf.mxu2  ;;  %v981_v61 = vpop.f32.mrf.mxu3 }
 0x715   :  { %v985_v38 = vadd.f32 %v1767_v36, %v968_v37  ;;  %v1005_v60 = vadd.f32 %v2446_v53, %v981_v61 }
 0x716   :  { %1039 = vperm.xlu0 %1824, %v1036_v35  }
 0x717   :  { %v1770_v43 = vmul.f32 -1.442695, %v985_v38 }
 0x719   :  { %1886 = vpow2.f32 %v1770_v43 }
 0x71c   :  { %v970_v45 = vpop.f32.mrf.mxu2  ;;  %v983_v46 = vpop.f32.mrf.mxu3 }
 0x71e   :  { %1059 = vperm.xlu0 %1824, %v1056_v44  }
 0x71f   :  { %v1887_v13 = vpop.eup %1886 }
 0x720   :  { %v989_v50 = vadd.f32 1.0, %v1887_v13 }
 0x722   :  { %1888 = vrcp.f32 %v989_v50  ;;  %v1001_v51 = vand.u32 2147483648, %v989_v50  ;;  %v999_v55 = vand.u32 2147483647, %v989_v50  ;;  %vm995_vm11 = vweird.f32 %v989_v50 }
 0x724   :  { %v1002_v58 = vor.u32 1.1754944e-38, %v1001_v51  ;;  %vm1000_vm13 = vcmp.eq.f32.partialorder %v999_v55, 8.507059e+37 }
 0x728   :  { %v1889_v52 = vpop.eup %1888 }
 0x729   :  { %v991_v57 = vmul.f32 %v1889_v52, %v989_v50  ;;  %vm996_vm10 = vweird.f32 %v1889_v52 }
 0x72a   :  { %vm997_vm12 = vmor %vm995_vm11, %vm996_vm10 }
 0x72b   :  { %v992_v15 = vsub.f32 1.0, %v991_v57 }
 0x72d   :  { %v993_v54 = vmul.f32 %v1889_v52, %v992_v15 }
 0x72f   :  { %v994_v56 = vadd.f32 %v1889_v52, %v993_v54 }
 0x731   :  { %v998_v2 = vsel %vm997_vm12, %v1889_v52, %v994_v56 }
 0x732   :  { %v1003_v62 = vsel %vm1000_vm13, %v1002_v58, %v998_v2 }
 0x733   :  { %v1006_v6 = vmul.f32 %v1005_v60, %v1003_v62  ;;  %v1012_v17 = vsub.f32 1.0, %v1003_v62 }
 0x735   :  { %v1010_v63 = vadd.f32 %v1008_v59, %v1006_v6  ;;  %v1777_v59 = vld [vmem:[%s2616_s1 + $0x8] sm:$0xf] }
 0x737   :  { %1890 = vtanh.f32 %v1010_v63 }
 0x73d   :  { %v1891_v0 = vpop.eup %1890 }
 0x73e   :  { %1014 = vrot.lane.b32.xlu2 %v1891_v0, %s1931_s9 }
 0x778   :  { %v944_v5 = vpop.permute.xlu0 %943 }
 0x779   :  { %v946_v14 = vmul.f32 %v944_v5, %v941_v30 }
 0x77b   :  { %v952_v9 = vadd.f32 %v951_v7, %v946_v14 }
 0x77d   :  { %1030 = vst [vmem:[#allocation1] ss:$4 sm:$0xff] %v952_v9 }
 0x780   :  { %v1020_v16 = vpop.permute.xlu0 %1019 }
 0x781   :  { %v1022_v18 = vmul.f32 %v1020_v16, %v1003_v62 }
 0x784   :  { %v1031_v10 = vld.sshfl [vmem:[#allocation1] sm:$0xff pattern:$0x73625140] }
 0x785   :  { %1032 = vrot.lane.b32.xlu2 %v1031_v10, %s1931_s9 }
 0x788   :  { %v1040_v31 = vpop.permute.xlu0 %1039 }
 0x789   :  { %v1042_v29 = vmul.f32 %v1040_v31, %v2379_v49  ;;  %v2468_v49 = vld [vmem:[%s2617_s2 + $0xa] sm:$0x3] }
 0x78a   :  { %v1224_v14 = vsub.f32 1.0, %v2468_v49 }
 0x798   :  { %v1015_v26 = vpop.permute.xlu2 %1014 }
 0x799   :  { %v1017_v1 = vmul.f32 %v1015_v26, %v1012_v17 }
 0x79b   :  { %v1023_v20 = vadd.f32 %v1022_v18, %v1017_v1 }
 0x79d   :  { %1050 = vst [vmem:[#allocation1] ss:$4 sm:$0xff] %v1023_v20 }
 0x7a4   :  { %v1051_v27 = vld.sshfl [vmem:[#allocation1] sm:$0xff pattern:$0x73625140] }
 0x7a5   :  { %1052 = vrot.lane.b32.xlu2 %v1051_v27, %s1931_s9  ;;  %v1196_v27 = vrot.slane %v1777_v59, 2 }
 0x7df   :  { %v1033_v33 = vpop.permute.xlu2 %1032 }
 0x7e0   :  { %v1035_v35 = vmul.f32 %v1033_v33, %v1027_v25 }
 0x7e2   :  { %v2453_v36 = vadd.f32 %v1042_v29, %v1035_v35 }
 0x7e4   :  { %v1064_v37 = vmul.f32 %v2453_v36, %v1027_v25  ;;  %v1072_v61 = vpack.c.bf16 %v2453_v36, %v2453_v36  ;;  %1136 = vrot.lane.b32.xlu2 %v2453_v36, %s1931_s9 }
 0x7e6   :  { %1065 = vst.msk [vmem:[#allocation2 + $0x8] sm:$0x3] %vm306_vm8, %v1064_v37  ;;  %1774 = vmatmul.msk.bf16.vlgmr.msrb.gmra.mxu0 %vm97_vm9, %v1072_v61  ;;  %1775 = vmatmul.msk.bf16.vlgmr.msrb.gmra.mxu1 %vm97_vm9, %v1072_v61 }
 0x7e7   :  { %1456 = vmatpush.bf16.msrb.mxu0 %v1988_v4  ;;  %1469 = vmatpush.bf16.msrb.mxu1 %v2032_v19  ;;  %v2478_v4 = vld [vmem:[%s2617_s2 + $0x4] sm:$0x3]  ;;  %v1047_v19 = vpop.permute.xlu1 %1046 }
 0x7e8   :  { %v1244_v16 = vsub.f32 1.0, %v2478_v4 }
 0x7eb   :  { %1457 = vmatpush.bf16.msrb.mxu0 %v2009_v11  ;;  %1470 = vmatpush.bf16.msrb.mxu1 %v2070_v32  ;;  %v1060_v11 = vpop.permute.xlu0 %1059 }
 0x7ec   :  { %1214 = vperm.xlu2 %1823, %v2468_v49   ;;  %v1062_v38 = vmul.f32 %v1060_v11, %v2410_v22 }
 0x7ef   :  { %1458 = vmatpush.bf16.msrb.mxu0 %v2044_v23  ;;  %1471 = vmatpush.bf16.msrb.mxu1 %v2097_v41 }
 0x7f3   :  { %1459 = vmatpush.bf16.msrb.mxu0 %v2091_v39  ;;  %1472 = vmatpush.bf16.msrb.mxu1 %v2117_v47  ;;  %v1773_v39 = vld [vmem:[%s2615_s0 + $0x14] sm:$0xf] }
 0x7f4   :  { %1234 = vperm.xlu2 %1823, %v2478_v4   ;;  %v1125_v15 = vrot.slane %v1773_v39, 2 }
 0x7ff   :  { %v1053_v32 = vpop.permute.xlu2 %1052 }
 0x800   :  { %v1055_v43 = vmul.f32 %v1053_v32, %v1047_v19 }
 0x802   :  { %v2484_v23 = vadd.f32 %v1062_v38, %v1055_v43 }
 0x804   :  { %v1066_v41 = vmul.f32 %v2484_v23, %v1047_v19  ;;  %v1143_v44 = vpack.c.bf16 %v2484_v23, %v2484_v23 }
 0x806   :  { %1067 = vst.msk [vmem:[#allocation3 + $0x6] sm:$0x3] %vm306_vm8, %v1066_v41  ;;  %1778 = vmatmul.msk.bf16.vlgmr.msrb.gmra.mxu2 %vm97_vm9, %v1143_v44  ;;  %1779 = vmatmul.msk.bf16.vlgmr.msrb.gmra.mxu3 %vm97_vm9, %v1143_v44 }
 0x807   :  { %1526 = vmatpush.bf16.msrb.mxu2 %v2000_v8  ;;  %1539 = vmatpush.bf16.msrb.mxu3 %v2046_v24 }
 0x80b   :  { %1527 = vmatpush.bf16.msrb.mxu2 %v2012_v12  ;;  %1540 = vmatpush.bf16.msrb.mxu3 %v2076_v34 }
 0x80f   :  { %1528 = vmatpush.bf16.msrb.mxu2 %v2058_v28  ;;  %1541 = vmatpush.bf16.msrb.mxu3 %v2100_v42 }
 0x813   :  { %1529 = vmatpush.bf16.msrb.mxu2 %v2094_v40  ;;  %1542 = vmatpush.bf16.msrb.mxu3 %v2120_v48 }
 0x83e   :  { %v1137_v49 = vpop.permute.xlu2 %1136 }
 0x863   :  { %v1085_v47 = vpop.f32.mrf.mxu0  ;;  %v1098_v8 = vpop.f32.mrf.mxu1 }
 0x864   :  { %v1102_v22 = vadd.f32 %v1773_v39, %v1085_v47  ;;  %v1122_v54 = vadd.f32 %v2432_v21, %v1098_v8 }
 0x866   :  { %v1776_v24 = vmul.f32 -1.442695, %v1102_v22 }
 0x868   :  { %1892 = vpow2.f32 %v1776_v24 }
 0x86b   :  { %v1087_v12 = vpop.f32.mrf.mxu0  ;;  %v1100_v45 = vpop.f32.mrf.mxu1 }
 0x86c   :  { %v1215_v12 = vpop.permute.xlu2 %1214 }
 0x86e   :  { %v1893_v34 = vpop.eup %1892 }
 0x86f   :  { %v1106_v46 = vadd.f32 1.0, %v1893_v34 }
 0x871   :  { %1894 = vrcp.f32 %v1106_v46  ;;  %v1118_v40 = vand.u32 2147483648, %v1106_v46  ;;  %v1116_v48 = vand.u32 2147483647, %v1106_v46  ;;  %vm1112_vm15 = vweird.f32 %v1106_v46 }
 0x873   :  { %v1119_v57 = vor.u32 1.1754944e-38, %v1118_v40  ;;  %vm1117_vm1 = vcmp.eq.f32.partialorder %v1116_v48, 8.507059e+37  ;;  %v1782_v40 = vld [vmem:[%s2617_s2 + $0x2] sm:$0x3] }
 0x874   :  { %v1235_v48 = vpop.permute.xlu2 %1234 }
 0x877   :  { %v1895_v28 = vpop.eup %1894 }
 0x878   :  { %v1108_v42 = vmul.f32 %v1895_v28, %v1106_v46  ;;  %vm1113_vm14 = vweird.f32 %v1895_v28 }
 0x879   :  { %vm1114_vm0 = vmor %vm1112_vm15, %vm1113_vm14 }
 0x87a   :  { %v1109_v13 = vsub.f32 1.0, %v1108_v42 }
 0x87c   :  { %v1110_v50 = vmul.f32 %v1895_v28, %v1109_v13 }
 0x87e   :  { %v1111_v52 = vadd.f32 %v1895_v28, %v1110_v50 }
 0x880   :  { %v1115_v51 = vsel %vm1114_vm0, %v1895_v28, %v1111_v52 }
 0x881   :  { %v1120_v55 = vsel %vm1117_vm1, %v1119_v57, %v1115_v51 }
 0x882   :  { %v1123_v56 = vmul.f32 %v1122_v54, %v1120_v55  ;;  %v1129_v61 = vsub.f32 1.0, %v1120_v55  ;;  %v1139_v19 = vmul.f32 %v1137_v49, %v1120_v55 }
 0x884   :  { %v1127_v58 = vadd.f32 %v1125_v15, %v1123_v56  ;;  %v1783_v56 = vld [vmem:[%s2615_s0 + $0x18] sm:$0xf] }
 0x886   :  { %1896 = vtanh.f32 %v1127_v58 }
 0x889   :  { %v1156_v2 = vpop.f32.mrf.mxu2  ;;  %v1169_v60 = vpop.f32.mrf.mxu3 }
 0x88a   :  { %v1173_v62 = vadd.f32 %v1777_v59, %v1156_v2  ;;  %v1193_v25 = vadd.f32 %v2446_v53, %v1169_v60 }
 0x88c   :  { %v1897_v6 = vpop.eup %1896  ;;  %v1780_v63 = vmul.f32 -1.442695, %v1173_v62 }
 0x88d   :  { %1131 = vrot.lane.b32.xlu1 %v1897_v6, %s1931_s9 }
 0x88e   :  { %1898 = vpow2.f32 %v1780_v63 }
 0x891   :  { %v1158_v0 = vpop.f32.mrf.mxu2  ;;  %v1171_v30 = vpop.f32.mrf.mxu3 }
 0x894   :  { %v1899_v3 = vpop.eup %1898 }
 0x895   :  { %v1177_v5 = vadd.f32 1.0, %v1899_v3  ;;  %1207 = vrot.lane.b32.xlu1 %v2484_v23, %s1931_s9 }
 0x897   :  { %1900 = vrcp.f32 %v1177_v5  ;;  %v1189_v17 = vand.u32 2147483648, %v1177_v5  ;;  %v1187_v18 = vand.u32 2147483647, %v1177_v5  ;;  %vm1183_vm3 = vweird.f32 %v1177_v5 }
 0x899   :  { %v1190_v20 = vor.u32 1.1754944e-38, %v1189_v17  ;;  %vm1188_vm5 = vcmp.eq.f32.partialorder %v1187_v18, 8.507059e+37 }
 0x89d   :  { %v1901_v7 = vpop.eup %1900  ;;  %1227 = vperm.xlu1 %1822, %v1224_v14  }
 0x89e   :  { %v1179_v9 = vmul.f32 %v1901_v7, %v1177_v5  ;;  %vm1184_vm2 = vweird.f32 %v1901_v7 }
 0x89f   :  { %vm1185_vm4 = vmor %vm1183_vm3, %vm1184_vm2 }
 0x8a0   :  { %v1180_v10 = vsub.f32 1.0, %v1179_v9 }
 0x8a2   :  { %v1181_v26 = vmul.f32 %v1901_v7, %v1180_v10 }
 0x8a4   :  { %v1182_v1 = vadd.f32 %v1901_v7, %v1181_v26 }
 0x8a5   :  { %1247 = vperm.xlu1 %1822, %v1244_v16   ;;  %v1313_v16 = vrot.slane %v1783_v56, 2 }
 0x8a6   :  { %v1186_v31 = vsel %vm1185_vm4, %v1901_v7, %v1182_v1 }
 0x8a7   :  { %v1191_v33 = vsel %vm1188_vm5, %v1190_v20, %v1186_v31  ;;  %v1787_v31 = vld [vmem:[%s2616_s1 + $0x4] sm:$0xf] }
 0x8a8   :  { %v1194_v29 = vmul.f32 %v1193_v25, %v1191_v33  ;;  %v1200_v41 = vsub.f32 1.0, %v1191_v33 }
 0x8aa   :  { %v1198_v35 = vadd.f32 %v1196_v27, %v1194_v29 }
 0x8ac   :  { %1902 = vtanh.f32 %v1198_v35 }
 0x8b2   :  { %v1903_v37 = vpop.eup %1902 }
 0x8b3   :  { %1202 = vrot.lane.b32.xlu0 %v1903_v37, %s1931_s9 }
 0x8ff   :  { %v1132_v4 = vpop.permute.xlu1 %1131 }
 0x900   :  { %v1134_v11 = vmul.f32 %v1132_v4, %v1129_v61 }
 0x902   :  { %v1140_v32 = vadd.f32 %v1139_v19, %v1134_v11  ;;  %v1432_v19 = vsub.f32 1.0, %v1782_v40 }
 0x904   :  { %1218 = vst [vmem:[#allocation1] ss:$4 sm:$0xff] %v1140_v32 }
 0x907   :  { %v1208_v43 = vpop.permute.xlu1 %1207 }
 0x908   :  { %v1210_v39 = vmul.f32 %v1208_v43, %v1191_v33 }
 0x90b   :  { %v1219_v38 = vld.sshfl [vmem:[#allocation1] sm:$0xff pattern:$0x73625140] }
 0x90c   :  { %1220 = vrot.lane.b32.xlu0 %v1219_v38, %s1931_s9 }
 0x90f   :  { %v1228_v24 = vpop.permute.xlu1 %1227 }
 0x910   :  { %v1230_v34 = vmul.f32 %v1228_v24, %v2453_v36  ;;  %v1781_v36 = vld [vmem:[%s2617_s2 + $0xc] sm:$0x3] }
 0x911   :  { %v1412_v49 = vsub.f32 1.0, %v1781_v36 }
 0x917   :  { %v1248_v50 = vpop.permute.xlu1 %1247 }
 0x918   :  { %v1250_v57 = vmul.f32 %v1248_v50, %v2484_v23 }
 0x925   :  { %v1203_v44 = vpop.permute.xlu0 %1202 }
 0x926   :  { %v1205_v47 = vmul.f32 %v1203_v44, %v1200_v41 }
 0x928   :  { %v1211_v8 = vadd.f32 %v1210_v39, %v1205_v47 }
 0x92a   :  { %1238 = vst [vmem:[#allocation1] ss:$4 sm:$0xff] %v1211_v8 }
 0x931   :  { %v1239_v22 = vld.sshfl [vmem:[#allocation1] sm:$0xff pattern:$0x73625140] }
 0x932   :  { %1240 = vrot.lane.b32.xlu0 %v1239_v22, %s1931_s9  ;;  %v1384_v22 = vrot.slane %v1787_v31, 2 }
 0x97e   :  { %v1221_v45 = vpop.permute.xlu0 %1220 }
 0x97f   :  { %v1223_v46 = vmul.f32 %v1221_v45, %v1215_v12 }
 0x981   :  { %v2517_v28 = vadd.f32 %v1230_v34, %v1223_v46 }
 0x983   :  { %v1252_v42 = vmul.f32 %v2517_v28, %v1215_v12  ;;  %v1260_v13 = vpack.c.bf16 %v2517_v28, %v2517_v28  ;;  %1324 = vrot.lane.b32.xlu0 %v2517_v28, %s1931_s9 }
 0x985   :  { %1253 = vst.msk [vmem:[#allocation2 + $0xa] sm:$0x3] %vm306_vm8, %v1252_v42  ;;  %1784 = vmatmul.msk.bf16.vlgmr.msra.gmra.mxu0 %vm97_vm9, %v1260_v13  ;;  %1785 = vmatmul.msk.bf16.vlgmr.msra.gmra.mxu1 %vm97_vm9, %v1260_v13 }
 0x98b   :  { %1402 = vperm.xlu0 %1824, %v1781_v36  }
 0x993   :  { %1422 = vperm.xlu0 %1824, %v1782_v40  }
 0x9a4   :  { %v1241_v52 = vpop.permute.xlu0 %1240 }
 0x9a5   :  { %v1243_v15 = vmul.f32 %v1241_v52, %v1235_v48 }
 0x9a7   :  { %v2534_v51 = vadd.f32 %v1250_v57, %v1243_v15 }
 0x9a9   :  { %v1254_v54 = vmul.f32 %v2534_v51, %v1235_v48  ;;  %v1331_v55 = vpack.c.bf16 %v2534_v51, %v2534_v51 }
 0x9ab   :  { %1255 = vst.msk [vmem:[#allocation3 + $0x4] sm:$0x3] %vm306_vm8, %v1254_v54  ;;  %1788 = vmatmul.msk.bf16.vlgmr.msra.gmra.mxu2 %vm97_vm9, %v1331_v55  ;;  %1789 = vmatmul.msk.bf16.vlgmr.msra.gmra.mxu3 %vm97_vm9, %v1331_v55 }
 0x9f5   :  { %v1325_v36 = vpop.permute.xlu0 %1324 }
 0xa02   :  { %v1273_v58 = vpop.f32.mrf.mxu0  ;;  %v1286_v23 = vpop.f32.mrf.mxu1 }
 0xa03   :  { %v1290_v59 = vadd.f32 %v1783_v56, %v1273_v58  ;;  %v1310_v26 = vadd.f32 %v2432_v21, %v1286_v23 }
 0xa05   :  { %v1786_v2 = vmul.f32 -1.442695, %v1290_v59 }
 0xa07   :  { %1904 = vpow2.f32 %v1786_v2 }
 0xa0a   :  { %v1275_v60 = vpop.f32.mrf.mxu0  ;;  %v1288_v62 = vpop.f32.mrf.mxu1 }
 0xa0b   :  { %v1403_v60 = vpop.permute.xlu0 %1402 }
 0xa0d   :  { %v1905_v6 = vpop.eup %1904 }
 0xa0e   :  { %v1294_v63 = vadd.f32 1.0, %v1905_v6 }
 0xa10   :  { %1906 = vrcp.f32 %v1294_v63  ;;  %v1306_v5 = vand.u32 2147483648, %v1294_v63  ;;  %v1304_v7 = vand.u32 2147483647, %v1294_v63  ;;  %vm1300_vm7 = vweird.f32 %v1294_v63 }
 0xa12   :  { %v1307_v10 = vor.u32 1.1754944e-38, %v1306_v5  ;;  %vm1305_vm11 = vcmp.eq.f32.partialorder %v1304_v7, 8.507059e+37  ;;  %v1791_v5 = vld [vmem:[%s2617_s2 + $0xe] sm:$0x3] }
 0xa13   :  { %v1423_v7 = vpop.permute.xlu0 %1422 }
 0xa16   :  { %v1907_v0 = vpop.eup %1906 }
 0xa17   :  { %v1296_v30 = vmul.f32 %v1907_v0, %v1294_v63  ;;  %vm1301_vm6 = vweird.f32 %v1907_v0 }
 0xa18   :  { %vm1302_vm10 = vmor %vm1300_vm7, %vm1301_vm6 }
 0xa19   :  { %v1297_v3 = vsub.f32 1.0, %v1296_v30 }
 0xa1b   :  { %v1298_v14 = vmul.f32 %v1907_v0, %v1297_v3 }
 0xa1d   :  { %v1299_v9 = vadd.f32 %v1907_v0, %v1298_v14 }
 0xa1f   :  { %v1303_v17 = vsel %vm1302_vm10, %v1907_v0, %v1299_v9 }
 0xa20   :  { %v1308_v18 = vsel %vm1305_vm11, %v1307_v10, %v1303_v17 }
 0xa21   :  { %v1311_v1 = vmul.f32 %v1310_v26, %v1308_v18  ;;  %v1317_v13 = vsub.f32 1.0, %v1308_v18  ;;  %v1327_v48 = vmul.f32 %v1325_v36, %v1308_v18 }
 0xa23   :  { %v1315_v20 = vadd.f32 %v1313_v16, %v1311_v1  ;;  %v1792_v1 = vld [vmem:[%s2615_s0 + $0x1c] sm:$0xf] }
 0xa25   :  { %1908 = vtanh.f32 %v1315_v20 }
 0xa2b   :  { %v1909_v27 = vpop.eup %1908 }
 0xa2c   :  { %1319 = vrot.lane.b32.xlu2 %v1909_v27, %s1931_s9 }
 0xa2e   :  { %v1344_v25 = vpop.f32.mrf.mxu2  ;;  %v1357_v33 = vpop.f32.mrf.mxu3 }
 0xa2f   :  { %v1361_v29 = vadd.f32 %v1787_v31, %v1344_v25  ;;  %v1381_v12 = vadd.f32 %v2446_v53, %v1357_v33 }
 0xa31   :  { %v1790_v35 = vmul.f32 -1.442695, %v1361_v29 }
 0xa33   :  { %1910 = vpow2.f32 %v1790_v35 }
 0xa34   :  { %1395 = vrot.lane.b32.xlu2 %v2534_v51, %s1931_s9 }
 0xa36   :  { %v1346_v37 = vpop.f32.mrf.mxu2  ;;  %v1359_v61 = vpop.f32.mrf.mxu3 }
 0xa39   :  { %v1911_v4 = vpop.eup %1910 }
 0xa3a   :  { %v1365_v11 = vadd.f32 1.0, %v1911_v4 }
 0xa3c   :  { %1912 = vrcp.f32 %v1365_v11  ;;  %1415 = vperm.xlu2 %1823, %v1412_v49   ;;  %v1377_v41 = vand.u32 2147483648, %v1365_v11  ;;  %v1375_v39 = vand.u32 2147483647, %v1365_v11  ;;  %vm1371_vm13 = vweird.f32 %v1365_v11 }
 0xa3e   :  { %v1378_v8 = vor.u32 1.1754944e-38, %v1377_v41  ;;  %vm1376_vm15 = vcmp.eq.f32.partialorder %v1375_v39, 8.507059e+37 }
 0xa42   :  { %v1913_v32 = vpop.eup %1912 }
 0xa43   :  { %v1367_v38 = vmul.f32 %v1913_v32, %v1365_v11  ;;  %vm1372_vm12 = vweird.f32 %v1913_v32 }
 0xa44   :  { %1435 = vperm.xlu2 %1823, %v1432_v19   ;;  %vm1373_vm14 = vmor %vm1371_vm13, %vm1372_vm12 }
 0xa45   :  { %v1368_v43 = vsub.f32 1.0, %v1367_v38 }
 0xa47   :  { %v1369_v44 = vmul.f32 %v1913_v32, %v1368_v43  ;;  %v1501_v43 = vrot.slane %v1792_v1, 2 }
 0xa49   :  { %v1370_v47 = vadd.f32 %v1913_v32, %v1369_v44 }
 0xa4b   :  { %v1374_v24 = vsel %vm1373_vm14, %v1913_v32, %v1370_v47 }
 0xa4c   :  { %v1379_v45 = vsel %vm1376_vm15, %v1378_v8, %v1374_v24 }
 0xa4d   :  { %v1382_v34 = vmul.f32 %v1381_v12, %v1379_v45  ;;  %v1388_v54 = vsub.f32 1.0, %v1379_v45  ;;  %v1599_v12 = vsub.f32 1.0, %v1791_v5 }
 0xa4f   :  { %v1386_v46 = vadd.f32 %v1384_v22, %v1382_v34 }
 0xa51   :  { %1914 = vtanh.f32 %v1386_v46 }
 0xa57   :  { %v1915_v42 = vpop.eup %1914 }
 0xa58   :  { %1390 = vrot.lane.b32.xlu1 %v1915_v42, %s1931_s9 }
 0xa86   :  { %v1320_v40 = vpop.permute.xlu2 %1319 }
 0xa87   :  { %v1322_v50 = vmul.f32 %v1320_v40, %v1317_v13 }
 0xa89   :  { %v1328_v52 = vadd.f32 %v1327_v48, %v1322_v50 }
 0xa8b   :  { %1406 = vst [vmem:[#allocation1] ss:$4 sm:$0xff] %v1328_v52 }
 0xa8e   :  { %v1396_v15 = vpop.permute.xlu2 %1395 }
 0xa8f   :  { %v1398_v56 = vmul.f32 %v1396_v15, %v1379_v45  ;;  %v1517_v45 = vld [vmem:[%s2616_s1] sm:$0xf] }
 0xa92   :  { %v1407_v57 = vld.sshfl [vmem:[#allocation1] sm:$0xff pattern:$0x73625140] }
 0xa93   :  { %1408 = vrot.lane.b32.xlu1 %v1407_v57, %s1931_s9 }
 0xa96   :  { %v1416_v2 = vpop.permute.xlu2 %1415 }
 0xa97   :  { %v1418_v6 = vmul.f32 %v1416_v2, %v2517_v28  ;;  %v1445_v28 = vld [vmem:[%s2617_s2] sm:$0x3] }
 0xa98   :  { %v1619_v24 = vsub.f32 1.0, %v1445_v28 }
 0xa9e   :  { %v1436_v14 = vpop.permute.xlu2 %1435 }
 0xa9f   :  { %v1438_v10 = vmul.f32 %v1436_v14, %v2534_v51 }
 0xaca   :  { %v1391_v55 = vpop.permute.xlu1 %1390 }
 0xacb   :  { %v1393_v58 = vmul.f32 %v1391_v55, %v1388_v54 }
 0xacd   :  { %v1399_v23 = vadd.f32 %v1398_v56, %v1393_v58 }
 0xacf   :  { %1426 = vst [vmem:[#allocation1] ss:$4 sm:$0xff] %v1399_v23  ;;  %v1571_v23 = vrot.slane %v1517_v45, 2 }
 0xad6   :  { %v1427_v59 = vld.sshfl [vmem:[#allocation1] sm:$0xff pattern:$0x73625140] }
 0xad7   :  { %1428 = vrot.lane.b32.xlu1 %v1427_v59, %s1931_s9 }
 0xb05   :  { %v1409_v62 = vpop.permute.xlu1 %1408 }
 0xb06   :  { %v1411_v63 = vmul.f32 %v1409_v62, %v1403_v60 }
 0xb08   :  { %v2557_v0 = vadd.f32 %v1418_v6, %v1411_v63 }
 0xb0a   :  { %v1440_v30 = vmul.f32 %v2557_v0, %v1403_v60  ;;  %v1448_v3 = vpack.c.bf16 %v2557_v0, %v2557_v0  ;;  %1512 = vrot.lane.b32.xlu1 %v2557_v0, %s1931_s9 }
 0xb0c   :  { %1441 = vst.msk [vmem:[#allocation2 + $0xc] sm:$0x3] %vm306_vm8, %v1440_v30  ;;  %1793 = vmatmul.msk.bf16.vlgmr.msrb.gmra.mxu0 %vm97_vm9, %v1448_v3  ;;  %1794 = vmatmul.msk.bf16.vlgmr.msrb.gmra.mxu1 %vm97_vm9, %v1448_v3 }
 0xb12   :  { %1609 = vperm.xlu1 %1822, %v1445_v28  }
 0xb1a   :  { %1589 = vperm.xlu1 %1822, %v1791_v5  }
 0xb49   :  { %v1429_v9 = vpop.permute.xlu1 %1428 }
 0xb4a   :  { %v1431_v16 = vmul.f32 %v1429_v9, %v1423_v7 }
 0xb4c   :  { %v2574_v17 = vadd.f32 %v1438_v10, %v1431_v16 }
 0xb4e   :  { %v1442_v26 = vmul.f32 %v2574_v17, %v1423_v7  ;;  %v1518_v18 = vpack.c.bf16 %v2574_v17, %v2574_v17 }
 0xb50   :  { %1443 = vst.msk [vmem:[#allocation3 + $0x2] sm:$0x3] %vm306_vm8, %v1442_v26  ;;  %1796 = vmatmul.msk.bf16.vlgmr.msrb.gmra.mxu2 %vm97_vm9, %v1518_v18  ;;  %1797 = vmatmul.msk.bf16.vlgmr.msrb.gmra.mxu3 %vm97_vm9, %v1518_v18 }
 0xb7c   :  { %v1513_v3 = vpop.permute.xlu1 %1512 }
 0xb89   :  { %v1461_v20 = vpop.f32.mrf.mxu0  ;;  %v1474_v51 = vpop.f32.mrf.mxu1 }
 0xb8a   :  { %v1478_v27 = vadd.f32 %v1792_v1, %v1461_v20  ;;  %v1498_v44 = vadd.f32 %v2432_v21, %v1474_v51 }
 0xb8c   :  { %v1795_v31 = vmul.f32 -1.442695, %v1478_v27  ;;  %v1610_v27 = vpop.permute.xlu1 %1609 }
 0xb8e   :  { %1916 = vpow2.f32 %v1795_v31 }
 0xb91   :  { %v1463_v25 = vpop.f32.mrf.mxu0  ;;  %v1476_v33 = vpop.f32.mrf.mxu1 }
 0xb94   :  { %v1917_v29 = vpop.eup %1916 }
 0xb95   :  { %v1482_v35 = vadd.f32 1.0, %v1917_v29 }
 0xb97   :  { %1918 = vrcp.f32 %v1482_v35  ;;  %v1494_v4 = vand.u32 2147483648, %v1482_v35  ;;  %v1492_v19 = vand.u32 2147483647, %v1482_v35  ;;  %vm1488_vm1 = vweird.f32 %v1482_v35 }
 0xb99   :  { %v1495_v38 = vor.u32 1.1754944e-38, %v1494_v4  ;;  %vm1493_vm3 = vcmp.eq.f32.partialorder %v1492_v19, 8.507059e+37 }
 0xb9d   :  { %v1919_v37 = vpop.eup %1918 }
 0xb9e   :  { %v1484_v61 = vmul.f32 %v1919_v37, %v1482_v35  ;;  %vm1489_vm0 = vweird.f32 %v1919_v37 }
 0xb9f   :  { %vm1490_vm2 = vmor %vm1488_vm1, %vm1489_vm0 }
 0xba0   :  { %v1485_v49 = vsub.f32 1.0, %v1484_v61  ;;  %v1590_v61 = vpop.permute.xlu1 %1589 }
 0xba2   :  { %v1486_v11 = vmul.f32 %v1919_v37, %v1485_v49 }
 0xba4   :  { %v1487_v32 = vadd.f32 %v1919_v37, %v1486_v11 }
 0xba6   :  { %v1491_v41 = vsel %vm1490_vm2, %v1919_v37, %v1487_v32 }
 0xba7   :  { %v1496_v39 = vsel %vm1493_vm3, %v1495_v38, %v1491_v41 }
 0xba8   :  { %v1499_v47 = vmul.f32 %v1498_v44, %v1496_v39  ;;  %v1505_v30 = vsub.f32 1.0, %v1496_v39  ;;  %v1515_v14 = vmul.f32 %v1513_v3, %v1496_v39 }
 0xbaa   :  { %v1503_v8 = vadd.f32 %v1501_v43, %v1499_v47  ;;  %v1634_v43 = vld [vmem:[#allocation3 + $0x8] sm:$0xff] }
 0xbac   :  { %1920 = vtanh.f32 %v1503_v8  ;;  %v1631_v8 = vld [vmem:[#allocation2] sm:$0xff] }
 0xbb2   :  { %v1921_v22 = vpop.eup %1920 }
 0xbb3   :  { %1507 = vrot.lane.b32.xlu0 %v1921_v22, %s1931_s9 }
 0xbbb   :  { %1582 = vrot.lane.b32.xlu0 %v2574_v17, %s1931_s9 }
 0xbc3   :  { %1622 = vperm.xlu0 %1824, %v1619_v24  }
 0xbcb   :  { %1602 = vperm.xlu0 %1824, %v1599_v12  }
 0xbd3   :  { %v1531_v34 = vpop.f32.mrf.mxu2  ;;  %v1544_v21 = vpop.f32.mrf.mxu3 }
 0xbd4   :  { %v1548_v46 = vadd.f32 %v1531_v34, %v1517_v45  ;;  %v1568_v2 = vadd.f32 %v2446_v53, %v1544_v21 }
 0xbd6   :  { %v1798_v42 = vmul.f32 -1.442695, %v1548_v46 }
 0xbd8   :  { %1922 = vpow2.f32 %v1798_v42 }
 0xbdb   :  { %v1533_v13 = vpop.f32.mrf.mxu2  ;;  %v1546_v36 = vpop.f32.mrf.mxu3 }
 0xbde   :  { %v1923_v40 = vpop.eup %1922 }
 0xbdf   :  { %v1552_v50 = vadd.f32 1.0, %v1923_v40 }
 0xbe1   :  { %1924 = vrcp.f32 %v1552_v50  ;;  %v1564_v15 = vand.u32 2147483648, %v1552_v50  ;;  %v1562_v55 = vand.u32 2147483647, %v1552_v50  ;;  %vm1558_vm5 = vweird.f32 %v1552_v50 }
 0xbe3   :  { %v1565_v58 = vor.u32 1.1754944e-38, %v1564_v15  ;;  %vm1563_vm7 = vcmp.eq.f32.partialorder %v1562_v55, 8.507059e+37 }
 0xbe7   :  { %v1925_v48 = vpop.eup %1924 }
 0xbe8   :  { %v1554_v52 = vmul.f32 %v1925_v48, %v1552_v50  ;;  %vm1559_vm4 = vweird.f32 %v1925_v48 }
 0xbe9   :  { %vm1560_vm6 = vmor %vm1558_vm5, %vm1559_vm4 }
 0xbea   :  { %v1555_v57 = vsub.f32 1.0, %v1554_v52 }
 0xbec   :  { %v1556_v54 = vmul.f32 %v1925_v48, %v1555_v57 }
 0xbee   :  { %v1557_v56 = vadd.f32 %v1925_v48, %v1556_v54 }
 0xbf0   :  { %v1561_v59 = vsel %vm1560_vm6, %v1925_v48, %v1557_v56 }
 0xbf1   :  { %v1566_v60 = vsel %vm1563_vm7, %v1565_v58, %v1561_v59 }
 0xbf2   :  { %v1569_v62 = vmul.f32 %v1568_v2, %v1566_v60  ;;  %v1575_v10 = vsub.f32 1.0, %v1566_v60 }
 0xbf4   :  { %v1573_v6 = vadd.f32 %v1571_v23, %v1569_v62 }
 0xbf6   :  { %1926 = vtanh.f32 %v1573_v6 }
 0xbfc   :  { %v1927_v63 = vpop.eup %1926 }
 0xbfd   :  { %1577 = vrot.lane.b32.xlu2 %v1927_v63, %s1931_s9 }
 0xc25   :  { %v1508_v28 = vpop.permute.xlu0 %1507 }
 0xc26   :  { %v1510_v5 = vmul.f32 %v1508_v28, %v1505_v30 }
 0xc28   :  { %v1516_v7 = vadd.f32 %v1515_v14, %v1510_v5 }
 0xc2a   :  { %1593 = vst [vmem:[#allocation1] ss:$4 sm:$0xff] %v1516_v7 }
 0xc2d   :  { %v1583_v9 = vpop.permute.xlu0 %1582 }
 0xc2e   :  { %v1585_v26 = vmul.f32 %v1583_v9, %v1566_v60 }
 0xc31   :  { %v1594_v1 = vld.sshfl [vmem:[#allocation1] sm:$0xff pattern:$0x73625140] }
 0xc35   :  { %v1623_v51 = vpop.permute.xlu0 %1622 }
 0xc36   :  { %v1625_v25 = vmul.f32 %v1623_v51, %v2574_v17 }
 0xc3d   :  { %v1603_v37 = vpop.permute.xlu0 %1602 }
 0xc3e   :  { %v1605_v4 = vmul.f32 %v1603_v37, %v2557_v0 }
 0xc57   :  { %v1578_v16 = vpop.permute.xlu2 %1577 }
 0xc58   :  { %v1580_v18 = vmul.f32 %v1578_v16, %v1575_v10 }
 0xc5a   :  { %v1586_v53 = vadd.f32 %v1585_v26, %v1580_v18 }
 0xc5c   :  { %1613 = vst [vmem:[#allocation1] ss:$4 sm:$0xff] %v1586_v53 }
 0xc63   :  { %v1614_v20 = vld.sshfl [vmem:[#allocation1] sm:$0xff pattern:$0x73625140] }
 0xc64   :  { %1615 = vrot.lane.b32.xlu2 %v1614_v20, %s1931_s9 }
 0xc6c   :  { %1595 = vrot.lane.b32.xlu2 %v1594_v1, %s1931_s9 }
 0xcbe   :  { %v1616_v31 = vpop.permute.xlu2 %1615 }
 0xcbf   :  { %v1618_v33 = vmul.f32 %v1616_v31, %v1610_v27 }
 0xcc1   :  { %v1626_v29 = vadd.f32 %v1625_v25, %v1618_v33 }
 0xcc3   :  { %v1629_v35 = vmul.f32 %v1626_v29, %v1610_v27  ;;  %1650 = vrot.lane.b32.xlu2 %v1626_v29, %s1931_s9 }
 0xcc5   :  { %1630 = vst.msk [vmem:[#allocation3] sm:$0x3] %vm306_vm8, %v1629_v35 }
 0xcc6   :  { %v1596_v49 = vpop.permute.xlu2 %1595 }
 0xcc7   :  { %v1598_v11 = vmul.f32 %v1596_v49, %v1590_v61 }
 0xcc9   :  { %v1606_v19 = vadd.f32 %v1605_v4, %v1598_v11 }
 0xccb   :  { %v1627_v32 = vmul.f32 %v1606_v19, %v1590_v61 }
 0xccc   :  { %v1633_v38 = vld [vmem:[#allocation3] sm:$0xff] }
 0xccd   :  { %1628 = vst.msk [vmem:[#allocation2 + $0xe] sm:$0x3] %vm306_vm8, %v1627_v32  ;;  %v1825_v17 = vpack.i.bf16 %v1634_v43, %v1633_v38 }
 0xccf   :  { %1826 = vrot.lane.b32.xlu1 %v1825_v17, %s1931_s9 }
 0xcd4   :  { %v1632_v22 = vld [vmem:[#allocation2 + $0x8] sm:$0xff] }
 0xd1d   :  { %v1651_v41 = vpop.permute.xlu2 %1650 }
 0xd1e   :  { %v1653_v44 = vsel %vm97_vm9, %v1606_v19, %v1651_v41 }
 0xd1f   :  { %1654 = vst [vmem:[%s2618_s8] sm:$0x3] %v1653_v44 }
 0xd41   :  { %v1827_v39 = vpop.permute.xlu1 %1826 }
 0xd42   :  { %v1829_v47 = vunpack.i.h.bf16 %v1827_v39  ;;  %v1828_v0 = vunpack.i.l.bf16 %v1827_v39 }
 0xd44   :  { %v1644_v24 = vsel %vm97_vm9, %v1632_v22, %v1829_v47  ;;  %v1643_v12 = vsel %vm97_vm9, %v1631_v8, %v1828_v0 }
 0xd45   :  { %v1818_v45 = vpack.c.bf16 %v1644_v24, %v1643_v12 }
 0xd47   :  { %1819 = vst [vmem:[%s2619_s7] sm:$0xff] %v1818_v45  }

</bundles_post_ra>
